<compile_context>
chip_gen: v5e
topology: v5e:2x2
jax: 0.10.0
libtpu: 0.0.40
codegen_flags: <defaults>
</compile_context>

<pallas_src>
import jax
import jax.numpy as jnp
from jax.experimental import pallas as pl
from jax.experimental.pallas import tpu as pltpu

EPS = 1e-5  # torch.nn.BatchNorm2d default eps


# --------------------------- Pallas kernel ----------------------------------
def _circ_block_kernel(xpad_ref, w1_ref, b1_ref, w2_ref, b2_ref, o_ref):
    """One grid step = one batch element.  Fully fused CircBlock.

    xpad_ref: (1, H+2, W+2, C)   wrap-padded input, NHWC
    w1_ref:   (9*C, P)           conv1 weight, BN1 scale folded in
    b1_ref:   (1, P)             folded conv1-bias + BN1 shift
    w2_ref:   (9*P, P)           conv2 weight, BN2 scale folded in
    b2_ref:   (1, P)             folded conv2-bias + BN2 shift
    o_ref:    (1, P, H*W)        output, channels-first (lane-dense store)
    """
    H = xpad_ref.shape[1] - 2
    W = xpad_ref.shape[2] - 2
    P = o_ref.shape[1]

    xp = xpad_ref[0]  # (H+2, W+2, C) in VMEM

    def conv3x3(xpad_img, w_ref, b_ref):
        # Build the im2col patches entirely in VMEM from 9 static shifted views.
        views = [xpad_img[dy:dy + H, dx:dx + W, :]
                 for dy in range(3) for dx in range(3)]         # 9 x (H, W, Cin)
        col = jnp.concatenate(views, axis=-1)                   # (H, W, 9*Cin)
        col = col.reshape(H * W, col.shape[-1])                 # (H*W, 9*Cin)
        y = jnp.dot(col, w_ref[...], preferred_element_type=jnp.float32)
        return y + b_ref[...]                                   # (H*W, Cout)

    # out = relu(bn1(conv1(x)))   (dropout_rate=0 -> identity); h1 stays in VMEM.
    h1 = jnp.maximum(conv3x3(xp, w1_ref, b1_ref), 0.0)          # (H*W, P)

    # Circularly pad h1 in VMEM for conv2 (no HBM round-trip).
    h3 = h1.reshape(H, W, P)
    hp = jnp.concatenate([h3[H - 1:H, :, :], h3, h3[0:1, :, :]], axis=0)   # (H+2, W,   P)
    hp = jnp.concatenate([hp[:, W - 1:W, :], hp, hp[:, 0:1, :]], axis=1)   # (H+2, W+2, P)

    # out = relu(bn2(conv2(out))) + identity   (downsample=None -> identity = x)
    out = jnp.maximum(conv3x3(hp, w2_ref, b2_ref), 0.0)          # (H*W, P)
    res = xp[1:H + 1, 1:W + 1, :].reshape(H * W, P)              # center of padded x
    out = out + res.astype(jnp.float32)

    # Lane-dense store: last dim H*W is a multiple of 128, and (P, H*W) is
    # already the NCHW-flattened layout, so no host-side transpose is needed.
    o_ref[0] = out.T.astype(o_ref.dtype)


def circ_block_pallas(xpad, w1f, b1f, w2f, b2f, planes):
    N, Hp, Wp, C = xpad.shape
    H, W = Hp - 2, Wp - 2
    return pl.pallas_call(
        _circ_block_kernel,
        out_shape=jax.ShapeDtypeStruct((N, planes, H * W), xpad.dtype),
        grid=(N,),
        in_specs=[
            pl.BlockSpec((1, Hp, Wp, C), lambda n: (n, 0, 0, 0)),
            pl.BlockSpec((9 * C, planes), lambda n: (0, 0)),
            pl.BlockSpec((1, planes), lambda n: (0, 0)),
            pl.BlockSpec((9 * planes, planes), lambda n: (0, 0)),
            pl.BlockSpec((1, planes), lambda n: (0, 0)),
        ],
        out_specs=pl.BlockSpec((1, planes, H * W), lambda n: (n, 0, 0)),
        compiler_params=pltpu.CompilerParams(
            dimension_semantics=("parallel",),   # lets v7x megacore split batch
        ),
    )(xpad, w1f, b1f, w2f, b2f)


# ------------------------------- host glue ------------------------------------
def conv_weight_to_matmul(w_oihw):
    """torch layout (Cout, Cin, 3, 3) -> (9*Cin, Cout) matching in-kernel (dy,dx,ci)."""
    cout = w_oihw.shape[0]
    return jnp.transpose(w_oihw, (2, 3, 1, 0)).reshape(-1, cout)


def fold_bn(conv_bias, gamma, beta, running_mean, running_var):
    """Fold conv bias + inference-mode BatchNorm into per-channel scale/bias."""
    s = gamma / jnp.sqrt(running_var + EPS)
    b = beta + (conv_bias - running_mean) * s
    return s.reshape(1, -1), b.reshape(1, -1)


def circ_block_forward(x_nchw, p):
    """CircBlock.forward.  x_nchw: (N, C, H, W) -> (N, C, H, W)."""
    N, C, H, W = x_nchw.shape
    planes = p["w1"].shape[0]
    # downsample=None in the reference block -> residual requires inplanes == planes.
    assert planes == C, (planes, C)
    # lane-dense output store assumes H*W is a multiple of 128
    assert (H * W) % 128 == 0, (H, W)

    # NHWC + circular ("wrap") padding once, in XLA (tiny: +27% of x, no 9x im2col).
    x_nhwc = jnp.transpose(x_nchw, (0, 2, 3, 1))
    xpad = jnp.pad(x_nhwc, ((0, 0), (1, 1), (1, 1), (0, 0)), mode="wrap")

    # Fold BN scale into the weight columns so the kernel epilogue is +bias only.
    w1 = conv_weight_to_matmul(p["w1"])
    w2 = conv_weight_to_matmul(p["w2"])
    s1, b1 = fold_bn(p["b1"], p["g1"], p["beta1"], p["rm1"], p["rv1"])
    s2, b2 = fold_bn(p["b2"], p["g2"], p["beta2"], p["rm2"], p["rv2"])
    w1f = w1 * s1          # scale per output column
    w2f = w2 * s2

    out = circ_block_pallas(xpad, w1f, b1, w2f, b2, planes)      # (N, P, H*W)
    return out.reshape(N, planes, H, W)                          # free reshape (NCHW)


# ------------------------- pure-JAX reference --------------------------------
def ref_circ_block(x_nchw, p):
    x = jnp.transpose(x_nchw, (0, 2, 3, 1))

    def conv(xin, w_oihw, b):
        xpad = jnp.pad(xin, ((0, 0), (1, 1), (1, 1), (0, 0)), mode="wrap")
        w = jnp.transpose(w_oihw, (2, 3, 1, 0))                  # HWIO
        y = jax.lax.conv_general_dilated(
            xpad, w, (1, 1), "VALID", dimension_numbers=("NHWC", "HWIO", "NHWC"))
        return y + b

    def bn(y, g, be, m, v):
        return (y - m) / jnp.sqrt(v + EPS) * g + be

    h = jnp.maximum(bn(conv(x, p["w1"], p["b1"]), p["g1"], p["beta1"], p["rm1"], p["rv1"]), 0.0)
    o = jnp.maximum(bn(conv(h, p["w2"], p["b2"]), p["g2"], p["beta2"], p["rm2"], p["rv2"]), 0.0)
    o = o + x
    return jnp.transpose(o, (0, 3, 1, 2))


# --------------------------------- main ---------------------------------------
if __name__ == "__main__":
    key = jax.random.PRNGKey(0)
    N, C, H, W = 2, 4, 16, 16          # inplanes = planes = 4 (residual requires equality)
    planes = C
    ks = jax.random.split(key, 12)

    x = jax.random.normal(ks[0], (N, C, H, W), jnp.float32)

    params = dict(
        # conv1: PeriodicConv2D(inplanes, planes, 3, bias=True)
        w1=0.2 * jax.random.normal(ks[1], (planes, C, 3, 3), jnp.float32),
        b1=0.1 * jax.random.normal(ks[2], (planes,), jnp.float32),
        # bn1 (inference mode)
        g1=1.0 + 0.1 * jax.random.normal(ks[3], (planes,), jnp.float32),
        beta1=0.1 * jax.random.normal(ks[4], (planes,), jnp.float32),
        rm1=0.1 * jax.random.normal(ks[5], (planes,), jnp.float32),
        rv1=1.0 + 0.1 * jax.random.uniform(ks[6], (planes,), jnp.float32),
        # conv2: PeriodicConv2D(planes, planes, 3, bias=True)
        w2=0.2 * jax.random.normal(ks[7], (planes, planes, 3, 3), jnp.float32),
        b2=0.1 * jax.random.normal(ks[8], (planes,), jnp.float32),
        # bn2 (inference mode)
        g2=1.0 + 0.1 * jax.random.normal(ks[9], (planes,), jnp.float32),
        beta2=0.1 * jax.random.normal(ks[10], (planes,), jnp.float32),
        rm2=0.1 * jax.random.normal(ks[11], (planes,), jnp.float32),
        rv2=jnp.ones((planes,), jnp.float32),
    )

    out = jax.block_until_ready(circ_block_forward(x, params))
    ref = jax.block_until_ready(ref_circ_block(x, params))

    assert out.shape == (N, C, H, W), out.shape
    assert jnp.allclose(out, ref, rtol=1e-3, atol=1e-3), float(jnp.max(jnp.abs(out - ref)))
    print("KERNEL_OK")
</pallas_src>

<mosaic_0001>
module attributes {stable_mosaic.version = 11 : i64} {
  func.func @_circ_block_kernel(%arg0: i32, %arg1: memref<1x18x18x4xf32, #tpu.memory_space<vmem>>, %arg2: memref<36x4xf32, #tpu.memory_space<vmem>>, %arg3: memref<1x4xf32, #tpu.memory_space<vmem>>, %arg4: memref<36x4xf32, #tpu.memory_space<vmem>>, %arg5: memref<1x4xf32, #tpu.memory_space<vmem>>, %arg6: memref<1x4x256xf32, #tpu.memory_space<vmem>>) attributes {dimension_semantics = [#tpu.dimension_semantics<parallel>], iteration_bounds = array<i64: 2>, scalar_prefetch = 0 : i64, scratch_operands = 0 : i64, tpu.core_type = #tpu.core_type<tc>, window_params = [{transform_indices = @transform_0, window_bounds = array<i64: 1, 18, 18, 4>}, {pipeline_mode = #tpu.pipeline_mode<synchronous>, transform_indices = @transform_1, window_bounds = array<i64: 36, 4>}, {pipeline_mode = #tpu.pipeline_mode<synchronous>, transform_indices = @transform_2, window_bounds = array<i64: 1, 4>}, {pipeline_mode = #tpu.pipeline_mode<synchronous>, transform_indices = @transform_3, window_bounds = array<i64: 36, 4>}, {pipeline_mode = #tpu.pipeline_mode<synchronous>, transform_indices = @transform_4, window_bounds = array<i64: 1, 4>}, {transform_indices = @transform_5, window_bounds = array<i64: 1, 4, 256>}]} {
    %c0 = arith.constant 0 : index
    %c0_0 = arith.constant 0 : index
    %c0_1 = arith.constant 0 : index
    %c0_2 = arith.constant 0 : index
    %0 = vector.load %arg1[%c0, %c0_0, %c0_1, %c0_2] : memref<1x18x18x4xf32, #tpu.memory_space<vmem>>, vector<1x18x18x4xf32>
    %1 = vector.shape_cast %0 : vector<1x18x18x4xf32> to vector<18x18x4xf32>
    %2 = vector.extract_strided_slice %1 {offsets = [0, 0, 0], sizes = [16, 16, 4], strides = [1, 1, 1]} : vector<18x18x4xf32> to vector<16x16x4xf32>
    %3 = vector.extract_strided_slice %1 {offsets = [0, 1, 0], sizes = [16, 16, 4], strides = [1, 1, 1]} : vector<18x18x4xf32> to vector<16x16x4xf32>
    %4 = vector.extract_strided_slice %1 {offsets = [0, 2, 0], sizes = [16, 16, 4], strides = [1, 1, 1]} : vector<18x18x4xf32> to vector<16x16x4xf32>
    %5 = vector.extract_strided_slice %1 {offsets = [1, 0, 0], sizes = [16, 16, 4], strides = [1, 1, 1]} : vector<18x18x4xf32> to vector<16x16x4xf32>
    %6 = vector.extract_strided_slice %1 {offsets = [1, 1, 0], sizes = [16, 16, 4], strides = [1, 1, 1]} : vector<18x18x4xf32> to vector<16x16x4xf32>
    %7 = vector.extract_strided_slice %1 {offsets = [1, 2, 0], sizes = [16, 16, 4], strides = [1, 1, 1]} : vector<18x18x4xf32> to vector<16x16x4xf32>
    %8 = vector.extract_strided_slice %1 {offsets = [2, 0, 0], sizes = [16, 16, 4], strides = [1, 1, 1]} : vector<18x18x4xf32> to vector<16x16x4xf32>
    %9 = vector.extract_strided_slice %1 {offsets = [2, 1, 0], sizes = [16, 16, 4], strides = [1, 1, 1]} : vector<18x18x4xf32> to vector<16x16x4xf32>
    %10 = vector.extract_strided_slice %1 {offsets = [2, 2, 0], sizes = [16, 16, 4], strides = [1, 1, 1]} : vector<18x18x4xf32> to vector<16x16x4xf32>
    %11 = tpu.concatenate %2, %3, %4, %5, %6, %7, %8, %9, %10 in 2 : vector<16x16x4xf32>, vector<16x16x4xf32>, vector<16x16x4xf32>, vector<16x16x4xf32>, vector<16x16x4xf32>, vector<16x16x4xf32>, vector<16x16x4xf32>, vector<16x16x4xf32>, vector<16x16x4xf32> -> vector<16x16x36xf32>
    %12 = vector.shape_cast %11 : vector<16x16x36xf32> to vector<256x36xf32>
    %c0_3 = arith.constant 0 : index
    %c0_4 = arith.constant 0 : index
    %13 = vector.load %arg2[%c0_3, %c0_4] : memref<36x4xf32, #tpu.memory_space<vmem>>, vector<36x4xf32>
    %cst = arith.constant dense<0.000000e+00> : vector<256x4xf32>
    %14 = tpu.matmul %12, %13, %cst {dimension_numbers = #tpu.dot_dimension_numbers<[1], [0], [0], [1], [0, 0, 1, 1], [], []>} : vector<256x36xf32>, vector<36x4xf32>, vector<256x4xf32> -> vector<256x4xf32>
    %c0_5 = arith.constant 0 : index
    %c0_6 = arith.constant 0 : index
    %15 = vector.load %arg3[%c0_5, %c0_6] : memref<1x4xf32, #tpu.memory_space<vmem>>, vector<1x4xf32>
    %16 = vector.broadcast %15 : vector<1x4xf32> to vector<256x4xf32>
    %17 = arith.addf %14, %16 : vector<256x4xf32>
    %cst_7 = arith.constant 0.000000e+00 : f32
    %18 = vector.broadcast %cst_7 : f32 to vector<256x4xf32>
    %19 = arith.maximumf %17, %18 : vector<256x4xf32>
    %20 = vector.shape_cast %19 : vector<256x4xf32> to vector<16x16x4xf32>
    %21 = vector.extract_strided_slice %20 {offsets = [15, 0, 0], sizes = [1, 16, 4], strides = [1, 1, 1]} : vector<16x16x4xf32> to vector<1x16x4xf32>
    %22 = vector.extract_strided_slice %20 {offsets = [0, 0, 0], sizes = [1, 16, 4], strides = [1, 1, 1]} : vector<16x16x4xf32> to vector<1x16x4xf32>
    %23 = tpu.concatenate %21, %20, %22 in 0 : vector<1x16x4xf32>, vector<16x16x4xf32>, vector<1x16x4xf32> -> vector<18x16x4xf32>
    %24 = vector.extract_strided_slice %23 {offsets = [0, 15, 0], sizes = [18, 1, 4], strides = [1, 1, 1]} : vector<18x16x4xf32> to vector<18x1x4xf32>
    %25 = vector.extract_strided_slice %23 {offsets = [0, 0, 0], sizes = [18, 1, 4], strides = [1, 1, 1]} : vector<18x16x4xf32> to vector<18x1x4xf32>
    %26 = tpu.concatenate %24, %23, %25 in 1 : vector<18x1x4xf32>, vector<18x16x4xf32>, vector<18x1x4xf32> -> vector<18x18x4xf32>
    %27 = vector.extract_strided_slice %26 {offsets = [0, 0, 0], sizes = [16, 16, 4], strides = [1, 1, 1]} : vector<18x18x4xf32> to vector<16x16x4xf32>
    %28 = vector.extract_strided_slice %26 {offsets = [0, 1, 0], sizes = [16, 16, 4], strides = [1, 1, 1]} : vector<18x18x4xf32> to vector<16x16x4xf32>
    %29 = vector.extract_strided_slice %26 {offsets = [0, 2, 0], sizes = [16, 16, 4], strides = [1, 1, 1]} : vector<18x18x4xf32> to vector<16x16x4xf32>
    %30 = vector.extract_strided_slice %26 {offsets = [1, 0, 0], sizes = [16, 16, 4], strides = [1, 1, 1]} : vector<18x18x4xf32> to vector<16x16x4xf32>
    %31 = vector.extract_strided_slice %26 {offsets = [1, 1, 0], sizes = [16, 16, 4], strides = [1, 1, 1]} : vector<18x18x4xf32> to vector<16x16x4xf32>
    %32 = vector.extract_strided_slice %26 {offsets = [1, 2, 0], sizes = [16, 16, 4], strides = [1, 1, 1]} : vector<18x18x4xf32> to vector<16x16x4xf32>
    %33 = vector.extract_strided_slice %26 {offsets = [2, 0, 0], sizes = [16, 16, 4], strides = [1, 1, 1]} : vector<18x18x4xf32> to vector<16x16x4xf32>
    %34 = vector.extract_strided_slice %26 {offsets = [2, 1, 0], sizes = [16, 16, 4], strides = [1, 1, 1]} : vector<18x18x4xf32> to vector<16x16x4xf32>
    %35 = vector.extract_strided_slice %26 {offsets = [2, 2, 0], sizes = [16, 16, 4], strides = [1, 1, 1]} : vector<18x18x4xf32> to vector<16x16x4xf32>
    %36 = tpu.concatenate %27, %28, %29, %30, %31, %32, %33, %34, %35 in 2 : vector<16x16x4xf32>, vector<16x16x4xf32>, vector<16x16x4xf32>, vector<16x16x4xf32>, vector<16x16x4xf32>, vector<16x16x4xf32>, vector<16x16x4xf32>, vector<16x16x4xf32>, vector<16x16x4xf32> -> vector<16x16x36xf32>
    %37 = vector.shape_cast %36 : vector<16x16x36xf32> to vector<256x36xf32>
    %c0_8 = arith.constant 0 : index
    %c0_9 = arith.constant 0 : index
    %38 = vector.load %arg4[%c0_8, %c0_9] : memref<36x4xf32, #tpu.memory_space<vmem>>, vector<36x4xf32>
    %cst_10 = arith.constant dense<0.000000e+00> : vector<256x4xf32>
    %39 = tpu.matmul %37, %38, %cst_10 {dimension_numbers = #tpu.dot_dimension_numbers<[1], [0], [0], [1], [0, 0, 1, 1], [], []>} : vector<256x36xf32>, vector<36x4xf32>, vector<256x4xf32> -> vector<256x4xf32>
    %c0_11 = arith.constant 0 : index
    %c0_12 = arith.constant 0 : index
    %40 = vector.load %arg5[%c0_11, %c0_12] : memref<1x4xf32, #tpu.memory_space<vmem>>, vector<1x4xf32>
    %41 = vector.broadcast %40 : vector<1x4xf32> to vector<256x4xf32>
    %42 = arith.addf %39, %41 : vector<256x4xf32>
    %cst_13 = arith.constant 0.000000e+00 : f32
    %43 = vector.broadcast %cst_13 : f32 to vector<256x4xf32>
    %44 = arith.maximumf %42, %43 : vector<256x4xf32>
    %45 = vector.extract_strided_slice %1 {offsets = [1, 1, 0], sizes = [16, 16, 4], strides = [1, 1, 1]} : vector<18x18x4xf32> to vector<16x16x4xf32>
    %46 = vector.shape_cast %45 : vector<16x16x4xf32> to vector<256x4xf32>
    %47 = arith.addf %44, %46 : vector<256x4xf32>
    %48 = tpu.transpose %47, [1, 0] : vector<256x4xf32> -> vector<4x256xf32>
    %c0_14 = arith.constant 0 : index
    %c0_15 = arith.constant 0 : index
    %c0_16 = arith.constant 0 : index
    %49 = vector.load %arg6[%c0_14, %c0_15, %c0_16] : memref<1x4x256xf32, #tpu.memory_space<vmem>>, vector<1x4x256xf32>
    %50 = vector.shape_cast %49 : vector<1x4x256xf32> to vector<4x256xf32>
    %51 = vector.shape_cast %48 : vector<4x256xf32> to vector<1x4x256xf32>
    tpu.vector_store %arg6[%c0_14, %c0_15, %c0_16], %51 {strides = array<i32>} : memref<1x4x256xf32, #tpu.memory_space<vmem>>, vector<1x4x256xf32>,
    return
  }
  func.func @transform_0(%arg0: i32) -> (i32, i32, i32, i32) {
    %c0_i32 = arith.constant 0 : i32
    %c0_i32_0 = arith.constant 0 : i32
    %c0_i32_1 = arith.constant 0 : i32
    %c0_i32_2 = arith.constant 0 : i32
    return %arg0, %c0_i32, %c0_i32_0, %c0_i32_1 : i32, i32, i32, i32
  }
  func.func @transform_1(%arg0: i32) -> (i32, i32) {
    %c0_i32 = arith.constant 0 : i32
    %c0_i32_0 = arith.constant 0 : i32
    %c0_i32_1 = arith.constant 0 : i32
    return %c0_i32, %c0_i32_0 : i32, i32
  }
  func.func @transform_2(%arg0: i32) -> (i32, i32) {
    %c0_i32 = arith.constant 0 : i32
    %c0_i32_0 = arith.constant 0 : i32
    %c0_i32_1 = arith.constant 0 : i32
    return %c0_i32, %c0_i32_0 : i32, i32
  }
  func.func @transform_3(%arg0: i32) -> (i32, i32) {
    %c0_i32 = arith.constant 0 : i32
    %c0_i32_0 = arith.constant 0 : i32
    %c0_i32_1 = arith.constant 0 : i32
    return %c0_i32, %c0_i32_0 : i32, i32
  }
  func.func @transform_4(%arg0: i32) -> (i32, i32) {
    %c0_i32 = arith.constant 0 : i32
    %c0_i32_0 = arith.constant 0 : i32
    %c0_i32_1 = arith.constant 0 : i32
    return %c0_i32, %c0_i32_0 : i32, i32
  }
  func.func @transform_5(%arg0: i32) -> (i32, i32, i32) {
    %c0_i32 = arith.constant 0 : i32
    %c0_i32_0 = arith.constant 0 : i32
    %c0_i32_1 = arith.constant 0 : i32
    return %arg0, %c0_i32, %c0_i32_0 : i32, i32, i32
  }
}

</mosaic_0001>

<bundles_post_ra>
// kernel: tpu_custom_call.1
= control target key start
LH: loop header
LB: loop body
LE: loop exit
PB: predicated region body
PF: predicated region fallthrough
CT: control target
= control target key end

     0   :  { %10 = vsyncpa [#allocation3], 0  ;;  %s7865_s0 = inlined_call_operand.vmem [shape: f32[2,18,18,4], index: 0, kind: input, shape index: {}]   ;;  %s7866_s1 = inlined_call_operand.vmem [shape: f32[36,4], index: 1, kind: input, shape index: {}]   ;;  %s7867_s2 = inlined_call_operand.vmem [shape: f32[1,4], index: 2, kind: input, shape index: {}]   ;;  %s7868_s3 = inlined_call_operand.vmem [shape: f32[36,4], index: 3, kind: input, shape index: {}]   ;;  %s7869_s4 = inlined_call_operand.vmem [shape: f32[1,4], index: 4, kind: input, shape index: {}]   ;;  %s7870_s5 = inlined_call_operand.hbm [shape: f32[2,4,256], index: 5, kind: output, shape index: {}]  }
   0x1   :  { %12 = vsyncpa [#allocation3 + $0x1], 0  ;;  %s3848_s18 = smov 0   ;;  %s3850_s19 = smov 0  }
   0x2   :  { %s3852_s20 = smov 0   ;;  %s3854_s21 = smov 0  }
   0x3 LB: > { %s3869_s22 = sadd.s32 4294967295, %s3808_s21   ;;  %s3576_s23 = sadd.s32 4294967294, %s3808_s21   ;;  %s3808_s21 = sphi %s3854_s21, %s9018_s21   ;;  %s3804_s20 = sphi %s3852_s20, %s9017_s20   ;;  %s3800_s19 = sphi %s3850_s19, %s9016_s19   ;;  %s3796_s18 = sphi %s3848_s18, %s9015_s18  }
   0x4   : > { %s3873_s24 = sadd.s32 1, %s3808_s21   ;;  %s135_s25 = sadd.s32 1, %s3804_s20 }
   0x5   : > { %s132_s26 = ssub.s32 %s3808_s21, %s3873_s24  ;;  %p145_p0 = scmp.ne.s32.totalorder %s3804_s20, %s3800_s19 }
   0x6   : > { %p133_p1 = scmp.eq.s32.totalorder %s132_s26, 0  ;;  %p146_p2 = scmp.eq.s32.totalorder %s3869_s22, 1 }
   0x7   : > { %p151_p3 = scmp.ne.s32.totalorder %s3800_s19, %s3796_s18  ;;  %p152_p4 = scmp.eq.s32.totalorder %s3576_s23, 1 }
   0x8   : > { %s3884_s27 = scalar_select %p133_p1, %s3804_s20, %s135_s25  }
   0x9   : > { %p3886_p5 = por %p146_p2, %p145_p0  ;;  %p3890_p6 = por %p152_p4, %p151_p3 }
   0xa   : > { %p3579_p7 = scmp.ge.s32.totalorder %s3808_s21, 1  ;;  %p190_p8 = scmp.lt.s32.totalorder %s3808_s21, 3 }
   0xc   : > { %p191_p9 = pnand %p3579_p7, %p190_p8 }
   0xe   : > { %194 = sbr.rel (%p191_p9) target bundleno = 2021 (0x7e5), region = 40 }
  0x13   : > { %p218_p10 = scmp.lt.s32.totalorder %s3869_s22, 1  ;;  %vm325_vm0 = vcmask 1046528   ;;  %s3810_s10 = smov 4   ;;  %vm502_vm1 = vcmask 1045504   ;;  %vm1651_vm2 = vcmask 1043456   ;;  %vm1281_vm3 = vcmask 31744  }
  0x14   : > { %s3811_s11 = smov 8   ;;  %s3812_s12 = smov 12   ;;  %vm1314_vm4 = vcmask 64512   ;;  %vm1347_vm5 = vcmask 97280   ;;  %vm1413_vm6 = vcmask 162816   ;;  %vm1380_vm7 = vcmask 130048  }
  0x15   : > { %s219_s30 = scalar_select %p218_p10, %s3869_s22, 1  ;;  %vm1446_vm8 = vcmask 195584   ;;  %vm1512_vm9 = vcmask 261120   ;;  %vm1479_vm10 = vcmask 228352   ;;  %vm1554_vm11 = vcmask 293888  }
  0x16   : > { %s3813_s13 = smov 16   ;;  %s3814_s14 = smov 20   ;;  %vm1864_vm12 = vcmask 1040384  }
  0x17   : > { %s3664_s6 = smul.u32 432, %s219_s30  ;;  %s3815_s15 = smov 24  }
  0x18   : > { %s3816_s16 = smov 28   ;;  %s3817_s17 = smov 32  }
  0x19   : > { %s3901_s9 = scalar_lea.vmem %s7865_s0, %s3664_s6  ;;  %s3653_s30 = sshll.u32 %s3869_s22, 3 }
  0x1a   : > { %v3904_v0 = vld [vmem:[%s3901_s9 + $0x30] sm:$0xff]  ;;  %v3907_v1 = vld [vmem:[%s3901_s9 + $0x38] sm:$0xff]  ;;  %v3915_v5 = vld [vmem:[%s3901_s9 + $0x20] sm:$0xff]  ;;  %s3766_s25 = scalar_lea.hbm %s7870_s5, 16 }
  0x1b   : > { %v3910_v2 = vld [vmem:[%s3901_s9 + $0x18] sm:$0xff]  ;;  %v336_v3 = vrot.slane %v3904_v0, 1  ;;  %v337_v4 = vrot.slane %v3907_v1, 1  ;;  %v3919_v7 = vld [vmem:[%s3901_s9] sm:$0xff]  ;;  %v3922_v8 = vld [vmem:[%s3901_s9 + $0x8] sm:$0xff]  ;;  %v332_v9 = vrot.slane %v3915_v5, 1 }
  0x1c   : > { %v331_v6 = vrot.slane %v3910_v2, 1  ;;  %v326_v10 = vrot.slane %v3919_v7, 1  ;;  %v327_v11 = vrot.slane %v3922_v8, 1  ;;  %v3928_v12 = vld [vmem:[%s3901_s9 + $0x40] sm:$0x3]  ;;  %v3962_v25 = vld [vmem:[%s3901_s9 + $0x68] sm:$0xff] }
  0x1d   : > { %v3931_v13 = vsel %vm325_vm0, %v336_v3, %v337_v4  ;;  %v3934_v14 = vld [vmem:[%s3901_s9 + $0x28] sm:$0x3]  ;;  %v3937_v15 = vld [vmem:[%s3901_s9 + $0x10] sm:$0x3]  ;;  %v339_v18 = vrot.slane %v3928_v12, 1  ;;  %v3959_v24 = vld [vmem:[%s3901_s9 + $0x60] sm:$0xff] }
  0x1e   : > { %8120 = vst [vmem:[#allocation5_spill] sm:$0xff] %v3931_v13  ;;  %414 = vrot.lane.b32.xlu2 %v3931_v13, %s3810_s10  ;;  %v3942_v16 = vsel %vm325_vm0, %v331_v6, %v332_v9  ;;  %v328_v17 = vsel %vm325_vm0, %v326_v10, %v327_v11  ;;  %v334_v19 = vrot.slane %v3934_v14, 1  ;;  %v329_v20 = vrot.slane %v3937_v15, 1  ;;  %v3965_v26 = vld [vmem:[%s3901_s9 + $0x50] sm:$0xff]  ;;  %v3968_v27 = vld [vmem:[%s3901_s9 + $0x58] sm:$0x3] }
  0x1f   : > { %8121 = vst [vmem:[#allocation6_spill] sm:$0xff] %v3942_v16  ;;  %410 = vrot.lane.b32.xlu1 %v3942_v16, %s3810_s10  ;;  %406 = vrot.lane.b32.xlu0 %v328_v17, %s3810_s10  ;;  %v3952_v21 = vsel %vm325_vm0, %v337_v4, %v339_v18  ;;  %v3971_v28 = vld [vmem:[%s3901_s9 + $0x48] sm:$0xff]  ;;  %v346_v29 = vrot.slane %v3959_v24, 1  ;;  %v347_v30 = vrot.slane %v3962_v25, 1  ;;  %v342_v31 = vrot.slane %v3965_v26, 1  ;;  %v3993_v37 = vld [vmem:[%s3901_s9 + $0x80] sm:$0xff] }
  0x20   : > { %8122 = vst [vmem:[#allocation7_spill] sm:$0xff] %v3952_v21  ;;  %v3955_v22 = vsel %vm325_vm0, %v332_v9, %v334_v19  ;;  %v330_v23 = vsel %vm325_vm0, %v327_v11, %v329_v20  ;;  %v344_v32 = vrot.slane %v3968_v27, 1  ;;  %v341_v33 = vrot.slane %v3971_v28, 1  ;;  %v3996_v38 = vld [vmem:[%s3901_s9 + $0x88] sm:$0x3]  ;;  %v3999_v39 = vld [vmem:[%s3901_s9 + $0x78] sm:$0xff] }
  0x21   : > { %8123 = vst [vmem:[#allocation8_spill] sm:$0xff] %v3955_v22  ;;  %v3984_v34 = vsel %vm325_vm0, %v346_v29, %v347_v30  ;;  %v4002_v40 = vld [vmem:[%s3901_s9 + $0x70] sm:$0x3]  ;;  %v352_v41 = vrot.slane %v3993_v37, 1  ;;  %v354_v42 = vrot.slane %v3996_v38, 1  ;;  %v351_v43 = vrot.slane %v3999_v39, 1 }
  0x22   : > { %8124 = vst [vmem:[#allocation9_spill] sm:$0xff] %v3984_v34  ;;  %v3987_v35 = vsel %vm325_vm0, %v342_v31, %v344_v32  ;;  %v3990_v36 = vsel %vm325_vm0, %v341_v33, %v342_v31  ;;  %v349_v44 = vrot.slane %v4002_v40, 1  ;;  %v4024_v48 = vld [vmem:[%s3901_s9 + $0xa8] sm:$0xff]  ;;  %v4027_v49 = vld [vmem:[%s3901_s9 + $0xb0] sm:$0xff]  ;;  %v4030_v50 = vld [vmem:[%s3901_s9 + $0x98] sm:$0xff] }
  0x23   : > { %8125 = vst [vmem:[#allocation10_spill] sm:$0xff] %v3987_v35  ;;  %v4015_v45 = vsel %vm325_vm0, %v352_v41, %v354_v42  ;;  %v4018_v46 = vsel %vm325_vm0, %v351_v43, %v352_v41  ;;  %v4033_v51 = vld [vmem:[%s3901_s9 + $0xa0] sm:$0x3]  ;;  %v4036_v52 = vld [vmem:[%s3901_s9 + $0x90] sm:$0xff]  ;;  %v361_v53 = vrot.slane %v4024_v48, 1  ;;  %v362_v54 = vrot.slane %v4027_v49, 1 }
  0x24   : > { %8126 = vst [vmem:[#allocation11_spill] sm:$0xff] %v3990_v36  ;;  %v4021_v47 = vsel %vm325_vm0, %v347_v30, %v349_v44  ;;  %v357_v55 = vrot.slane %v4030_v50, 1  ;;  %v359_v56 = vrot.slane %v4033_v51, 1  ;;  %v356_v57 = vrot.slane %v4036_v52, 1  ;;  %v4059_v61 = vld [vmem:[%s3901_s9 + $0xc8] sm:$0xff]  ;;  %v4065_v63 = vld [vmem:[%s3901_s9 + $0xc0] sm:$0xff] }
  0x25   : > { %8127 = vst [vmem:[#allocation12_spill] sm:$0xff] %v4015_v45  ;;  %v4050_v58 = vsel %vm325_vm0, %v361_v53, %v362_v54  ;;  %v4062_v62 = vld [vmem:[%s3901_s9 + $0xd0] sm:$0x3]  ;;  %v4068_v3 = vld [vmem:[%s3901_s9 + $0xb8] sm:$0x3]  ;;  %v367_v4 = vrot.slane %v4059_v61, 1 }
  0x26   : > { %416 = vrot.lane.b32.xlu2 %v3952_v21, %s3810_s10  ;;  %8128 = vst [vmem:[#allocation13_spill] sm:$0xff] %v4018_v46  ;;  %v4053_v59 = vsel %vm325_vm0, %v357_v55, %v359_v56  ;;  %v4056_v60 = vsel %vm325_vm0, %v356_v57, %v357_v55  ;;  %v369_v6 = vrot.slane %v4062_v62, 1  ;;  %v366_v9 = vrot.slane %v4065_v63, 1  ;;  %v4090_v19 = vld [vmem:[%s3901_s9 + $0xf0] sm:$0xff]  ;;  %v4093_v20 = vld [vmem:[%s3901_s9 + $0xf8] sm:$0xff]  ;;  %v4131_v56 = vld [vmem:[%s3901_s9 + $0x108] sm:$0xff] }
  0x27   : > { %412 = vrot.lane.b32.xlu1 %v3955_v22, %s3810_s10  ;;  %408 = vrot.lane.b32.xlu0 %v330_v23, %s3810_s10  ;;  %8129 = vst [vmem:[#allocation14_spill] sm:$0xff] %v4021_v47  ;;  %v364_v10 = vrot.slane %v4068_v3, 1  ;;  %v4096_v23 = vld [vmem:[%s3901_s9 + $0xe0] sm:$0xff]  ;;  %v4099_v29 = vld [vmem:[%s3901_s9 + $0xe8] sm:$0x3]  ;;  %v376_v31 = vrot.slane %v4090_v19, 1 }
  0x28   : > { %8130 = vst [vmem:[#allocation15_spill] sm:$0xff] %v4050_v58  ;;  %v4081_v11 = vsel %vm325_vm0, %v367_v4, %v369_v6  ;;  %v4084_v17 = vsel %vm325_vm0, %v366_v9, %v367_v4  ;;  %v4102_v30 = vld [vmem:[%s3901_s9 + $0xd8] sm:$0xff]  ;;  %v377_v32 = vrot.slane %v4093_v20, 1  ;;  %v372_v33 = vrot.slane %v4096_v23, 1  ;;  %v4134_v57 = vld [vmem:[%s3901_s9 + $0x100] sm:$0x3] }
  0x29   : > { %8131 = vst [vmem:[#allocation16_spill] sm:$0xff] %v4053_v59  ;;  %v4087_v18 = vsel %vm325_vm0, %v362_v54, %v364_v10  ;;  %v374_v41 = vrot.slane %v4099_v29, 1  ;;  %v371_v42 = vrot.slane %v4102_v30, 1  ;;  %v4125_v54 = vld [vmem:[%s3901_s9 + $0x110] sm:$0xff]  ;;  %v4128_v55 = vld [vmem:[%s3901_s9 + $0x118] sm:$0x3] }
  0x2a   : > { %8132 = vst [vmem:[#allocation17_spill] sm:$0xff] %v4056_v60  ;;  %v4116_v43 = vsel %vm325_vm0, %v376_v31, %v377_v32  ;;  %v382_v4 = vrot.slane %v4125_v54, 1  ;;  %v384_v6 = vrot.slane %v4128_v55, 1  ;;  %v381_v9 = vrot.slane %v4131_v56, 1 }
  0x2b   : > { %8133 = vst [vmem:[#allocation18_spill] sm:$0xff] %v4081_v11  ;;  %v4119_v44 = vsel %vm325_vm0, %v372_v33, %v374_v41  ;;  %v4122_v53 = vsel %vm325_vm0, %v371_v42, %v372_v33  ;;  %v379_v10 = vrot.slane %v4134_v57, 1  ;;  %v4156_v42 = vld [vmem:[%s3901_s9 + $0x138] sm:$0xff] }
  0x2c   : > { %8134 = vst [vmem:[#allocation19_spill] sm:$0xff] %v4084_v17  ;;  %v4147_v31 = vsel %vm325_vm0, %v382_v4, %v384_v6  ;;  %v4150_v33 = vsel %vm325_vm0, %v381_v9, %v382_v4  ;;  %v4168_v6 = vld [vmem:[%s3901_s9 + $0x120] sm:$0xff] }
  0x2d   : > { %8135 = vst [vmem:[#allocation20_spill] sm:$0xff] %v4087_v18  ;;  %v4153_v41 = vsel %vm325_vm0, %v377_v32, %v379_v10  ;;  %v391_v32 = vrot.slane %v4156_v42, 1 }
  0x2e   : > { %422 = vrot.lane.b32.xlu2 %v3984_v34, %s3810_s10  ;;  %8136 = vst [vmem:[#allocation21_spill] sm:$0xff] %v4116_v43  ;;  %v4228_v34 = vld [vmem:[%s3901_s9 + $0x168] sm:$0xff] }
  0x2f   : > { %420 = vrot.lane.b32.xlu1 %v3987_v35, %s3810_s10  ;;  %418 = vrot.lane.b32.xlu0 %v3990_v36, %s3810_s10  ;;  %8137 = vst [vmem:[#allocation22_spill] sm:$0xff] %v4119_v44 }
  0x30   : > { %8138 = vst [vmem:[#allocation23_spill] sm:$0xff] %v4122_v53 }
  0x31   : > { %8139 = vst [vmem:[#allocation24_spill] sm:$0xff] %v4147_v31 }
  0x32   : > { %8140 = vst [vmem:[#allocation25_spill] sm:$0xff] %v4150_v33 }
  0x33   : > { %8141 = vst [vmem:[#allocation26_spill] sm:$0xff] %v4153_v41 }
  0x36   : > { %428 = vrot.lane.b32.xlu2 %v4015_v45, %s3810_s10  ;;  %v4200_v45 = vld [vmem:[%s3901_s9 + $0x148] sm:$0x3] }
  0x37   : > { %426 = vrot.lane.b32.xlu1 %v4018_v46, %s3810_s10  ;;  %424 = vrot.lane.b32.xlu0 %v4021_v47, %s3810_s10 }
  0x3e   : > { %434 = vrot.lane.b32.xlu2 %v4050_v58, %s3810_s10 }
  0x3f   : > { %432 = vrot.lane.b32.xlu1 %v4053_v59, %s3810_s10  ;;  %430 = vrot.lane.b32.xlu0 %v4056_v60, %s3810_s10 }
  0x46   : > { %440 = vrot.lane.b32.xlu2 %v4081_v11, %s3810_s10  ;;  %v4162_v11 = vld [vmem:[%s3901_s9 + $0x128] sm:$0xff] }
  0x47   : > { %438 = vrot.lane.b32.xlu1 %v4084_v17, %s3810_s10  ;;  %436 = vrot.lane.b32.xlu0 %v4087_v18, %s3810_s10  ;;  %v387_v9 = vrot.slane %v4162_v11, 1  ;;  %v4194_v18 = vld [vmem:[%s3901_s9 + $0x160] sm:$0x3]  ;;  %v4197_v17 = vld [vmem:[%s3901_s9 + $0x150] sm:$0xff] }
  0x4e   : > { %446 = vrot.lane.b32.xlu2 %v4116_v43, %s3810_s10  ;;  %v4159_v43 = vld [vmem:[%s3901_s9 + $0x140] sm:$0xff] }
  0x4f   : > { %444 = vrot.lane.b32.xlu1 %v4119_v44, %s3810_s10  ;;  %442 = vrot.lane.b32.xlu0 %v4122_v53, %s3810_s10  ;;  %v4165_v53 = vld [vmem:[%s3901_s9 + $0x130] sm:$0x3]  ;;  %v392_v4 = vrot.slane %v4159_v43, 1  ;;  %v386_v44 = vrot.slane %v4168_v6, 1 }
  0x50   : > { %v389_v10 = vrot.slane %v4165_v53, 1 }
  0x51   : > { %v4182_v58 = vsel %vm325_vm0, %v391_v32, %v392_v4  ;;  %v399_v32 = vrot.slane %v4194_v18, 1 }
  0x52   : > { %8142 = vst [vmem:[#allocation27_spill] sm:$0xff] %v4182_v58 }
  0x56   : > { %452 = vrot.lane.b32.xlu2 %v4147_v31, %s3810_s10  ;;  %v4185_v31 = vsel %vm325_vm0, %v387_v9, %v389_v10  ;;  %v394_v10 = vrot.slane %v4200_v45, 1 }
  0x57   : > { %450 = vrot.lane.b32.xlu1 %v4150_v33, %s3810_s10  ;;  %448 = vrot.lane.b32.xlu0 %v4153_v41, %s3810_s10  ;;  %8143 = vst [vmem:[#allocation28_spill] sm:$0xff] %v4185_v31  ;;  %v4188_v33 = vsel %vm325_vm0, %v386_v44, %v387_v9  ;;  %v4191_v41 = vld [vmem:[%s3901_s9 + $0x158] sm:$0xff]  ;;  %v396_v9 = vrot.slane %v4197_v17, 1 }
  0x58   : > { %8144 = vst [vmem:[#allocation29_spill] sm:$0xff] %v4188_v33  ;;  %v397_v44 = vrot.slane %v4191_v41, 1 }
  0x5a   : > { %v4213_v60 = vsel %vm325_vm0, %v397_v44, %v399_v32  ;;  %v4216_v59 = vsel %vm325_vm0, %v396_v9, %v397_v44  ;;  %v503_v44 = vrot.slane %v3919_v7, 2  ;;  %v509_v7 = vrot.slane %v3915_v5, 2 }
  0x5b   : > { %8145 = vst [vmem:[#allocation30_spill] sm:$0xff] %v4213_v60 }
  0x5c   : > { %8146 = vst [vmem:[#allocation31_spill] sm:$0xff] %v4216_v59 }
  0x5e   : > { %458 = vrot.lane.b32.xlu2 %v4182_v58, %s3810_s10  ;;  %v4219_v58 = vsel %vm325_vm0, %v392_v4, %v394_v10  ;;  %v504_v4 = vrot.slane %v3922_v8, 2  ;;  %v401_v10 = vrot.slane %v4228_v34, 1  ;;  %v511_v8 = vrot.slane %v3934_v14, 2 }
  0x5f   : > { %456 = vrot.lane.b32.xlu1 %v4185_v31, %s3810_s10  ;;  %454 = vrot.lane.b32.xlu0 %v4188_v33, %s3810_s10  ;;  %8147 = vst [vmem:[#allocation32_spill] sm:$0xff] %v4219_v58  ;;  %v4222_v31 = vld [vmem:[%s3901_s9 + $0x170] sm:$0xff]  ;;  %v4225_v33 = vld [vmem:[%s3901_s9 + $0x178] sm:$0x3]  ;;  %v518_v14 = vrot.slane %v3971_v28, 2 }
  0x60   : > { %v402_v32 = vrot.slane %v4222_v31, 1  ;;  %v404_v9 = vrot.slane %v4225_v33, 1  ;;  %v505_v47 = vsel %vm502_vm1, %v503_v44, %v504_v4  ;;  %v508_v44 = vrot.slane %v3910_v2, 2 }
  0x66   : > { %464 = vrot.lane.b32.xlu2 %v4213_v60, %s3810_s10  ;;  %v4243_v60 = vsel %vm325_vm0, %v402_v32, %v404_v9  ;;  %v506_v9 = vrot.slane %v3937_v15, 2  ;;  %v519_v15 = vrot.slane %v3965_v26, 2 }
  0x67   : > { %462 = vrot.lane.b32.xlu1 %v4216_v59, %s3810_s10  ;;  %460 = vrot.lane.b32.xlu0 %v4219_v58, %s3810_s10  ;;  %8148 = vst [vmem:[#allocation33_spill] sm:$0xff] %v4243_v60  ;;  %v4246_v59 = vsel %vm325_vm0, %v401_v10, %v402_v32  ;;  %v4258_v32 = vsel %vm502_vm1, %v509_v7, %v511_v8  ;;  %v514_v8 = vrot.slane %v3907_v1, 2 }
  0x68   : > { %8149 = vst [vmem:[#allocation34_spill] sm:$0xff] %v4246_v59  ;;  %v4261_v10 = vsel %vm502_vm1, %v508_v44, %v509_v7  ;;  %v516_v7 = vrot.slane %v3928_v12, 2  ;;  %v4277_v44 = vsel %vm502_vm1, %v518_v14, %v519_v15  ;;  %v524_v12 = vrot.slane %v3962_v25, 2 }
  0x69   : > { %8150 = vst [vmem:[#allocation35_spill] sm:$0xff] %v4258_v32  ;;  %v526_v14 = vrot.slane %v4002_v40, 2  ;;  %v534_v40 = vrot.slane %v4030_v50, 2 }
  0x6a   : > { %8152 = vst [vmem:[#allocation37_spill] sm:$0xff] %v4277_v44 }
  0x6e   : > { %583 = vrot.lane.b32.xlu2 %v505_v47, %s3811_s11  ;;  %v507_v47 = vsel %vm502_vm1, %v504_v4, %v506_v9  ;;  %v513_v4 = vrot.slane %v3904_v0, 2  ;;  %v4280_v9 = vsel %vm502_vm1, %v514_v8, %v516_v7  ;;  %v523_v7 = vrot.slane %v3959_v24, 2 }
  0x6f   : > { %468 = vrot.lane.b32.xlu1 %v4243_v60, %s3810_s10  ;;  %466 = vrot.lane.b32.xlu0 %v4246_v59, %s3810_s10  ;;  %8153 = vst [vmem:[#allocation38_spill] sm:$0xff] %v4280_v9 }
  0x76   : > { %589 = vrot.lane.b32.xlu2 %v4258_v32, %s3811_s11 }
  0x77   : > { %587 = vrot.lane.b32.xlu1 %v4261_v10, %s3811_s11  ;;  %585 = vrot.lane.b32.xlu0 %v507_v47, %s3811_s11  ;;  %v4283_v47 = vsel %vm502_vm1, %v513_v4, %v514_v8  ;;  %v521_v8 = vrot.slane %v3968_v27, 2  ;;  %v4298_v4 = vsel %vm502_vm1, %v524_v12, %v526_v14  ;;  %v533_v27 = vrot.slane %v4036_v52, 2 }
  0x78   : > { %v4271_v59 = vpop.permute.xlu2 %414  ;;  %8155 = vst [vmem:[#allocation40_spill] sm:$0xff] %v4298_v4 }
  0x79   : > { %8151 = vst [vmem:[#allocation36_spill] sm:$0xff] %v4271_v59  ;;  %v4304_v32 = vsel %vm502_vm1, %v519_v15, %v521_v8  ;;  %v531_v15 = vrot.slane %v3996_v38, 2  ;;  %v4320_v8 = vsel %vm502_vm1, %v533_v27, %v534_v40  ;;  %v539_v38 = vrot.slane %v4027_v49, 2 }
  0x7a   : > { %8157 = vst [vmem:[#allocation42_spill] sm:$0xff] %v4304_v32  ;;  %v541_v27 = vrot.slane %v4068_v3, 2  ;;  %v549_v3 = vrot.slane %v4096_v23, 2 }
  0x7b   : > { %8159 = vst [vmem:[#allocation44_spill] sm:$0xff] %v4320_v8 }
  0x7e   : > { %595 = vrot.lane.b32.xlu2 %v4277_v44, %s3811_s11  ;;  %v4301_v44 = vsel %vm502_vm1, %v523_v7, %v524_v12  ;;  %v529_v12 = vrot.slane %v3993_v37, 2  ;;  %v528_v7 = vrot.slane %v3999_v39, 2 }
  0x7f   : > { %593 = vrot.lane.b32.xlu1 %v4280_v9, %s3811_s11  ;;  %591 = vrot.lane.b32.xlu0 %v4283_v47, %s3811_s11  ;;  %8156 = vst [vmem:[#allocation41_spill] sm:$0xff] %v4301_v44 }
  0x80   : > { %v4293_v59 = vpop.permute.xlu2 %416 }
  0x81   : > { %8154 = vst [vmem:[#allocation39_spill] sm:$0xff] %v4293_v59  ;;  %v4323_v59 = vsel %vm502_vm1, %v529_v12, %v531_v15  ;;  %v538_v15 = vrot.slane %v4024_v48, 2 }
  0x82   : > { %8160 = vst [vmem:[#allocation45_spill] sm:$0xff] %v4323_v59 }
  0x86   : > { %601 = vrot.lane.b32.xlu2 %v4298_v4, %s3811_s11  ;;  %v4326_v4 = vsel %vm502_vm1, %v528_v7, %v529_v12  ;;  %v536_v12 = vrot.slane %v4033_v51, 2  ;;  %v548_v51 = vrot.slane %v4102_v30, 2 }
  0x87   : > { %599 = vrot.lane.b32.xlu1 %v4301_v44, %s3811_s11  ;;  %597 = vrot.lane.b32.xlu0 %v4304_v32, %s3811_s11  ;;  %8161 = vst [vmem:[#allocation46_spill] sm:$0xff] %v4326_v4 }
  0x88   : > { %v4314_v14 = vpop.permute.xlu2 %422 }
  0x89   : > { %8158 = vst [vmem:[#allocation43_spill] sm:$0xff] %v4314_v14 }
  0x8e   : > { %607 = vrot.lane.b32.xlu2 %v4320_v8, %s3811_s11  ;;  %v4345_v8 = vsel %vm502_vm1, %v539_v38, %v541_v27 }
  0x8f   : > { %605 = vrot.lane.b32.xlu1 %v4323_v59, %s3811_s11  ;;  %603 = vrot.lane.b32.xlu0 %v4326_v4, %s3811_s11  ;;  %8165 = vst [vmem:[#allocation50_spill] sm:$0xff] %v4345_v8  ;;  %v4348_v59 = vsel %vm502_vm1, %v538_v15, %v539_v38  ;;  %v4351_v4 = vsel %vm502_vm1, %v534_v40, %v536_v12  ;;  %v544_v38 = vrot.slane %v4059_v61, 2  ;;  %v546_v40 = vrot.slane %v4062_v62, 2 }
  0x90   : > { %v4336_v14 = vpop.permute.xlu2 %428  ;;  %8166 = vst [vmem:[#allocation51_spill] sm:$0xff] %v4348_v59  ;;  %v543_v15 = vrot.slane %v4065_v63, 2  ;;  %v554_v62 = vrot.slane %v4093_v20, 2 }
  0x91   : > { %8162 = vst [vmem:[#allocation47_spill] sm:$0xff] %v4336_v14  ;;  %v4340_v7 = vpop.permute.xlu1 %410  ;;  %v4342_v32 = vpop.permute.xlu0 %406 }
  0x92   : > { %8163 = vst [vmem:[#allocation48_spill] sm:$0xff] %v4340_v7  ;;  %v4371_v7 = vsel %vm502_vm1, %v548_v51, %v549_v3  ;;  %v556_v51 = vrot.slane %v4134_v57, 2  ;;  %v564_v57 = vrot.slane %v4162_v11, 2 }
  0x93   : > { %8164 = vst [vmem:[#allocation49_spill] sm:$0xff] %v4342_v32  ;;  %v4374_v32 = vsel %vm502_vm1, %v544_v38, %v546_v40  ;;  %v553_v40 = vrot.slane %v4090_v19, 2 }
  0x94   : > { %8170 = vst [vmem:[#allocation55_spill] sm:$0xff] %v4371_v7 }
  0x95   : > { %8171 = vst [vmem:[#allocation56_spill] sm:$0xff] %v4374_v32 }
  0x96   : > { %613 = vrot.lane.b32.xlu2 %v4345_v8, %s3811_s11  ;;  %v4377_v8 = vsel %vm502_vm1, %v543_v15, %v544_v38  ;;  %v551_v38 = vrot.slane %v4099_v29, 2  ;;  %v563_v29 = vrot.slane %v4168_v6, 2 }
  0x97   : > { %611 = vrot.lane.b32.xlu1 %v4348_v59, %s3811_s11  ;;  %609 = vrot.lane.b32.xlu0 %v4351_v4, %s3811_s11  ;;  %8172 = vst [vmem:[#allocation57_spill] sm:$0xff] %v4377_v8 }
  0x98   : > { %v4361_v27 = vpop.permute.xlu2 %434 }
  0x99   : > { %8167 = vst [vmem:[#allocation52_spill] sm:$0xff] %v4361_v27  ;;  %v4366_v12 = vpop.permute.xlu1 %412  ;;  %v4368_v14 = vpop.permute.xlu0 %408 }
  0x9a   : > { %8168 = vst [vmem:[#allocation53_spill] sm:$0xff] %v4366_v12 }
  0x9b   : > { %8169 = vst [vmem:[#allocation54_spill] sm:$0xff] %v4368_v14  ;;  %v4396_v14 = vsel %vm502_vm1, %v554_v62, %v556_v51 }
  0x9c   : > { %8176 = vst [vmem:[#allocation61_spill] sm:$0xff] %v4396_v14 }
  0x9e   : > { %619 = vrot.lane.b32.xlu2 %v4371_v7, %s3811_s11  ;;  %v4399_v7 = vsel %vm502_vm1, %v553_v40, %v554_v62  ;;  %v559_v62 = vrot.slane %v4125_v54, 2  ;;  %v558_v40 = vrot.slane %v4131_v56, 2 }
  0x9f   : > { %617 = vrot.lane.b32.xlu1 %v4374_v32, %s3811_s11  ;;  %615 = vrot.lane.b32.xlu0 %v4377_v8, %s3811_s11  ;;  %8177 = vst [vmem:[#allocation62_spill] sm:$0xff] %v4399_v7  ;;  %v4402_v8 = vsel %vm502_vm1, %v549_v3, %v551_v38  ;;  %v561_v3 = vrot.slane %v4128_v55, 2  ;;  %v569_v55 = vrot.slane %v4159_v43, 2 }
  0xa0   : > { %v4387_v27 = vpop.permute.xlu2 %440 }
  0xa1   : > { %8173 = vst [vmem:[#allocation58_spill] sm:$0xff] %v4387_v27  ;;  %v4391_v15 = vpop.permute.xlu1 %420  ;;  %v4393_v12 = vpop.permute.xlu0 %418  ;;  %v4422_v27 = vsel %vm502_vm1, %v563_v29, %v564_v57  ;;  %v571_v29 = vrot.slane %v4200_v45, 2  ;;  %v578_v45 = vrot.slane %v4228_v34, 2 }
  0xa2   : > { %8174 = vst [vmem:[#allocation59_spill] sm:$0xff] %v4391_v15 }
  0xa3   : > { %8175 = vst [vmem:[#allocation60_spill] sm:$0xff] %v4393_v12  ;;  %v4425_v12 = vsel %vm502_vm1, %v559_v62, %v561_v3  ;;  %v568_v3 = vrot.slane %v4156_v42, 2 }
  0xa4   : > { %8181 = vst [vmem:[#allocation66_spill] sm:$0xff] %v4422_v27 }
  0xa5   : > { %8182 = vst [vmem:[#allocation67_spill] sm:$0xff] %v4425_v12 }
  0xa6   : > { %625 = vrot.lane.b32.xlu2 %v4396_v14, %s3811_s11  ;;  %v4428_v14 = vsel %vm502_vm1, %v558_v40, %v559_v62  ;;  %v566_v62 = vrot.slane %v4165_v53, 2  ;;  %v579_v53 = vrot.slane %v4222_v31, 2 }
  0xa7   : > { %623 = vrot.lane.b32.xlu1 %v4399_v7, %s3811_s11  ;;  %621 = vrot.lane.b32.xlu0 %v4402_v8, %s3811_s11  ;;  %8183 = vst [vmem:[#allocation68_spill] sm:$0xff] %v4428_v14 }
  0xa8   : > { %v4412_v51 = vpop.permute.xlu2 %446 }
  0xa9   : > { %8178 = vst [vmem:[#allocation63_spill] sm:$0xff] %v4412_v51  ;;  %v4417_v38 = vpop.permute.xlu1 %426  ;;  %v4419_v15 = vpop.permute.xlu0 %424 }
  0xaa   : > { %8179 = vst [vmem:[#allocation64_spill] sm:$0xff] %v4417_v38 }
  0xab   : > { %8180 = vst [vmem:[#allocation65_spill] sm:$0xff] %v4419_v15  ;;  %v4447_v15 = vsel %vm502_vm1, %v569_v55, %v571_v29 }
  0xac   : > { %8187 = vst [vmem:[#allocation72_spill] sm:$0xff] %v4447_v15 }
  0xae   : > { %631 = vrot.lane.b32.xlu2 %v4422_v27, %s3811_s11  ;;  %v4450_v27 = vsel %vm502_vm1, %v568_v3, %v569_v55  ;;  %v574_v55 = vrot.slane %v4191_v41, 2  ;;  %v573_v3 = vrot.slane %v4197_v17, 2 }
  0xaf   : > { %629 = vrot.lane.b32.xlu1 %v4425_v12, %s3811_s11  ;;  %627 = vrot.lane.b32.xlu0 %v4428_v14, %s3811_s11  ;;  %8188 = vst [vmem:[#allocation73_spill] sm:$0xff] %v4450_v27  ;;  %v4453_v14 = vsel %vm502_vm1, %v564_v57, %v566_v62  ;;  %v576_v57 = vrot.slane %v4194_v18, 2 }
  0xb0   : > { %v4438_v38 = vpop.permute.xlu2 %452 }
  0xb1   : > { %8184 = vst [vmem:[#allocation69_spill] sm:$0xff] %v4438_v38  ;;  %v4442_v40 = vpop.permute.xlu1 %432  ;;  %v4444_v51 = vpop.permute.xlu0 %430  ;;  %v4473_v38 = vsel %vm502_vm1, %v578_v45, %v579_v53  ;;  %v581_v45 = vrot.slane %v4225_v33, 2 }
  0xb2   : > { %8185 = vst [vmem:[#allocation70_spill] sm:$0xff] %v4442_v40 }
  0xb3   : > { %8186 = vst [vmem:[#allocation71_spill] sm:$0xff] %v4444_v51  ;;  %v4476_v51 = vsel %vm502_vm1, %v574_v55, %v576_v57 }
  0xb4   : > { %8192 = vst [vmem:[#allocation77_spill] sm:$0xff] %v4476_v51 }
  0xb6   : > { %637 = vrot.lane.b32.xlu2 %v4447_v15, %s3811_s11  ;;  %v4479_v15 = vsel %vm502_vm1, %v573_v3, %v574_v55  ;;  %v4495_v55 = vsel %vm502_vm1, %v579_v53, %v581_v45 }
  0xb7   : > { %635 = vrot.lane.b32.xlu1 %v4450_v27, %s3811_s11  ;;  %633 = vrot.lane.b32.xlu0 %v4453_v14, %s3811_s11 }
  0xb8   : > { %v4463_v29 = vpop.permute.xlu2 %458 }
  0xb9   : > { %8189 = vst [vmem:[#allocation74_spill] sm:$0xff] %v4463_v29  ;;  %v4468_v62 = vpop.permute.xlu1 %438  ;;  %v4470_v40 = vpop.permute.xlu0 %436 }
  0xba   : > { %8190 = vst [vmem:[#allocation75_spill] sm:$0xff] %v4468_v62 }
  0xbb   : > { %8191 = vst [vmem:[#allocation76_spill] sm:$0xff] %v4470_v40 }
  0xbe   : > { %643 = vrot.lane.b32.xlu2 %v4473_v38, %s3811_s11 }
  0xbf   : > { %641 = vrot.lane.b32.xlu1 %v4476_v51, %s3811_s11  ;;  %639 = vrot.lane.b32.xlu0 %v4479_v15, %s3811_s11 }
  0xc0   : > { %v4487_v18 = vpop.permute.xlu2 %464 }
  0xc1   : > { %8193 = vst [vmem:[#allocation78_spill] sm:$0xff] %v4487_v18  ;;  %v4490_v29 = vpop.permute.xlu1 %444  ;;  %v4492_v57 = vpop.permute.xlu0 %442 }
  0xc2   : > { %8194 = vst [vmem:[#allocation79_spill] sm:$0xff] %v4490_v29 }
  0xc3   : > { %8195 = vst [vmem:[#allocation80_spill] sm:$0xff] %v4492_v57 }
  0xc6   : > { %683 = vrot.lane.b32.xlu2 %v3915_v5, %s3812_s12 }
  0xc7   : > { %681 = vrot.lane.b32.xlu1 %v3910_v2, %s3812_s12  ;;  %645 = vrot.lane.b32.xlu0 %v4495_v55, %s3811_s11 }
  0xc8   : > { %v4503_v3 = vpop.permute.xlu2 %583 }
  0xc9   : > { %8196 = vst [vmem:[#allocation81_spill] sm:$0xff] %v4503_v3  ;;  %v4505_v33 = vpop.permute.xlu1 %450  ;;  %v4507_v18 = vpop.permute.xlu0 %448 }
  0xca   : > { %8197 = vst [vmem:[#allocation82_spill] sm:$0xff] %v4505_v33 }
  0xcb   : > { %8198 = vst [vmem:[#allocation83_spill] sm:$0xff] %v4507_v18 }
  0xce   : > { %689 = vrot.lane.b32.xlu2 %v3971_v28, %s3812_s12 }
  0xcf   : > { %687 = vrot.lane.b32.xlu1 %v3907_v1, %s3812_s12  ;;  %685 = vrot.lane.b32.xlu0 %v3904_v0, %s3812_s12 }
  0xd0   : > { %v4515_v5 = vpop.permute.xlu2 %589 }
  0xd1   : > { %8199 = vst [vmem:[#allocation84_spill] sm:$0xff] %v4515_v5  ;;  %v4517_v2 = vpop.permute.xlu1 %456  ;;  %v4519_v53 = vpop.permute.xlu0 %454 }
  0xd2   : > { %8200 = vst [vmem:[#allocation85_spill] sm:$0xff] %v4517_v2 }
  0xd3   : > { %8201 = vst [vmem:[#allocation86_spill] sm:$0xff] %v4519_v53 }
  0xd6   : > { %695 = vrot.lane.b32.xlu2 %v3962_v25, %s3812_s12 }
  0xd7   : > { %693 = vrot.lane.b32.xlu1 %v3959_v24, %s3812_s12  ;;  %691 = vrot.lane.b32.xlu0 %v3965_v26, %s3812_s12 }
  0xd8   : > { %v4527_v45 = vpop.permute.xlu2 %595 }
  0xd9   : > { %8202 = vst [vmem:[#allocation87_spill] sm:$0xff] %v4527_v45  ;;  %v4529_v40 = vpop.permute.xlu1 %462  ;;  %v4531_v33 = vpop.permute.xlu0 %460 }
  0xda   : > { %8203 = vst [vmem:[#allocation88_spill] sm:$0xff] %v4529_v40 }
  0xdb   : > { %8204 = vst [vmem:[#allocation89_spill] sm:$0xff] %v4531_v33 }
  0xde   : > { %701 = vrot.lane.b32.xlu2 %v4036_v52, %s3812_s12 }
  0xdf   : > { %699 = vrot.lane.b32.xlu1 %v3993_v37, %s3812_s12  ;;  %697 = vrot.lane.b32.xlu0 %v3999_v39, %s3812_s12 }
  0xe0   : > { %v4539_v2 = vpop.permute.xlu2 %601 }
  0xe1   : > { %8205 = vst [vmem:[#allocation90_spill] sm:$0xff] %v4539_v2  ;;  %v4541_v53 = vpop.permute.xlu1 %468  ;;  %v4543_v18 = vpop.permute.xlu0 %466 }
  0xe2   : > { %8206 = vst [vmem:[#allocation91_spill] sm:$0xff] %v4541_v53 }
  0xe3   : > { %8207 = vst [vmem:[#allocation92_spill] sm:$0xff] %v4543_v18 }
  0xe6   : > { %707 = vrot.lane.b32.xlu2 %v4027_v49, %s3812_s12 }
  0xe7   : > { %705 = vrot.lane.b32.xlu1 %v4024_v48, %s3812_s12  ;;  %703 = vrot.lane.b32.xlu0 %v4030_v50, %s3812_s12 }
  0xe8   : > { %v4551_v40 = vpop.permute.xlu2 %607 }
  0xe9   : > { %8208 = vst [vmem:[#allocation93_spill] sm:$0xff] %v4551_v40  ;;  %v4553_v33 = vpop.permute.xlu1 %587  ;;  %v4555_v29 = vpop.permute.xlu0 %585 }
  0xea   : > { %8209 = vst [vmem:[#allocation94_spill] sm:$0xff] %v4553_v33 }
  0xeb   : > { %8210 = vst [vmem:[#allocation95_spill] sm:$0xff] %v4555_v29 }
  0xee   : > { %713 = vrot.lane.b32.xlu2 %v4102_v30, %s3812_s12 }
  0xef   : > { %711 = vrot.lane.b32.xlu1 %v4059_v61, %s3812_s12  ;;  %709 = vrot.lane.b32.xlu0 %v4065_v63, %s3812_s12 }
  0xf0   : > { %v4563_v53 = vpop.permute.xlu2 %613 }
  0xf1   : > { %8211 = vst [vmem:[#allocation96_spill] sm:$0xff] %v4563_v53  ;;  %v4565_v18 = vpop.permute.xlu1 %593  ;;  %v4567_v2 = vpop.permute.xlu0 %591 }
  0xf2   : > { %8212 = vst [vmem:[#allocation97_spill] sm:$0xff] %v4565_v18 }
  0xf3   : > { %8213 = vst [vmem:[#allocation98_spill] sm:$0xff] %v4567_v2 }
  0xf6   : > { %719 = vrot.lane.b32.xlu2 %v4093_v20, %s3812_s12 }
  0xf7   : > { %717 = vrot.lane.b32.xlu1 %v4090_v19, %s3812_s12  ;;  %715 = vrot.lane.b32.xlu0 %v4096_v23, %s3812_s12 }
  0xf8   : > { %v4575_v40 = vpop.permute.xlu2 %619 }
  0xf9   : > { %8214 = vst [vmem:[#allocation99_spill] sm:$0xff] %v4575_v40  ;;  %v4577_v57 = vpop.permute.xlu1 %599  ;;  %v4579_v45 = vpop.permute.xlu0 %597 }
  0xfa   : > { %8215 = vst [vmem:[#allocation100_spill] sm:$0xff] %v4577_v57 }
  0xfb   : > { %8216 = vst [vmem:[#allocation101_spill] sm:$0xff] %v4579_v45 }
  0xfe   : > { %725 = vrot.lane.b32.xlu2 %v4168_v6, %s3812_s12 }
  0xff   : > { %723 = vrot.lane.b32.xlu1 %v4125_v54, %s3812_s12  ;;  %721 = vrot.lane.b32.xlu0 %v4131_v56, %s3812_s12 }
 0x100   : > { %v4587_v53 = vpop.permute.xlu2 %625 }
 0x101   : > { %8217 = vst [vmem:[#allocation102_spill] sm:$0xff] %v4587_v53  ;;  %v4589_v62 = vpop.permute.xlu1 %605  ;;  %v4591_v40 = vpop.permute.xlu0 %603 }
 0x102   : > { %8218 = vst [vmem:[#allocation103_spill] sm:$0xff] %v4589_v62 }
 0x103   : > { %8219 = vst [vmem:[#allocation104_spill] sm:$0xff] %v4591_v40 }
 0x106   : > { %731 = vrot.lane.b32.xlu2 %v4159_v43, %s3812_s12 }
 0x107   : > { %729 = vrot.lane.b32.xlu1 %v4156_v42, %s3812_s12  ;;  %727 = vrot.lane.b32.xlu0 %v4162_v11, %s3812_s12 }
 0x108   : > { %v4599_v57 = vpop.permute.xlu2 %631 }
 0x109   : > { %8220 = vst [vmem:[#allocation105_spill] sm:$0xff] %v4599_v57  ;;  %v4601_v45 = vpop.permute.xlu1 %611  ;;  %v4603_v18 = vpop.permute.xlu0 %609  ;;  %v4618_v57 = vld [vmem:[%s3901_s9 + $0x188] sm:$0xff] }
 0x10a   : > { %8221 = vst [vmem:[#allocation106_spill] sm:$0xff] %v4601_v45  ;;  %v4621_v45 = vld [vmem:[%s3901_s9 + $0x180] sm:$0xff] }
 0x10b   : > { %8222 = vst [vmem:[#allocation107_spill] sm:$0xff] %v4603_v18 }
 0x10e   : > { %737 = vrot.lane.b32.xlu2 %v4228_v34, %s3812_s12 }
 0x10f   : > { %735 = vrot.lane.b32.xlu1 %v4191_v41, %s3812_s12  ;;  %733 = vrot.lane.b32.xlu0 %v4197_v17, %s3812_s12 }
 0x110   : > { %v4611_v53 = vpop.permute.xlu2 %637 }
 0x111   : > { %8223 = vst [vmem:[#allocation108_spill] sm:$0xff] %v4611_v53  ;;  %v4613_v62 = vpop.permute.xlu1 %617  ;;  %v4615_v40 = vpop.permute.xlu0 %615 }
 0x112   : > { %8224 = vst [vmem:[#allocation109_spill] sm:$0xff] %v4613_v62 }
 0x113   : > { %8225 = vst [vmem:[#allocation110_spill] sm:$0xff] %v4615_v40 }
 0x116   : > { %743 = vrot.lane.b32.xlu2 %v4618_v57, %s3812_s12 }
 0x117   : > { %741 = vrot.lane.b32.xlu1 %v4621_v45, %s3812_s12  ;;  %739 = vrot.lane.b32.xlu0 %v4222_v31, %s3812_s12 }
 0x118   : > { %v4629_v18 = vpop.permute.xlu2 %643 }
 0x119   : > { %8226 = vst [vmem:[#allocation111_spill] sm:$0xff] %v4629_v18  ;;  %v4631_v53 = vpop.permute.xlu1 %623  ;;  %v4633_v62 = vpop.permute.xlu0 %621 }
 0x11a   : > { %8227 = vst [vmem:[#allocation112_spill] sm:$0xff] %v4631_v53 }
 0x11b   : > { %8228 = vst [vmem:[#allocation113_spill] sm:$0xff] %v4633_v62 }
 0x11e   : > { %787 = vrot.lane.b32.xlu2 %v3931_v13, %s3813_s13 }
 0x11f   : > { %785 = vrot.lane.b32.xlu1 %v3955_v22, %s3813_s13  ;;  %783 = vrot.lane.b32.xlu0 %v3942_v16, %s3813_s13 }
 0x120   : > { %v4641_v40 = vpop.permute.xlu2 %683 }
 0x121   : > { %8229 = vst [vmem:[#allocation114_spill] sm:$0xff] %v4641_v40  ;;  %v4643_v2 = vpop.permute.xlu1 %629  ;;  %v4645_v5 = vpop.permute.xlu0 %627 }
 0x122   : > { %8230 = vst [vmem:[#allocation115_spill] sm:$0xff] %v4643_v2  ;;  %v8235_v2 = vld [vmem:[#allocation14_spill] sm:$0xff] }
 0x123   : > { %8231 = vst [vmem:[#allocation116_spill] sm:$0xff] %v4645_v5  ;;  %v8236_v5 = vld [vmem:[#allocation9_spill] sm:$0xff] }
 0x126   : > { %793 = vrot.lane.b32.xlu2 %v3987_v35, %s3813_s13 }
 0x127   : > { %791 = vrot.lane.b32.xlu1 %v3990_v36, %s3813_s13  ;;  %789 = vrot.lane.b32.xlu0 %v3952_v21, %s3813_s13 }
 0x128   : > { %v4653_v18 = vpop.permute.xlu2 %689 }
 0x129   : > { %8232 = vst [vmem:[#allocation117_spill] sm:$0xff] %v4653_v18  ;;  %v4655_v22 = vpop.permute.xlu1 %635  ;;  %v4657_v16 = vpop.permute.xlu0 %633  ;;  %v8240_v18 = vld [vmem:[#allocation16_spill] sm:$0xff] }
 0x12a   : > { %8233 = vst [vmem:[#allocation118_spill] sm:$0xff] %v4655_v22  ;;  %v8241_v22 = vld [vmem:[#allocation17_spill] sm:$0xff] }
 0x12b   : > { %8234 = vst [vmem:[#allocation119_spill] sm:$0xff] %v4657_v16  ;;  %v8242_v16 = vld [vmem:[#allocation12_spill] sm:$0xff] }
 0x12e   : > { %799 = vrot.lane.b32.xlu2 %v4018_v46, %s3813_s13 }
 0x12f   : > { %797 = vrot.lane.b32.xlu1 %v8235_v2, %s3813_s13  ;;  %795 = vrot.lane.b32.xlu0 %v8236_v5, %s3813_s13 }
 0x130   : > { %v4665_v53 = vpop.permute.xlu2 %695 }
 0x131   : > { %8237 = vst [vmem:[#allocation120_spill] sm:$0xff] %v4665_v53  ;;  %v4667_v62 = vpop.permute.xlu1 %641  ;;  %v4669_v33 = vpop.permute.xlu0 %639  ;;  %v8246_v53 = vld [vmem:[#allocation19_spill] sm:$0xff] }
 0x132   : > { %8238 = vst [vmem:[#allocation121_spill] sm:$0xff] %v4667_v62  ;;  %v8247_v62 = vld [vmem:[#allocation20_spill] sm:$0xff] }
 0x133   : > { %8239 = vst [vmem:[#allocation122_spill] sm:$0xff] %v4669_v33  ;;  %v8248_v33 = vld [vmem:[#allocation15_spill] sm:$0xff] }
 0x136   : > { %805 = vrot.lane.b32.xlu2 %v8240_v18, %s3813_s13 }
 0x137   : > { %803 = vrot.lane.b32.xlu1 %v8241_v22, %s3813_s13  ;;  %801 = vrot.lane.b32.xlu0 %v8242_v16, %s3813_s13 }
 0x138   : > { %v4677_v40 = vpop.permute.xlu2 %701 }
 0x139   : > { %8243 = vst [vmem:[#allocation123_spill] sm:$0xff] %v4677_v40  ;;  %v4679_v29 = vpop.permute.xlu1 %681  ;;  %v4681_v3 = vpop.permute.xlu0 %645  ;;  %v8252_v40 = vld [vmem:[#allocation22_spill] sm:$0xff] }
 0x13a   : > { %8244 = vst [vmem:[#allocation124_spill] sm:$0xff] %v4679_v29  ;;  %v8254_v29 = vld [vmem:[#allocation18_spill] sm:$0xff] }
 0x13b   : > { %8245 = vst [vmem:[#allocation125_spill] sm:$0xff] %v4681_v3  ;;  %v8253_v3 = vld [vmem:[#allocation23_spill] sm:$0xff] }
 0x13e   : > { %811 = vrot.lane.b32.xlu2 %v8246_v53, %s3813_s13 }
 0x13f   : > { %809 = vrot.lane.b32.xlu1 %v8247_v62, %s3813_s13  ;;  %807 = vrot.lane.b32.xlu0 %v8248_v33, %s3813_s13 }
 0x140   : > { %v4689_v18 = vpop.permute.xlu2 %707 }
 0x141   : > { %8249 = vst [vmem:[#allocation126_spill] sm:$0xff] %v4689_v18  ;;  %v4691_v46 = vpop.permute.xlu1 %687  ;;  %v4693_v16 = vpop.permute.xlu0 %685  ;;  %v8258_v18 = vld [vmem:[#allocation25_spill] sm:$0xff] }
 0x142   : > { %8250 = vst [vmem:[#allocation127_spill] sm:$0xff] %v4691_v46  ;;  %v8259_v46 = vld [vmem:[#allocation26_spill] sm:$0xff] }
 0x143   : > { %8251 = vst [vmem:[#allocation128_spill] sm:$0xff] %v4693_v16  ;;  %v8260_v16 = vld [vmem:[#allocation21_spill] sm:$0xff] }
 0x146   : > { %817 = vrot.lane.b32.xlu2 %v8252_v40, %s3813_s13 }
 0x147   : > { %815 = vrot.lane.b32.xlu1 %v8253_v3, %s3813_s13  ;;  %813 = vrot.lane.b32.xlu0 %v8254_v29, %s3813_s13 }
 0x148   : > { %v4701_v53 = vpop.permute.xlu2 %713 }
 0x149   : > { %8255 = vst [vmem:[#allocation129_spill] sm:$0xff] %v4701_v53  ;;  %v4703_v62 = vpop.permute.xlu1 %693  ;;  %v4705_v33 = vpop.permute.xlu0 %691  ;;  %v8264_v53 = vld [vmem:[#allocation28_spill] sm:$0xff] }
 0x14a   : > { %8256 = vst [vmem:[#allocation130_spill] sm:$0xff] %v4703_v62  ;;  %v8265_v62 = vld [vmem:[#allocation29_spill] sm:$0xff] }
 0x14b   : > { %8257 = vst [vmem:[#allocation131_spill] sm:$0xff] %v4705_v33  ;;  %v8266_v33 = vld [vmem:[#allocation24_spill] sm:$0xff] }
 0x14e   : > { %823 = vrot.lane.b32.xlu2 %v8258_v18, %s3813_s13 }
 0x14f   : > { %821 = vrot.lane.b32.xlu1 %v8259_v46, %s3813_s13  ;;  %819 = vrot.lane.b32.xlu0 %v8260_v16, %s3813_s13 }
 0x150   : > { %v4713_v40 = vpop.permute.xlu2 %719 }
 0x151   : > { %8261 = vst [vmem:[#allocation132_spill] sm:$0xff] %v4713_v40  ;;  %v4715_v3 = vpop.permute.xlu1 %699  ;;  %v4717_v29 = vpop.permute.xlu0 %697  ;;  %v8270_v40 = vld [vmem:[#allocation31_spill] sm:$0xff] }
 0x152   : > { %8262 = vst [vmem:[#allocation133_spill] sm:$0xff] %v4715_v3  ;;  %v8271_v3 = vld [vmem:[#allocation27_spill] sm:$0xff] }
 0x153   : > { %8263 = vst [vmem:[#allocation134_spill] sm:$0xff] %v4717_v29 }
 0x156   : > { %829 = vrot.lane.b32.xlu2 %v8264_v53, %s3813_s13 }
 0x157   : > { %827 = vrot.lane.b32.xlu1 %v8265_v62, %s3813_s13  ;;  %825 = vrot.lane.b32.xlu0 %v8266_v33, %s3813_s13 }
 0x158   : > { %v4725_v18 = vpop.permute.xlu2 %725 }
 0x159   : > { %8267 = vst [vmem:[#allocation135_spill] sm:$0xff] %v4725_v18  ;;  %v4727_v46 = vpop.permute.xlu1 %705  ;;  %v4729_v16 = vpop.permute.xlu0 %703  ;;  %v4744_v18 = vld [vmem:[%s3901_s9 + $0x190] sm:$0x3] }
 0x15a   : > { %8268 = vst [vmem:[#allocation136_spill] sm:$0xff] %v4727_v46  ;;  %v8275_v46 = vld [vmem:[#allocation34_spill] sm:$0xff] }
 0x15b   : > { %8269 = vst [vmem:[#allocation137_spill] sm:$0xff] %v4729_v16  ;;  %v8276_v16 = vld [vmem:[#allocation30_spill] sm:$0xff] }
 0x15e   : > { %835 = vrot.lane.b32.xlu2 %v8270_v40, %s3813_s13 }
 0x15f   : > { %833 = vrot.lane.b32.xlu1 %v4219_v58, %s3813_s13  ;;  %831 = vrot.lane.b32.xlu0 %v8271_v3, %s3813_s13  ;;  %v779_v3 = vrot.slane %v4618_v57, 1 }
 0x160   : > { %v4737_v29 = vpop.permute.xlu2 %731 }
 0x161   : > { %8272 = vst [vmem:[#allocation138_spill] sm:$0xff] %v4737_v29  ;;  %v4739_v53 = vpop.permute.xlu1 %711  ;;  %v4741_v33 = vpop.permute.xlu0 %709  ;;  %v781_v29 = vrot.slane %v4744_v18, 1 }
 0x162   : > { %8273 = vst [vmem:[#allocation139_spill] sm:$0xff] %v4739_v53  ;;  %v778_v53 = vrot.slane %v4621_v45, 1 }
 0x163   : > { %8274 = vst [vmem:[#allocation140_spill] sm:$0xff] %v4741_v33 }
 0x166   : > { %841 = vrot.lane.b32.xlu2 %v4243_v60, %s3813_s13  ;;  %v4762_v60 = vsel %vm325_vm0, %v779_v3, %v781_v29 }
 0x167   : > { %839 = vrot.lane.b32.xlu1 %v8275_v46, %s3813_s13  ;;  %837 = vrot.lane.b32.xlu0 %v8276_v16, %s3813_s13  ;;  %8280 = vst [vmem:[#allocation144_spill] sm:$0xff] %v4762_v60  ;;  %v4765_v46 = vsel %vm325_vm0, %v778_v53, %v779_v3 }
 0x168   : > { %v4752_v40 = vpop.permute.xlu2 %737  ;;  %8281 = vst [vmem:[#allocation145_spill] sm:$0xff] %v4765_v46 }
 0x169   : > { %8277 = vst [vmem:[#allocation141_spill] sm:$0xff] %v4752_v40  ;;  %v4757_v33 = vpop.permute.xlu1 %717  ;;  %v4759_v58 = vpop.permute.xlu0 %715 }
 0x16a   : > { %8278 = vst [vmem:[#allocation142_spill] sm:$0xff] %v4757_v33 }
 0x16b   : > { %8279 = vst [vmem:[#allocation143_spill] sm:$0xff] %v4759_v58 }
 0x16e   : > { %884 = vrot.lane.b32.xlu2 %v4261_v10, %s3814_s14  ;;  %v8285_v10 = vld [vmem:[#allocation35_spill] sm:$0xff] }
 0x16f   : > { %845 = vrot.lane.b32.xlu1 %v4762_v60, %s3813_s13  ;;  %843 = vrot.lane.b32.xlu0 %v4765_v46, %s3813_s13 }
 0x170   : > { %v4773_v40 = vpop.permute.xlu2 %743 }
 0x171   : > { %8282 = vst [vmem:[#allocation146_spill] sm:$0xff] %v4773_v40  ;;  %v4775_v33 = vpop.permute.xlu1 %723  ;;  %v4777_v58 = vpop.permute.xlu0 %721  ;;  %v8289_v40 = vld [vmem:[#allocation42_spill] sm:$0xff] }
 0x172   : > { %8283 = vst [vmem:[#allocation147_spill] sm:$0xff] %v4775_v33  ;;  %v8290_v33 = vld [vmem:[#allocation37_spill] sm:$0xff] }
 0x173   : > { %8284 = vst [vmem:[#allocation148_spill] sm:$0xff] %v4777_v58 }
 0x176   : > { %890 = vrot.lane.b32.xlu2 %v4280_v9, %s3814_s14 }
 0x177   : > { %888 = vrot.lane.b32.xlu1 %v4283_v47, %s3814_s14  ;;  %886 = vrot.lane.b32.xlu0 %v8285_v10, %s3814_s14 }
 0x178   : > { %v4785_v29 = vpop.permute.xlu2 %787 }
 0x179   : > { %8286 = vst [vmem:[#allocation35_spill] sm:$0xff] %v4785_v29  ;;  %v4787_v3 = vpop.permute.xlu1 %729  ;;  %v4789_v53 = vpop.permute.xlu0 %727  ;;  %v8294_v29 = vld [vmem:[#allocation45_spill] sm:$0xff] }
 0x17a   : > { %8287 = vst [vmem:[#allocation149_spill] sm:$0xff] %v4787_v3  ;;  %v8295_v3 = vld [vmem:[#allocation46_spill] sm:$0xff] }
 0x17b   : > { %8288 = vst [vmem:[#allocation150_spill] sm:$0xff] %v4789_v53  ;;  %v8296_v53 = vld [vmem:[#allocation40_spill] sm:$0xff] }
 0x17e   : > { %896 = vrot.lane.b32.xlu2 %v4301_v44, %s3814_s14 }
 0x17f   : > { %894 = vrot.lane.b32.xlu1 %v8289_v40, %s3814_s14  ;;  %892 = vrot.lane.b32.xlu0 %v8290_v33, %s3814_s14 }
 0x180   : > { %v4797_v58 = vpop.permute.xlu2 %793 }
 0x181   : > { %8291 = vst [vmem:[#allocation151_spill] sm:$0xff] %v4797_v58  ;;  %v4799_v9 = vpop.permute.xlu1 %735  ;;  %v4801_v10 = vpop.permute.xlu0 %733 }
 0x182   : > { %8292 = vst [vmem:[#allocation152_spill] sm:$0xff] %v4799_v9  ;;  %v8300_v9 = vld [vmem:[#allocation44_spill] sm:$0xff] }
 0x183   : > { %8293 = vst [vmem:[#allocation153_spill] sm:$0xff] %v4801_v10 }
 0x186   : > { %902 = vrot.lane.b32.xlu2 %v8294_v29, %s3814_s14 }
 0x187   : > { %900 = vrot.lane.b32.xlu1 %v8295_v3, %s3814_s14  ;;  %898 = vrot.lane.b32.xlu0 %v8296_v53, %s3814_s14 }
 0x188   : > { %v4809_v44 = vpop.permute.xlu2 %799 }
 0x189   : > { %8297 = vst [vmem:[#allocation46_spill] sm:$0xff] %v4809_v44  ;;  %v4811_v40 = vpop.permute.xlu1 %741  ;;  %v4813_v33 = vpop.permute.xlu0 %739 }
 0x18a   : > { %8298 = vst [vmem:[#allocation40_spill] sm:$0xff] %v4811_v40  ;;  %v8304_v40 = vld [vmem:[#allocation57_spill] sm:$0xff] }
 0x18b   : > { %8299 = vst [vmem:[#allocation154_spill] sm:$0xff] %v4813_v33  ;;  %v8305_v33 = vld [vmem:[#allocation50_spill] sm:$0xff] }
 0x18e   : > { %908 = vrot.lane.b32.xlu2 %v4348_v59, %s3814_s14 }
 0x18f   : > { %906 = vrot.lane.b32.xlu1 %v4351_v4, %s3814_s14  ;;  %904 = vrot.lane.b32.xlu0 %v8300_v9, %s3814_s14 }
 0x190   : > { %v4821_v10 = vpop.permute.xlu2 %805 }
 0x191   : > { %8301 = vst [vmem:[#allocation155_spill] sm:$0xff] %v4821_v10  ;;  %v4823_v58 = vpop.permute.xlu1 %785  ;;  %v4825_v29 = vpop.permute.xlu0 %783  ;;  %v8309_v10 = vld [vmem:[#allocation55_spill] sm:$0xff] }
 0x192   : > { %8302 = vst [vmem:[#allocation156_spill] sm:$0xff] %v4823_v58 }
 0x193   : > { %8303 = vst [vmem:[#allocation157_spill] sm:$0xff] %v4825_v29 }
 0x196   : > { %914 = vrot.lane.b32.xlu2 %v4374_v32, %s3814_s14 }
 0x197   : > { %912 = vrot.lane.b32.xlu1 %v8304_v40, %s3814_s14  ;;  %910 = vrot.lane.b32.xlu0 %v8305_v33, %s3814_s14 }
 0x198   : > { %v4833_v44 = vpop.permute.xlu2 %811 }
 0x199   : > { %8306 = vst [vmem:[#allocation57_spill] sm:$0xff] %v4833_v44  ;;  %v4835_v59 = vpop.permute.xlu1 %791  ;;  %v4837_v9 = vpop.permute.xlu0 %789  ;;  %v8313_v44 = vld [vmem:[#allocation68_spill] sm:$0xff] }
 0x19a   : > { %8307 = vst [vmem:[#allocation50_spill] sm:$0xff] %v4835_v59  ;;  %v8314_v59 = vld [vmem:[#allocation61_spill] sm:$0xff] }
 0x19b   : > { %8308 = vst [vmem:[#allocation158_spill] sm:$0xff] %v4837_v9 }
 0x19e   : > { %920 = vrot.lane.b32.xlu2 %v4399_v7, %s3814_s14 }
 0x19f   : > { %918 = vrot.lane.b32.xlu1 %v4402_v8, %s3814_s14  ;;  %916 = vrot.lane.b32.xlu0 %v8309_v10, %s3814_s14 }
 0x1a0   : > { %v4845_v58 = vpop.permute.xlu2 %817 }
 0x1a1   : > { %8310 = vst [vmem:[#allocation159_spill] sm:$0xff] %v4845_v58  ;;  %v4847_v29 = vpop.permute.xlu1 %797  ;;  %v4849_v32 = vpop.permute.xlu0 %795  ;;  %v8318_v58 = vld [vmem:[#allocation66_spill] sm:$0xff] }
 0x1a2   : > { %8311 = vst [vmem:[#allocation160_spill] sm:$0xff] %v4847_v29 }
 0x1a3   : > { %8312 = vst [vmem:[#allocation161_spill] sm:$0xff] %v4849_v32 }
 0x1a6   : > { %926 = vrot.lane.b32.xlu2 %v4425_v12, %s3814_s14 }
 0x1a7   : > { %924 = vrot.lane.b32.xlu1 %v8313_v44, %s3814_s14  ;;  %922 = vrot.lane.b32.xlu0 %v8314_v59, %s3814_s14 }
 0x1a8   : > { %v4857_v9 = vpop.permute.xlu2 %823 }
 0x1a9   : > { %8315 = vst [vmem:[#allocation68_spill] sm:$0xff] %v4857_v9  ;;  %v4859_v7 = vpop.permute.xlu1 %803  ;;  %v4861_v10 = vpop.permute.xlu0 %801  ;;  %v879_v9 = vrot.slane %v4621_v45, 2 }
 0x1aa   : > { %8316 = vst [vmem:[#allocation61_spill] sm:$0xff] %v4859_v7  ;;  %v880_v7 = vrot.slane %v4618_v57, 2 }
 0x1ab   : > { %8317 = vst [vmem:[#allocation162_spill] sm:$0xff] %v4861_v10  ;;  %v8322_v10 = vld [vmem:[#allocation72_spill] sm:$0xff] }
 0x1ae   : > { %932 = vrot.lane.b32.xlu2 %v4450_v27, %s3814_s14 }
 0x1af   : > { %930 = vrot.lane.b32.xlu1 %v4453_v14, %s3814_s14  ;;  %928 = vrot.lane.b32.xlu0 %v8318_v58, %s3814_s14 }
 0x1b0   : > { %v4869_v29 = vpop.permute.xlu2 %829 }
 0x1b1   : > { %8319 = vst [vmem:[#allocation66_spill] sm:$0xff] %v4869_v29  ;;  %v4871_v32 = vpop.permute.xlu1 %809  ;;  %v4873_v12 = vpop.permute.xlu0 %807 }
 0x1b2   : > { %8320 = vst [vmem:[#allocation163_spill] sm:$0xff] %v4871_v32 }
 0x1b3   : > { %8321 = vst [vmem:[#allocation164_spill] sm:$0xff] %v4873_v12  ;;  %v4890_v12 = vsel %vm502_vm1, %v879_v9, %v880_v7 }
 0x1b6   : > { %938 = vrot.lane.b32.xlu2 %v4476_v51, %s3814_s14 }
 0x1b7   : > { %936 = vrot.lane.b32.xlu1 %v4479_v15, %s3814_s14  ;;  %934 = vrot.lane.b32.xlu0 %v8322_v10, %s3814_s14 }
 0x1b8   : > { %v4883_v27 = vpop.permute.xlu2 %835 }
 0x1b9   : > { %8323 = vst [vmem:[#allocation165_spill] sm:$0xff] %v4883_v27  ;;  %v4885_v29 = vpop.permute.xlu1 %815  ;;  %v4887_v32 = vpop.permute.xlu0 %813  ;;  %v882_v27 = vrot.slane %v4744_v18, 2 }
 0x1ba   : > { %8324 = vst [vmem:[#allocation166_spill] sm:$0xff] %v4885_v29 }
 0x1bb   : > { %8325 = vst [vmem:[#allocation167_spill] sm:$0xff] %v4887_v32  ;;  %v4906_v9 = vsel %vm502_vm1, %v880_v7, %v882_v27  ;;  %v5029_v27 = vld [vmem:[%s3901_s9 + $0x1a0] sm:$0xff] }
 0x1be   : > { %944 = vrot.lane.b32.xlu2 %v4890_v12, %s3814_s14 }
 0x1bf   : > { %942 = vrot.lane.b32.xlu1 %v4495_v55, %s3814_s14  ;;  %940 = vrot.lane.b32.xlu0 %v4473_v38, %s3814_s14 }
 0x1c0   : > { %v4898_v51 = vpop.permute.xlu2 %841 }
 0x1c1   : > { %8326 = vst [vmem:[#allocation168_spill] sm:$0xff] %v4898_v51  ;;  %v4901_v10 = vpop.permute.xlu1 %821  ;;  %v4903_v29 = vpop.permute.xlu0 %819 }
 0x1c6   : > { %984 = vrot.lane.b32.xlu2 %v3907_v1, %s3815_s15 }
 0x1c7   : > { %982 = vrot.lane.b32.xlu1 %v3904_v0, %s3815_s15  ;;  %946 = vrot.lane.b32.xlu0 %v4906_v9, %s3814_s14 }
 0x1c8   : > { %v4914_v51 = vpop.permute.xlu2 %884 }
 0x1c9   : > { %v4916_v18 = vpop.permute.xlu1 %827  ;;  %v4918_v32 = vpop.permute.xlu0 %825 }
 0x1ca   : > { %8327 = vst [vmem:[#allocation169_spill] sm:$0xff] %v4916_v18  ;;  %v8370_v18 = vld [vmem:[#allocation34_spill] sm:$0xff] }
 0x1ce   : > { %990 = vrot.lane.b32.xlu2 %v3959_v24, %s3815_s15 }
 0x1cf   : > { %988 = vrot.lane.b32.xlu1 %v3965_v26, %s3815_s15  ;;  %986 = vrot.lane.b32.xlu0 %v3971_v28, %s3815_s15 }
 0x1d0   : > { %v4926_v1 = vpop.permute.xlu2 %890 }
 0x1d1   : > { %v4928_v0 = vpop.permute.xlu1 %833  ;;  %v4930_v7 = vpop.permute.xlu0 %831 }
 0x1d2   : > { %8328 = vst [vmem:[#allocation170_spill] sm:$0xff] %v4928_v0  ;;  %v8359_v0 = vld [vmem:[#allocation26_spill] sm:$0xff] }
 0x1d3   : > { %8329 = vst [vmem:[#allocation171_spill] sm:$0xff] %v4930_v7  ;;  %v1080_v7 = vrot.slane %v5029_v27, 1 }
 0x1d6   : > { %996 = vrot.lane.b32.xlu2 %v3993_v37, %s3815_s15 }
 0x1d7   : > { %994 = vrot.lane.b32.xlu1 %v3999_v39, %s3815_s15  ;;  %992 = vrot.lane.b32.xlu0 %v3962_v25, %s3815_s15 }
 0x1d8   : > { %v4938_v24 = vpop.permute.xlu2 %896 }
 0x1d9   : > { %v4940_v26 = vpop.permute.xlu1 %839  ;;  %v4942_v28 = vpop.permute.xlu0 %837 }
 0x1da   : > { %8330 = vst [vmem:[#allocation172_spill] sm:$0xff] %v4940_v26 }
 0x1db   : > { %8331 = vst [vmem:[#allocation173_spill] sm:$0xff] %v4942_v28  ;;  %v8351_v28 = vld [vmem:[#allocation20_spill] sm:$0xff] }
 0x1de   : > { %1002 = vrot.lane.b32.xlu2 %v4024_v48, %s3815_s15 }
 0x1df   : > { %1000 = vrot.lane.b32.xlu1 %v4030_v50, %s3815_s15  ;;  %998 = vrot.lane.b32.xlu0 %v4036_v52, %s3815_s15 }
 0x1e0   : > { %v4950_v37 = vpop.permute.xlu2 %902 }
 0x1e1   : > { %v4952_v39 = vpop.permute.xlu1 %845  ;;  %v4954_v25 = vpop.permute.xlu0 %843 }
 0x1e2   : > { %8332 = vst [vmem:[#allocation174_spill] sm:$0xff] %v4952_v39  ;;  %v5032_v39 = vld [vmem:[%s3901_s9 + $0x198] sm:$0xff] }
 0x1e3   : > { %8333 = vst [vmem:[#allocation175_spill] sm:$0xff] %v4954_v25 }
 0x1e6   : > { %1008 = vrot.lane.b32.xlu2 %v4059_v61, %s3815_s15 }
 0x1e7   : > { %1006 = vrot.lane.b32.xlu1 %v4065_v63, %s3815_s15  ;;  %1004 = vrot.lane.b32.xlu0 %v4027_v49, %s3815_s15 }
 0x1e8   : > { %v4962_v48 = vpop.permute.xlu2 %908 }
 0x1e9   : > { %8334 = vst [vmem:[#allocation176_spill] sm:$0xff] %v4962_v48  ;;  %v4964_v50 = vpop.permute.xlu1 %888  ;;  %v4966_v52 = vpop.permute.xlu0 %886 }
 0x1ee   : > { %1014 = vrot.lane.b32.xlu2 %v4090_v19, %s3815_s15 }
 0x1ef   : > { %1012 = vrot.lane.b32.xlu1 %v4096_v23, %s3815_s15  ;;  %1010 = vrot.lane.b32.xlu0 %v4102_v30, %s3815_s15 }
 0x1f0   : > { %v4974_v61 = vpop.permute.xlu2 %914 }
 0x1f1   : > { %8335 = vst [vmem:[#allocation177_spill] sm:$0xff] %v4974_v61  ;;  %v4976_v63 = vpop.permute.xlu1 %894  ;;  %v4978_v49 = vpop.permute.xlu0 %892  ;;  %v8355_v61 = vld [vmem:[#allocation23_spill] sm:$0xff] }
 0x1f6   : > { %1020 = vrot.lane.b32.xlu2 %v4125_v54, %s3815_s15 }
 0x1f7   : > { %1018 = vrot.lane.b32.xlu1 %v4131_v56, %s3815_s15  ;;  %1016 = vrot.lane.b32.xlu0 %v4093_v20, %s3815_s15 }
 0x1f8   : > { %v4986_v19 = vpop.permute.xlu2 %920 }
 0x1f9   : > { %v4988_v23 = vpop.permute.xlu1 %900  ;;  %v4990_v30 = vpop.permute.xlu0 %898 }
 0x1fe   : > { %1026 = vrot.lane.b32.xlu2 %v4156_v42, %s3815_s15 }
 0x1ff   : > { %1024 = vrot.lane.b32.xlu1 %v4162_v11, %s3815_s15  ;;  %1022 = vrot.lane.b32.xlu0 %v4168_v6, %s3815_s15 }
 0x200   : > { %v4998_v54 = vpop.permute.xlu2 %926 }
 0x201   : > { %8336 = vst [vmem:[#allocation178_spill] sm:$0xff] %v4998_v54  ;;  %v5000_v20 = vpop.permute.xlu1 %906  ;;  %v5002_v56 = vpop.permute.xlu0 %904 }
 0x202   : > { %8337 = vst [vmem:[#allocation179_spill] sm:$0xff] %v5000_v20 }
 0x206   : > { %1032 = vrot.lane.b32.xlu2 %v4191_v41, %s3815_s15 }
 0x207   : > { %1030 = vrot.lane.b32.xlu1 %v4197_v17, %s3815_s15  ;;  %1028 = vrot.lane.b32.xlu0 %v4159_v43, %s3815_s15 }
 0x208   : > { %v5010_v11 = vpop.permute.xlu2 %932 }
 0x209   : > { %8338 = vst [vmem:[#allocation180_spill] sm:$0xff] %v5010_v11  ;;  %v5012_v42 = vpop.permute.xlu1 %912  ;;  %v5014_v6 = vpop.permute.xlu0 %910 }
 0x20a   : > { %8339 = vst [vmem:[#allocation181_spill] sm:$0xff] %v5012_v42  ;;  %v1079_v42 = vrot.slane %v5032_v39, 1 }
 0x20b   : > { %8340 = vst [vmem:[#allocation182_spill] sm:$0xff] %v5014_v6 }
 0x20e   : > { %1038 = vrot.lane.b32.xlu2 %v4621_v45, %s3815_s15 }
 0x20f   : > { %1036 = vrot.lane.b32.xlu1 %v4222_v31, %s3815_s15  ;;  %1034 = vrot.lane.b32.xlu0 %v4228_v34, %s3815_s15 }
 0x210   : > { %v5022_v41 = vpop.permute.xlu2 %938 }
 0x211   : > { %8341 = vst [vmem:[#allocation183_spill] sm:$0xff] %v5022_v41  ;;  %v5024_v17 = vpop.permute.xlu1 %918  ;;  %v5026_v43 = vpop.permute.xlu0 %916 }
 0x216   : > { %1044 = vrot.lane.b32.xlu2 %v5029_v27, %s3815_s15 }
 0x217   : > { %1042 = vrot.lane.b32.xlu1 %v5032_v39, %s3815_s15  ;;  %1040 = vrot.lane.b32.xlu0 %v4618_v57, %s3815_s15 }
 0x218   : > { %v5040_v34 = vpop.permute.xlu2 %944 }
 0x219   : > { %8342 = vst [vmem:[#allocation184_spill] sm:$0xff] %v5040_v34  ;;  %v5042_v31 = vpop.permute.xlu1 %924  ;;  %v5044_v45 = vpop.permute.xlu0 %922  ;;  %v8347_v34 = vld [vmem:[#allocation12_spill] sm:$0xff] }
 0x21e   : > { %1088 = vrot.lane.b32.xlu2 %v3990_v36, %s3816_s16 }
 0x21f   : > { %1086 = vrot.lane.b32.xlu1 %v3952_v21, %s3816_s16  ;;  %1084 = vrot.lane.b32.xlu0 %v3931_v13, %s3816_s16 }
 0x220   : > { %v5052_v25 = vpop.permute.xlu2 %984 }
 0x221   : > { %v5054_v26 = vpop.permute.xlu1 %930  ;;  %v5056_v57 = vpop.permute.xlu0 %928 }
 0x222   : > { %8343 = vst [vmem:[#allocation185_spill] sm:$0xff] %v5054_v26 }
 0x223   : > { %8344 = vst [vmem:[#allocation186_spill] sm:$0xff] %v5056_v57  ;;  %v8364_v57 = vld [vmem:[#allocation32_spill] sm:$0xff] }
 0x226   : > { %1094 = vrot.lane.b32.xlu2 %v8235_v2, %s3816_s16  ;;  %v8348_v2 = vld [vmem:[#allocation13_spill] sm:$0xff] }
 0x227   : > { %1092 = vrot.lane.b32.xlu1 %v8236_v5, %s3816_s16  ;;  %1090 = vrot.lane.b32.xlu0 %v3987_v35, %s3816_s16 }
 0x228   : > { %v5064_v36 = vpop.permute.xlu2 %990 }
 0x229   : > { %v5066_v21 = vpop.permute.xlu1 %936  ;;  %v5068_v13 = vpop.permute.xlu0 %934 }
 0x22a   : > { %8345 = vst [vmem:[#allocation187_spill] sm:$0xff] %v5066_v21  ;;  %v8352_v21 = vld [vmem:[#allocation15_spill] sm:$0xff] }
 0x22b   : > { %8346 = vst [vmem:[#allocation188_spill] sm:$0xff] %v5068_v13 }
 0x22e   : > { %1100 = vrot.lane.b32.xlu2 %v8241_v22, %s3816_s16  ;;  %v8353_v22 = vld [vmem:[#allocation16_spill] sm:$0xff] }
 0x22f   : > { %1098 = vrot.lane.b32.xlu1 %v8347_v34, %s3816_s16  ;;  %1096 = vrot.lane.b32.xlu0 %v8348_v2, %s3816_s16 }
 0x230   : > { %v5076_v41 = vpop.permute.xlu2 %996 }
 0x231   : > { %v5078_v5 = vpop.permute.xlu1 %942  ;;  %v5080_v35 = vpop.permute.xlu0 %940 }
 0x232   : > { %8349 = vst [vmem:[#allocation189_spill] sm:$0xff] %v5078_v5  ;;  %v8356_v5 = vld [vmem:[#allocation18_spill] sm:$0xff] }
 0x233   : > { %8350 = vst [vmem:[#allocation190_spill] sm:$0xff] %v5080_v35 }
 0x236   : > { %1106 = vrot.lane.b32.xlu2 %v8351_v28, %s3816_s16  ;;  %v8357_v28 = vld [vmem:[#allocation19_spill] sm:$0xff] }
 0x237   : > { %1104 = vrot.lane.b32.xlu1 %v8352_v21, %s3816_s16  ;;  %1102 = vrot.lane.b32.xlu0 %v8353_v22, %s3816_s16 }
 0x238   : > { %v5088_v13 = vpop.permute.xlu2 %1002 }
 0x239   : > { %v5090_v34 = vpop.permute.xlu1 %982  ;;  %v5092_v2 = vpop.permute.xlu0 %946 }
 0x23a   : > { %8354 = vst [vmem:[#allocation191_spill] sm:$0xff] %v5092_v2  ;;  %v8360_v2 = vld [vmem:[#allocation21_spill] sm:$0xff] }
 0x23e   : > { %1112 = vrot.lane.b32.xlu2 %v8355_v61, %s3816_s16  ;;  %v8361_v61 = vld [vmem:[#allocation22_spill] sm:$0xff] }
 0x23f   : > { %1110 = vrot.lane.b32.xlu1 %v8356_v5, %s3816_s16  ;;  %1108 = vrot.lane.b32.xlu0 %v8357_v28, %s3816_s16 }
 0x240   : > { %v5100_v35 = vpop.permute.xlu2 %1008 }
 0x241   : > { %8358 = vst [vmem:[#allocation192_spill] sm:$0xff] %v5100_v35  ;;  %v5102_v21 = vpop.permute.xlu1 %988  ;;  %v5104_v22 = vpop.permute.xlu0 %986 }
 0x246   : > { %1118 = vrot.lane.b32.xlu2 %v8359_v0, %s3816_s16  ;;  %v1081_v0 = vsel %vm325_vm0, %v1079_v42, %v1080_v7  ;;  %v8366_v42 = vld [vmem:[#allocation28_spill] sm:$0xff] }
 0x247   : > { %1116 = vrot.lane.b32.xlu1 %v8360_v2, %s3816_s16  ;;  %1114 = vrot.lane.b32.xlu0 %v8361_v61, %s3816_s16  ;;  %v8362_v2 = vld [vmem:[#allocation24_spill] sm:$0xff]  ;;  %v8363_v61 = vld [vmem:[#allocation25_spill] sm:$0xff] }
 0x248   : > { %v5112_v11 = vpop.permute.xlu2 %1014 }
 0x249   : > { %v5114_v5 = vpop.permute.xlu1 %994  ;;  %v5116_v28 = vpop.permute.xlu0 %992 }
 0x24e   : > { %1124 = vrot.lane.b32.xlu2 %v8265_v62, %s3816_s16  ;;  %v8365_v62 = vld [vmem:[#allocation27_spill] sm:$0xff] }
 0x24f   : > { %1122 = vrot.lane.b32.xlu1 %v8362_v2, %s3816_s16  ;;  %1120 = vrot.lane.b32.xlu0 %v8363_v61, %s3816_s16 }
 0x250   : > { %v5127_v35 = vpop.permute.xlu2 %1020 }
 0x251   : > { %v5129_v26 = vpop.permute.xlu1 %1000  ;;  %v5131_v6 = vpop.permute.xlu0 %998 }
 0x256   : > { %1130 = vrot.lane.b32.xlu2 %v8364_v57, %s3816_s16  ;;  %v8371_v57 = vld [vmem:[#allocation31_spill] sm:$0xff] }
 0x257   : > { %1128 = vrot.lane.b32.xlu1 %v8365_v62, %s3816_s16  ;;  %1126 = vrot.lane.b32.xlu0 %v8366_v42, %s3816_s16 }
 0x258   : > { %v5139_v2 = vpop.permute.xlu2 %1026 }
 0x259   : > { %8367 = vst [vmem:[#allocation193_spill] sm:$0xff] %v5139_v2  ;;  %v5141_v48 = vpop.permute.xlu1 %1006  ;;  %v5143_v61 = vpop.permute.xlu0 %1004  ;;  %v5158_v2 = vld [vmem:[%s3901_s9 + $0x1a8] sm:$0x3] }
 0x25a   : > { %8368 = vst [vmem:[#allocation194_spill] sm:$0xff] %v5141_v48  ;;  %v8380_v48 = vld [vmem:[#allocation37_spill] sm:$0xff] }
 0x25b   : > { %8369 = vst [vmem:[#allocation195_spill] sm:$0xff] %v5143_v61 }
 0x25e   : > { %1136 = vrot.lane.b32.xlu2 %v8370_v18, %s3816_s16  ;;  %v8375_v18 = vld [vmem:[#allocation33_spill] sm:$0xff] }
 0x25f   : > { %1134 = vrot.lane.b32.xlu1 %v8276_v16, %s3816_s16  ;;  %1132 = vrot.lane.b32.xlu0 %v8371_v57, %s3816_s16  ;;  %v1082_v57 = vrot.slane %v5158_v2, 1 }
 0x260   : > { %v5151_v54 = vpop.permute.xlu2 %1032 }
 0x261   : > { %8372 = vst [vmem:[#allocation196_spill] sm:$0xff] %v5151_v54  ;;  %v5153_v62 = vpop.permute.xlu1 %1012  ;;  %v5155_v42 = vpop.permute.xlu0 %1010 }
 0x262   : > { %8373 = vst [vmem:[#allocation197_spill] sm:$0xff] %v5153_v62 }
 0x263   : > { %8374 = vst [vmem:[#allocation198_spill] sm:$0xff] %v5155_v42  ;;  %v1083_v42 = vsel %vm325_vm0, %v1080_v7, %v1082_v57  ;;  %v8381_v7 = vld [vmem:[#allocation38_spill] sm:$0xff] }
 0x266   : > { %1142 = vrot.lane.b32.xlu2 %v4762_v60, %s3816_s16 }
 0x267   : > { %1140 = vrot.lane.b32.xlu1 %v4765_v46, %s3816_s16  ;;  %1138 = vrot.lane.b32.xlu0 %v8375_v18, %s3816_s16 }
 0x268   : > { %v5166_v16 = vpop.permute.xlu2 %1038 }
 0x269   : > { %8376 = vst [vmem:[#allocation199_spill] sm:$0xff] %v5166_v16  ;;  %v5169_v54 = vpop.permute.xlu1 %1018  ;;  %v5171_v62 = vpop.permute.xlu0 %1016  ;;  %v8379_v16 = vld [vmem:[#allocation42_spill] sm:$0xff] }
 0x26e   : > { %1185 = vrot.lane.b32.xlu2 %v4283_v47, %s3817_s17 }
 0x26f   : > { %1146 = vrot.lane.b32.xlu1 %v1083_v42, %s3816_s16  ;;  %1144 = vrot.lane.b32.xlu0 %v1081_v0, %s3816_s16 }
 0x270   : > { %v5178_v60 = vpop.permute.xlu2 %1044 }
 0x271   : > { %8377 = vst [vmem:[#allocation200_spill] sm:$0xff] %v5178_v60  ;;  %v5180_v46 = vpop.permute.xlu1 %1024  ;;  %v5182_v18 = vpop.permute.xlu0 %1022  ;;  %v8387_v60 = vld [vmem:[#allocation44_spill] sm:$0xff] }
 0x272   : > { %8378 = vst [vmem:[#allocation201_spill] sm:$0xff] %v5180_v46 }
 0x276   : > { %1191 = vrot.lane.b32.xlu2 %v8379_v16, %s3817_s17  ;;  %v8384_v16 = vld [vmem:[#allocation41_spill] sm:$0xff] }
 0x277   : > { %1189 = vrot.lane.b32.xlu1 %v8380_v48, %s3817_s17  ;;  %1187 = vrot.lane.b32.xlu0 %v8381_v7, %s3817_s17 }
 0x278   : > { %v5190_v47 = vpop.permute.xlu2 %1088 }
 0x279   : > { %v5192_v57 = vpop.permute.xlu1 %1030  ;;  %v5194_v0 = vpop.permute.xlu0 %1028 }
 0x27a   : > { %8382 = vst [vmem:[#allocation42_spill] sm:$0xff] %v5192_v57 }
 0x27b   : > { %8383 = vst [vmem:[#allocation37_spill] sm:$0xff] %v5194_v0  ;;  %v1181_v0 = vrot.slane %v5029_v27, 2  ;;  %v8397_v27 = vld [vmem:[#allocation67_spill] sm:$0xff] }
 0x27e   : > { %1197 = vrot.lane.b32.xlu2 %v8295_v3, %s3817_s17  ;;  %v8388_v3 = vld [vmem:[#allocation45_spill] sm:$0xff] }
 0x27f   : > { %1195 = vrot.lane.b32.xlu1 %v8296_v53, %s3817_s17  ;;  %1193 = vrot.lane.b32.xlu0 %v8384_v16, %s3817_s17 }
 0x280   : > { %v5202_v42 = vpop.permute.xlu2 %1094 }
 0x281   : > { %v5204_v48 = vpop.permute.xlu1 %1036  ;;  %v5206_v7 = vpop.permute.xlu0 %1034 }
 0x282   : > { %8385 = vst [vmem:[#allocation38_spill] sm:$0xff] %v5204_v48 }
 0x283   : > { %8386 = vst [vmem:[#allocation41_spill] sm:$0xff] %v5206_v7  ;;  %v1180_v7 = vrot.slane %v5032_v39, 2  ;;  %v1549_v39 = vld [vmem:[%s7866_s1 + $0x20] sm:$0xf] }
 0x284   : > { %3582 = vmatpush.msk.msra.mxu0 %vm1651_vm2, %v1549_v39  ;;  %3654 = vmatpush.msk.msra.mxu2 %vm1651_vm2, %v1549_v39 }
 0x286   : > { %1203 = vrot.lane.b32.xlu2 %v4351_v4, %s3817_s17  ;;  %v8391_v4 = vld [vmem:[#allocation51_spill] sm:$0xff] }
 0x287   : > { %1201 = vrot.lane.b32.xlu1 %v8387_v60, %s3817_s17  ;;  %1199 = vrot.lane.b32.xlu0 %v8388_v3, %s3817_s17 }
 0x288   : > { %v5214_v57 = vpop.permute.xlu2 %1100 }
 0x289   : > { %v5216_v53 = vpop.permute.xlu1 %1042  ;;  %v5218_v16 = vpop.permute.xlu0 %1040 }
 0x28a   : > { %8389 = vst [vmem:[#allocation44_spill] sm:$0xff] %v5216_v53  ;;  %v8393_v53 = vld [vmem:[#allocation55_spill] sm:$0xff] }
 0x28b   : > { %8390 = vst [vmem:[#allocation45_spill] sm:$0xff] %v5218_v16 }
 0x28e   : > { %1209 = vrot.lane.b32.xlu2 %v8304_v40, %s3817_s17  ;;  %v8394_v40 = vld [vmem:[#allocation56_spill] sm:$0xff] }
 0x28f   : > { %1207 = vrot.lane.b32.xlu1 %v8305_v33, %s3817_s17  ;;  %1205 = vrot.lane.b32.xlu0 %v8391_v4, %s3817_s17 }
 0x290   : > { %v5226_v48 = vpop.permute.xlu2 %1106 }
 0x291   : > { %8392 = vst [vmem:[#allocation51_spill] sm:$0xff] %v5226_v48  ;;  %v5228_v60 = vpop.permute.xlu1 %1086  ;;  %v5230_v3 = vpop.permute.xlu0 %1084 }
 0x296   : > { %1215 = vrot.lane.b32.xlu2 %v4402_v8, %s3817_s17  ;;  %v1182_v8 = vsel %vm502_vm1, %v1180_v7, %v1181_v0  ;;  %v1546_v7 = vld [vmem:[%s7866_s1 + $0x8] sm:$0xff] }
 0x297   : > { %1213 = vrot.lane.b32.xlu1 %v8393_v53, %s3817_s17  ;;  %1211 = vrot.lane.b32.xlu0 %v8394_v40, %s3817_s17  ;;  %v8396_v53 = vld [vmem:[#allocation62_spill] sm:$0xff] }
 0x298   : > { %v5238_v16 = vpop.permute.xlu2 %1112 }
 0x299   : > { %8395 = vst [vmem:[#allocation55_spill] sm:$0xff] %v5238_v16  ;;  %v5240_v33 = vpop.permute.xlu1 %1092  ;;  %v5242_v4 = vpop.permute.xlu0 %1090 }
 0x29e   : > { %1221 = vrot.lane.b32.xlu2 %v8313_v44, %s3817_s17  ;;  %v1547_v44 = vld [vmem:[%s7866_s1 + $0x10] sm:$0xff] }
 0x29f   : > { %1219 = vrot.lane.b32.xlu1 %v8314_v59, %s3817_s17  ;;  %1217 = vrot.lane.b32.xlu0 %v8396_v53, %s3817_s17  ;;  %v1548_v59 = vld [vmem:[%s7866_s1 + $0x18] sm:$0xff] }
 0x2a0   : > { %v5253_v40 = vpop.permute.xlu2 %1118  ;;  %1667 = vmatpush.msra.mxu0 %v1548_v59  ;;  %3655 = vmatpush.msra.mxu2 %v1548_v59 }
 0x2a1   : > { %v5255_v16 = vpop.permute.xlu1 %1098  ;;  %v5257_v48 = vpop.permute.xlu0 %1096 }
 0x2a2   : > { %1668 = vmatpush.msra.mxu0 %v1547_v44  ;;  %3656 = vmatpush.msra.mxu2 %v1547_v44 }
 0x2a4   : > { %1669 = vmatpush.msra.mxu0 %v1546_v7  ;;  %3657 = vmatpush.msra.mxu2 %v1546_v7 }
 0x2a6   : > { %1227 = vrot.lane.b32.xlu2 %v4453_v14, %s3817_s17  ;;  %v1545_v14 = vld [vmem:[%s7866_s1] sm:$0xff] }
 0x2a7   : > { %1225 = vrot.lane.b32.xlu1 %v8318_v58, %s3817_s17  ;;  %1223 = vrot.lane.b32.xlu0 %v8397_v27, %s3817_s17  ;;  %v8398_v58 = vld [vmem:[#allocation72_spill] sm:$0xff]  ;;  %v8399_v27 = vld [vmem:[#allocation73_spill] sm:$0xff] }
 0x2a8   : > { %v5279_v53 = vpop.permute.xlu2 %1124  ;;  %1670 = vmatpush.msra.mxu0 %v1545_v14  ;;  %3658 = vmatpush.msra.mxu2 %v1545_v14 }
 0x2a9   : > { %v5281_v39 = vpop.permute.xlu1 %1104  ;;  %v5283_v59 = vpop.permute.xlu0 %1102 }
 0x2ae   : > { %1233 = vrot.lane.b32.xlu2 %v4479_v15, %s3817_s17  ;;  %v8403_v15 = vld [vmem:[#allocation77_spill] sm:$0xff] }
 0x2af   : > { %1231 = vrot.lane.b32.xlu1 %v8398_v58, %s3817_s17  ;;  %1229 = vrot.lane.b32.xlu0 %v8399_v27, %s3817_s17 }
 0x2b0   : > { %v5294_v44 = vpop.permute.xlu2 %1130 }
 0x2b1   : > { %8400 = vst [vmem:[#allocation56_spill] sm:$0xff] %v5294_v44  ;;  %v5296_v46 = vpop.permute.xlu1 %1110  ;;  %v5298_v61 = vpop.permute.xlu0 %1108  ;;  %v8408_v44 = vld [vmem:[#allocation81_spill] sm:$0xff] }
 0x2b2   : > { %8401 = vst [vmem:[#allocation62_spill] sm:$0xff] %v5296_v46 }
 0x2b3   : > { %8402 = vst [vmem:[#allocation67_spill] sm:$0xff] %v5298_v61 }
 0x2b6   : > { %1239 = vrot.lane.b32.xlu2 %v4495_v55, %s3817_s17  ;;  %v1183_v55 = vrot.slane %v5158_v2, 2  ;;  %v8410_v2 = vld [vmem:[#allocation157_spill] sm:$0xff] }
 0x2b7   : > { %1237 = vrot.lane.b32.xlu1 %v4473_v38, %s3817_s17  ;;  %1235 = vrot.lane.b32.xlu0 %v8403_v15, %s3817_s17 }
 0x2b8   : > { %v5306_v7 = vpop.permute.xlu2 %1136 }
 0x2b9   : > { %8404 = vst [vmem:[#allocation72_spill] sm:$0xff] %v5306_v7  ;;  %v5308_v14 = vpop.permute.xlu1 %1116  ;;  %v5310_v58 = vpop.permute.xlu0 %1114  ;;  %v3714_v7 = vld [vmem:[%s3901_s9] sm:$0xff] }
 0x2ba   : > { %8405 = vst [vmem:[#allocation73_spill] sm:$0xff] %v5310_v58  ;;  %v8407_v58 = vld [vmem:[#allocation49_spill] sm:$0xff] }
 0x2be   : > { %1245 = vrot.lane.b32.xlu2 %v1182_v8, %s3817_s17  ;;  %v1282_v8 = vsel %vm1281_vm3, %v3714_v7, %v8407_v58 }
 0x2bf   : > { %1243 = vrot.lane.b32.xlu1 %v4906_v9, %s3817_s17  ;;  %1241 = vrot.lane.b32.xlu0 %v4890_v12, %s3817_s17  ;;  %v1315_v46 = vsel %vm1314_vm4, %v1282_v8, %v8408_v44  ;;  %v8409_v9 = vld [vmem:[#allocation124_spill] sm:$0xff] }
 0x2c0   : > { %v5317_v38 = vpop.permute.xlu2 %1142  ;;  %v1348_v12 = vsel %vm1347_vm5, %v1315_v46, %v8409_v9  ;;  %v3715_v8 = vld [vmem:[%s3901_s9 + $0x8] sm:$0xff]  ;;  %v8416_v9 = vld [vmem:[#allocation54_spill] sm:$0xff] }
 0x2c1   : > { %8406 = vst [vmem:[#allocation77_spill] sm:$0xff] %v5317_v38  ;;  %v5320_v27 = vpop.permute.xlu1 %1122  ;;  %v5322_v15 = vpop.permute.xlu0 %1120  ;;  %v1184_v38 = vsel %vm502_vm1, %v1181_v0, %v1183_v55  ;;  %v1381_v61 = vsel %vm1380_vm7, %v1348_v12, %v8410_v2  ;;  %v1283_v12 = vsel %vm1281_vm3, %v3715_v8, %v8416_v9  ;;  %v8417_v2 = vld [vmem:[#allocation95_spill] sm:$0xff] }
 0x2c2   : > { %v1414_v20 = vsel %vm1413_vm6, %v1381_v61, %v4914_v51 }
 0x2c3   : > { %v1447_v7 = vsel %vm1446_vm8, %v1414_v20, %v5090_v34 }
 0x2c4   : > { %v1480_v46 = vsel %vm1479_vm10, %v1447_v7, %v5230_v3  ;;  %v1316_v7 = vsel %vm1314_vm4, %v1283_v12, %v8417_v2  ;;  %v3716_v12 = vld [vmem:[%s3901_s9 + $0x18] sm:$0xff]  ;;  %v8420_v2 = vld [vmem:[#allocation48_spill] sm:$0xff] }
 0x2c7   : > { %1247 = vrot.lane.b32.xlu0 %v1184_v38, %s3817_s17 }
 0x2c8   : > { %v1186_v0 = vpop.permute.xlu2 %1185 }
 0x2c9   : > { %v5341_v44 = vpop.permute.xlu1 %1128  ;;  %v5343_v58 = vpop.permute.xlu0 %1126  ;;  %v1513_v51 = vsel %vm1512_vm9, %v1480_v46, %v1186_v0  ;;  %v8418_v46 = vld [vmem:[#allocation114_spill] sm:$0xff] }
 0x2ca   : > { %3583 = vmatmul.msk.f32.vlgmr.msra.gmra.mxu0 %vm1554_vm11, %v1513_v51  ;;  %v1349_v0 = vsel %vm1347_vm5, %v1316_v7, %v8418_v46  ;;  %v8419_v51 = vld [vmem:[#allocation156_spill] sm:$0xff]  ;;  %v1284_v7 = vsel %vm1281_vm3, %v3716_v12, %v8420_v2  ;;  %v8421_v46 = vld [vmem:[#allocation94_spill] sm:$0xff]  ;;  %v3717_v2 = vld [vmem:[%s3901_s9 + $0x20] sm:$0xff] }
 0x2d1   : > { %v5347_v61 = vpop.permute.xlu1 %1134  ;;  %v5349_v20 = vpop.permute.xlu0 %1132 }
 0x2d2   : > { %8411 = vst [vmem:[#allocation49_spill] sm:$0xff] %v5347_v61  ;;  %v1382_v61 = vsel %vm1380_vm7, %v1349_v0, %v8419_v51  ;;  %v8423_v0 = vld [vmem:[#allocation35_spill] sm:$0xff] }
 0x2d9   : > { %v5351_v34 = vpop.permute.xlu1 %1140  ;;  %v5353_v38 = vpop.permute.xlu0 %1138 }
 0x2da   : > { %8412 = vst [vmem:[#allocation81_spill] sm:$0xff] %v5351_v34  ;;  %v1415_v34 = vsel %vm1413_vm6, %v1382_v61, %v4966_v52  ;;  %v1317_v52 = vsel %vm1314_vm4, %v1284_v7, %v8421_v46  ;;  %v8422_v61 = vld [vmem:[#allocation128_spill] sm:$0xff]  ;;  %v8424_v7 = vld [vmem:[#allocation53_spill] sm:$0xff] }
 0x2db   : > { %8413 = vst [vmem:[#allocation124_spill] sm:$0xff] %v5353_v38  ;;  %v1285_v46 = vsel %vm1281_vm3, %v3717_v2, %v8424_v7  ;;  %v3718_v2 = vld [vmem:[%s3901_s9 + $0x30] sm:$0xff]  ;;  %v8428_v7 = vld [vmem:[#allocation36_spill] sm:$0xff] }
 0x2e1   : > { %v5355_v55 = vpop.permute.xlu1 %1146  ;;  %v5357_v3 = vpop.permute.xlu0 %1144 }
 0x2e2   : > { %8414 = vst [vmem:[#allocation157_spill] sm:$0xff] %v5355_v55  ;;  %v1448_v55 = vsel %vm1446_vm8, %v1415_v34, %v5052_v25  ;;  %v1350_v25 = vsel %vm1347_vm5, %v1317_v52, %v8422_v61  ;;  %v1192_v34 = vpop.permute.xlu2 %1191  ;;  %v8425_v52 = vld [vmem:[#allocation84_spill] sm:$0xff]  ;;  %v8426_v61 = vld [vmem:[#allocation127_spill] sm:$0xff] }
 0x2e3   : > { %8415 = vst [vmem:[#allocation202_spill] sm:$0xff] %v5357_v3  ;;  %v1481_v3 = vsel %vm1479_vm10, %v1448_v55, %v5228_v60  ;;  %v1383_v60 = vsel %vm1380_vm7, %v1350_v25, %v8423_v0  ;;  %v8427_v25 = vld [vmem:[#allocation158_spill] sm:$0xff] }
 0x2e4   : > { %v1416_v55 = vsel %vm1413_vm6, %v1383_v60, %v4964_v50  ;;  %v1318_v50 = vsel %vm1314_vm4, %v1285_v46, %v8425_v52  ;;  %v1286_v46 = vsel %vm1281_vm3, %v3718_v2, %v8428_v7 }
 0x2e9   : > { %v1190_v38 = vpop.permute.xlu1 %1189  ;;  %v1188_v8 = vpop.permute.xlu0 %1187 }
 0x2ea   : > { %v1514_v9 = vsel %vm1512_vm9, %v1481_v3, %v1188_v8  ;;  %v1449_v3 = vsel %vm1446_vm8, %v1416_v55, %v5104_v22  ;;  %v1351_v22 = vsel %vm1347_vm5, %v1318_v50, %v8426_v61  ;;  %v1198_v60 = vpop.permute.xlu2 %1197 }
 0x2eb   : > { %3584 = vmatmul.msk.f32.gmra.mxu0 %vm1554_vm11, %v1514_v9  ;;  %v1482_v51 = vsel %vm1479_vm10, %v1449_v3, %v5190_v47  ;;  %v1384_v47 = vsel %vm1380_vm7, %v1351_v22, %v8427_v25 }
 0x2ec   : > { %v1515_v12 = vsel %vm1512_vm9, %v1482_v51, %v1190_v38  ;;  %v1417_v0 = vsel %vm1413_vm6, %v1384_v47, %v4926_v1  ;;  %v8429_v1 = vld [vmem:[#allocation98_spill] sm:$0xff] }
 0x2ed   : > { %v1450_v38 = vsel %vm1446_vm8, %v1417_v0, %v5102_v21  ;;  %v1319_v52 = vsel %vm1314_vm4, %v1286_v46, %v8429_v1  ;;  %v8430_v21 = vld [vmem:[#allocation117_spill] sm:$0xff]  ;;  %v8435_v1 = vld [vmem:[#allocation151_spill] sm:$0xff] }
 0x2ee   : > { %v1483_v55 = vsel %vm1479_vm10, %v1450_v38, %v5242_v4  ;;  %v1352_v50 = vsel %vm1347_vm5, %v1319_v52, %v8430_v21  ;;  %v8431_v4 = vld [vmem:[#allocation50_spill] sm:$0xff] }
 0x2ef   : > { %v1385_v61 = vsel %vm1380_vm7, %v1352_v50, %v8431_v4 }
 0x2f0   : > { %v1418_v22 = vsel %vm1413_vm6, %v1385_v61, %v4978_v49 }
 0x2f1   : > { %v1196_v8 = vpop.permute.xlu1 %1195  ;;  %v1194_v9 = vpop.permute.xlu0 %1193 }
 0x2f2   : > { %v5429_v47 = vpop.permute.xlu2 %1203 }
 0x2f3   : > { %3585 = vmatmul.msk.f32.gmra.mxu0 %vm1554_vm11, %v1515_v12  ;;  %v1516_v12 = vsel %vm1512_vm9, %v1483_v55, %v1192_v34  ;;  %v1451_v34 = vsel %vm1446_vm8, %v1418_v22, %v5064_v36  ;;  %v3719_v55 = vld [vmem:[%s3901_s9 + $0x38] sm:$0xff]  ;;  %v8433_v36 = vld [vmem:[#allocation97_spill] sm:$0xff]  ;;  %v3720_v22 = vld [vmem:[%s3901_s9 + $0x48] sm:$0xff] }
 0x2f4   : > { %v1484_v25 = vsel %vm1479_vm10, %v1451_v34, %v5240_v33  ;;  %v8434_v33 = vld [vmem:[#allocation131_spill] sm:$0xff]  ;;  %v8436_v34 = vld [vmem:[#allocation60_spill] sm:$0xff] }
 0x2f5   : > { %v1517_v38 = vsel %vm1512_vm9, %v1484_v25, %v1194_v9  ;;  %v1288_v25 = vsel %vm1281_vm3, %v3720_v22, %v8436_v34 }
 0x2f9   : > { %v5408_v3 = vpop.permute.xlu1 %1201  ;;  %v5410_v51 = vpop.permute.xlu0 %1199 }
 0x2fb   : > { %3586 = vmatmul.msk.f32.gmra.mxu0 %vm1554_vm11, %v1516_v12  ;;  %v8432_v12 = vld [vmem:[#allocation39_spill] sm:$0xff] }
 0x2fc   : > { %v1287_v2 = vsel %vm1281_vm3, %v3719_v55, %v8432_v12  ;;  %v8437_v55 = vld [vmem:[#allocation75_spill] sm:$0xff] }
 0x2fd   : > { %v1320_v49 = vsel %vm1314_vm4, %v1287_v2, %v8433_v36  ;;  %v5461_v2 = vpop.permute.xlu2 %1209 }
 0x2fe   : > { %v1353_v46 = vsel %vm1347_vm5, %v1320_v49, %v8434_v33  ;;  %v8441_v33 = vld [vmem:[#allocation129_spill] sm:$0xff] }
 0x2ff   : > { %v1386_v52 = vsel %vm1380_vm7, %v1353_v46, %v8435_v1 }
 0x300   : > { %v1419_v9 = vsel %vm1413_vm6, %v1386_v52, %v4976_v63  ;;  %v8442_v52 = vld [vmem:[#allocation161_spill] sm:$0xff] }
 0x301   : > { %v5431_v0 = vpop.permute.xlu0 %1205  ;;  %v5437_v7 = vpop.permute.xlu1 %1207  ;;  %v1452_v21 = vsel %vm1446_vm8, %v1419_v9, %v5116_v28  ;;  %v8438_v28 = vld [vmem:[#allocation87_spill] sm:$0xff] }
 0x302   : > { %v1485_v50 = vsel %vm1479_vm10, %v1452_v21, %v5202_v42  ;;  %v1321_v63 = vsel %vm1314_vm4, %v1288_v25, %v8438_v28  ;;  %v8439_v42 = vld [vmem:[#allocation110_spill] sm:$0xff] }
 0x303   : > { %3587 = vmatmul.msk.f32.gmra.mxu0 %vm1554_vm11, %v1517_v38  ;;  %v1518_v61 = vsel %vm1512_vm9, %v1485_v50, %v1196_v8  ;;  %v3721_v38 = vld [vmem:[%s3901_s9 + $0xc0] sm:$0xff]  ;;  %v8440_v8 = vld [vmem:[#allocation130_spill] sm:$0xff] }
 0x304   : > { %v1298_v12 = vsel %vm1281_vm3, %v3721_v38, %v8437_v55  ;;  %v1354_v49 = vsel %vm1347_vm5, %v1321_v63, %v8440_v8  ;;  %v8443_v21 = vld [vmem:[#allocation166_spill] sm:$0xff]  ;;  %v3722_v63 = vld [vmem:[%s3901_s9 + $0xc8] sm:$0xff] }
 0x305   : > { %v1331_v36 = vsel %vm1314_vm4, %v1298_v12, %v8439_v42  ;;  %v1387_v9 = vsel %vm1380_vm7, %v1354_v49, %v8442_v52  ;;  %v8444_v42 = vld [vmem:[#allocation58_spill] sm:$0xff]  ;;  %v8448_v49 = vld [vmem:[#allocation120_spill] sm:$0xff] }
 0x306   : > { %v1364_v46 = vsel %vm1347_vm5, %v1331_v36, %v8441_v33  ;;  %v3723_v36 = vld [vmem:[%s3901_s9 + $0x50] sm:$0xff] }
 0x307   : > { %v1397_v50 = vsel %vm1380_vm7, %v1364_v46, %v8443_v21  ;;  %v8449_v46 = vld [vmem:[#allocation143_spill] sm:$0xff]  ;;  %v8450_v21 = vld [vmem:[#allocation160_spill] sm:$0xff] }
 0x308   : > { %v1430_v22 = vsel %vm1413_vm6, %v1397_v50, %v5026_v43  ;;  %v1299_v43 = vsel %vm1281_vm3, %v3722_v63, %v8444_v42  ;;  %v3724_v42 = vld [vmem:[%s3901_s9 + $0x60] sm:$0xff] }
 0x309   : > { %v5452_v4 = vpop.permute.xlu0 %1211  ;;  %v5472_v1 = vpop.permute.xlu1 %1213  ;;  %v1463_v25 = vsel %vm1446_vm8, %v1430_v22, %v5112_v11  ;;  %v8446_v11 = vld [vmem:[#allocation101_spill] sm:$0xff] }
 0x30a   : > { %v1496_v55 = vsel %vm1479_vm10, %v1463_v25, %v5308_v14  ;;  %v8447_v14 = vld [vmem:[#allocation109_spill] sm:$0xff] }
 0x30b   : > { %3588 = vmatmul.msk.f32.gmra.mxu0 %vm1554_vm11, %v1518_v61  ;;  %v1420_v61 = vsel %vm1413_vm6, %v1387_v9, %v4938_v24  ;;  %v5508_v9 = vpop.permute.xlu2 %1215 }
 0x30c   : > { %v1453_v34 = vsel %vm1446_vm8, %v1420_v61, %v5114_v5  ;;  %v8445_v5 = vld [vmem:[#allocation59_spill] sm:$0xff] }
 0x30d   : > { %v1486_v38 = vsel %vm1479_vm10, %v1453_v34, %v5257_v48  ;;  %v1289_v8 = vsel %vm1281_vm3, %v3723_v36, %v8445_v5  ;;  %v8451_v61 = vld [vmem:[#allocation159_spill] sm:$0xff]  ;;  %v3725_v36 = vld [vmem:[%s3901_s9 + $0xd8] sm:$0xff] }
 0x30e   : > { %v1519_v28 = vsel %vm1512_vm9, %v1486_v38, %v1198_v60  ;;  %v1322_v48 = vsel %vm1314_vm4, %v1289_v8, %v8446_v11  ;;  %v1332_v60 = vsel %vm1314_vm4, %v1299_v43, %v8447_v14  ;;  %v8456_v8 = vld [vmem:[#allocation134_spill] sm:$0xff] }
 0x30f   : > { %v1355_v33 = vsel %vm1347_vm5, %v1322_v48, %v8448_v49  ;;  %v1365_v52 = vsel %vm1347_vm5, %v1332_v60, %v8449_v46  ;;  %v8457_v48 = vld [vmem:[#allocation142_spill] sm:$0xff] }
 0x310   : > { %v1388_v50 = vsel %vm1380_vm7, %v1355_v33, %v8450_v21  ;;  %v1398_v22 = vsel %vm1380_vm7, %v1365_v52, %v8451_v61  ;;  %v8458_v60 = vld [vmem:[#allocation46_spill] sm:$0xff] }
 0x311   : > { %v1218_v12 = vpop.permute.xlu0 %1217  ;;  %v1421_v34 = vsel %vm1413_vm6, %v1388_v50, %v4990_v30  ;;  %v1431_v25 = vsel %vm1413_vm6, %v1398_v22, %v5024_v17  ;;  %v1220_v38 = vpop.permute.xlu1 %1219  ;;  %v8452_v17 = vld [vmem:[#allocation43_spill] sm:$0xff] }
 0x312   : > { %v1529_v24 = vsel %vm1512_vm9, %v1496_v55, %v1218_v12  ;;  %v1454_v55 = vsel %vm1446_vm8, %v1421_v34, %v5076_v41  ;;  %v1464_v12 = vsel %vm1446_vm8, %v1431_v25, %v5171_v62  ;;  %v1290_v43 = vsel %vm1281_vm3, %v3724_v42, %v8452_v17  ;;  %v8453_v41 = vld [vmem:[#allocation80_spill] sm:$0xff]  ;;  %v8465_v42 = vld [vmem:[#allocation162_spill] sm:$0xff] }
 0x313   : > { %3589 = vmatmul.msk.f32.gmra.mxu0 %vm1554_vm11, %v1519_v28  ;;  %3599 = vmatmul.msk.f32.vlgmr.msra.gmra.mxu2 %vm1554_vm11, %v1529_v24  ;;  %v1487_v28 = vsel %vm1479_vm10, %v1454_v55, %v5255_v16  ;;  %v1497_v24 = vsel %vm1479_vm10, %v1464_v12, %v5253_v40  ;;  %v1300_v5 = vsel %vm1281_vm3, %v3725_v36, %v8453_v41  ;;  %v8454_v62 = vld [vmem:[#allocation100_spill] sm:$0xff]  ;;  %v8455_v40 = vld [vmem:[#allocation99_spill] sm:$0xff]  ;;  %v1222_v21 = vpop.permute.xlu2 %1221 }
 0x314   : > { %v1520_v63 = vsel %vm1512_vm9, %v1487_v28, %v5410_v51  ;;  %v1530_v30 = vsel %vm1512_vm9, %v1497_v24, %v1220_v38  ;;  %v1323_v16 = vsel %vm1314_vm4, %v1290_v43, %v8454_v62  ;;  %v1333_v51 = vsel %vm1314_vm4, %v1300_v5, %v8455_v40  ;;  %v3726_v25 = vld [vmem:[%s3901_s9 + $0x68] sm:$0xff]  ;;  %v3727_v55 = vld [vmem:[%s3901_s9 + $0xe0] sm:$0xff]  ;;  %v8463_v28 = vld [vmem:[#allocation133_spill] sm:$0xff] }
 0x315   : > { %v1356_v11 = vsel %vm1347_vm5, %v1323_v16, %v8456_v8  ;;  %v1366_v14 = vsel %vm1347_vm5, %v1333_v51, %v8457_v48  ;;  %v3728_v8 = vld [vmem:[%s3901_s9 + $0xf0] sm:$0xff]  ;;  %v3729_v48 = vld [vmem:[%s3901_s9 + $0x78] sm:$0xff] }
 0x316   : > { %v1389_v49 = vsel %vm1380_vm7, %v1356_v11, %v8458_v60  ;;  %v1399_v33 = vsel %vm1380_vm7, %v1366_v14, %v4903_v29  ;;  %v8470_v60 = vld [vmem:[#allocation123_spill] sm:$0xff] }
 0x317   : > { %v1422_v46 = vsel %vm1413_vm6, %v1389_v49, %v4988_v23  ;;  %v1432_v52 = vsel %vm1413_vm6, %v1399_v33, %v4986_v19  ;;  %v8459_v19 = vld [vmem:[#allocation65_spill] sm:$0xff]  ;;  %v8471_v33 = vld [vmem:[#allocation148_spill] sm:$0xff] }
 0x318   : > { %v1455_v50 = vsel %vm1446_vm8, %v1422_v46, %v5131_v6  ;;  %v1465_v61 = vsel %vm1446_vm8, %v1432_v52, %v5169_v54  ;;  %v1291_v38 = vsel %vm1281_vm3, %v3726_v25, %v8459_v19  ;;  %v8460_v6 = vld [vmem:[#allocation79_spill] sm:$0xff]  ;;  %v8461_v54 = vld [vmem:[#allocation90_spill] sm:$0xff]  ;;  %v8472_v52 = vld [vmem:[#allocation61_spill] sm:$0xff] }
 0x319   : > { %v1488_v22 = vsel %vm1479_vm10, %v1455_v50, %v5214_v57  ;;  %v1498_v34 = vsel %vm1479_vm10, %v1465_v61, %v5322_v15  ;;  %v1301_v12 = vsel %vm1281_vm3, %v3727_v55, %v8460_v6  ;;  %v1324_v57 = vsel %vm1314_vm4, %v1291_v38, %v8461_v54  ;;  %v8462_v15 = vld [vmem:[#allocation113_spill] sm:$0xff]  ;;  %v1224_v5 = vpop.permute.xlu0 %1223  ;;  %v8473_v50 = vld [vmem:[#allocation68_spill] sm:$0xff]  ;;  %v3730_v6 = vld [vmem:[%s3901_s9 + $0x80] sm:$0xff] }
 0x31a   : > { %v1521_v29 = vsel %vm1512_vm9, %v1488_v22, %v5408_v3  ;;  %v1531_v23 = vsel %vm1512_vm9, %v1498_v34, %v1222_v21  ;;  %v1334_v3 = vsel %vm1314_vm4, %v1301_v12, %v8462_v15  ;;  %v1357_v24 = vsel %vm1347_vm5, %v1324_v57, %v8463_v28  ;;  %v3731_v54 = vld [vmem:[%s3901_s9 + $0xf8] sm:$0xff]  ;;  %v8478_v15 = vld [vmem:[#allocation137_spill] sm:$0xff]  ;;  %v8479_v28 = vld [vmem:[#allocation147_spill] sm:$0xff] }
 0x31b   : > { %3590 = vmatmul.msk.f32.gmra.mxu0 %vm1554_vm11, %v1520_v63  ;;  %3600 = vmatmul.msk.f32.gmra.mxu2 %vm1554_vm11, %v1530_v30  ;;  %v8464_v63 = vld [vmem:[#allocation132_spill] sm:$0xff]  ;;  %v1390_v17 = vsel %vm1380_vm7, %v1357_v24, %v8465_v42 }
 0x31c   : > { %v1367_v30 = vsel %vm1347_vm5, %v1334_v3, %v8464_v63  ;;  %v1423_v36 = vsel %vm1413_vm6, %v1390_v17, %v4950_v37  ;;  %v8480_v63 = vld [vmem:[#allocation155_spill] sm:$0xff] }
 0x31d   : > { %v1400_v43 = vsel %vm1380_vm7, %v1367_v30, %v4901_v10  ;;  %v1456_v62 = vsel %vm1446_vm8, %v1423_v36, %v5129_v26  ;;  %v8467_v26 = vld [vmem:[#allocation64_spill] sm:$0xff]  ;;  %v8481_v17 = vld [vmem:[#allocation179_spill] sm:$0xff]  ;;  %v8482_v36 = vld [vmem:[#allocation178_spill] sm:$0xff] }
 0x31e   : > { %v1433_v41 = vsel %vm1413_vm6, %v1400_v43, %v5044_v45  ;;  %v1489_v40 = vsel %vm1479_vm10, %v1456_v62, %v5283_v59  ;;  %v8466_v45 = vld [vmem:[#allocation63_spill] sm:$0xff]  ;;  %v1292_v14 = vsel %vm1281_vm3, %v3729_v48, %v8467_v26 }
 0x31f   : > { %v1466_v16 = vsel %vm1446_vm8, %v1433_v41, %v5127_v35  ;;  %v1522_v10 = vsel %vm1512_vm9, %v1489_v40, %v5429_v47  ;;  %v1302_v11 = vsel %vm1281_vm3, %v3728_v8, %v8466_v45  ;;  %v8468_v35 = vld [vmem:[#allocation104_spill] sm:$0xff]  ;;  %v8483_v62 = vld [vmem:[#allocation195_spill] sm:$0xff]  ;;  %v8484_v40 = vld [vmem:[#allocation201_spill] sm:$0xff] }
 0x320   : > { %v1499_v51 = vsel %vm1479_vm10, %v1466_v16, %v5320_v27  ;;  %v1325_v59 = vsel %vm1314_vm4, %v1292_v14, %v8468_v35  ;;  %v8469_v27 = vld [vmem:[#allocation112_spill] sm:$0xff]  ;;  %v8486_v48 = vld [vmem:[#allocation71_spill] sm:$0xff]  ;;  %v8487_v35 = vld [vmem:[#allocation82_spill] sm:$0xff] }
 0x321   : > { %v1532_v37 = vsel %vm1512_vm9, %v1499_v51, %v1224_v5  ;;  %v1335_v47 = vsel %vm1314_vm4, %v1302_v11, %v8469_v27  ;;  %v1358_v49 = vsel %vm1347_vm5, %v1325_v59, %v8470_v60  ;;  %v1228_v5 = vpop.permute.xlu2 %1227  ;;  %v3732_v11 = vld [vmem:[%s3901_s9 + $0x90] sm:$0xff]  ;;  %v3733_v14 = vld [vmem:[%s3901_s9 + $0x108] sm:$0xff] }
 0x322   : > { %v1368_v46 = vsel %vm1347_vm5, %v1335_v47, %v8471_v33  ;;  %v1391_v21 = vsel %vm1380_vm7, %v1358_v49, %v8472_v52  ;;  %v1294_v26 = vsel %vm1281_vm3, %v3732_v11, %v8486_v48  ;;  %v1304_v59 = vsel %vm1281_vm3, %v3733_v14, %v8487_v35  ;;  %v8488_v27 = vld [vmem:[#allocation93_spill] sm:$0xff]  ;;  %v8489_v47 = vld [vmem:[#allocation116_spill] sm:$0xff]  ;;  %v8491_v33 = vld [vmem:[#allocation135_spill] sm:$0xff] }
 0x323   : > { %3591 = vmatmul.msk.f32.gmra.mxu0 %vm1554_vm11, %v1521_v29  ;;  %3601 = vmatmul.msk.f32.gmra.mxu2 %vm1554_vm11, %v1531_v23  ;;  %v1401_v61 = vsel %vm1380_vm7, %v1368_v46, %v8473_v50  ;;  %v1424_v22 = vsel %vm1413_vm6, %v1391_v21, %v5002_v56  ;;  %v1226_v29 = vpop.permute.xlu1 %1225  ;;  %v8490_v60 = vld [vmem:[#allocation136_spill] sm:$0xff]  ;;  %v8493_v50 = vld [vmem:[#allocation169_spill] sm:$0xff] }
 0x324   : > { %v1434_v34 = vsel %vm1413_vm6, %v1401_v61, %v5042_v31  ;;  %v1457_v23 = vsel %vm1446_vm8, %v1424_v22, %v5088_v13  ;;  %v8474_v31 = vld [vmem:[#allocation47_spill] sm:$0xff]  ;;  %v8492_v52 = vld [vmem:[#allocation164_spill] sm:$0xff] }
 0x325   : > { %v1467_v25 = vsel %vm1446_vm8, %v1434_v34, %v5182_v18  ;;  %v1490_v19 = vsel %vm1479_vm10, %v1457_v23, %v5281_v39  ;;  %v1293_v12 = vsel %vm1281_vm3, %v3730_v6, %v8474_v31  ;;  %v8475_v13 = vld [vmem:[#allocation83_spill] sm:$0xff]  ;;  %v8477_v39 = vld [vmem:[#allocation102_spill] sm:$0xff]  ;;  %v8494_v22 = vld [vmem:[#allocation176_spill] sm:$0xff] }
 0x326   : > { %v1500_v38 = vsel %vm1479_vm10, %v1467_v25, %v5279_v53  ;;  %v1523_v55 = vsel %vm1512_vm9, %v1490_v19, %v5431_v0  ;;  %v1303_v57 = vsel %vm1281_vm3, %v3731_v54, %v8475_v13  ;;  %v8476_v18 = vld [vmem:[#allocation103_spill] sm:$0xff]  ;;  %v1230_v25 = vpop.permute.xlu0 %1229  ;;  %v8496_v19 = vld [vmem:[#allocation194_spill] sm:$0xff]  ;;  %v8512_v48 = vld [vmem:[#allocation56_spill] sm:$0xff] }
 0x327   : > { %v1533_v56 = vsel %vm1512_vm9, %v1500_v38, %v1226_v29  ;;  %v1326_v53 = vsel %vm1314_vm4, %v1293_v12, %v8476_v18  ;;  %v1336_v0 = vsel %vm1314_vm4, %v1303_v57, %v8477_v39  ;;  %v8495_v29 = vld [vmem:[#allocation186_spill] sm:$0xff]  ;;  %v8498_v6 = vld [vmem:[#allocation67_spill] sm:$0xff]  ;;  %v3734_v57 = vld [vmem:[%s3901_s9 + $0x110] sm:$0xff] }
 0x328   : > { %v1359_v3 = vsel %vm1347_vm5, %v1326_v53, %v8478_v15  ;;  %v1369_v24 = vsel %vm1347_vm5, %v1336_v0, %v8479_v28  ;;  %v8499_v18 = vld [vmem:[#allocation69_spill] sm:$0xff]  ;;  %v3735_v39 = vld [vmem:[%s3901_s9 + $0x98] sm:$0xff]  ;;  %v8502_v28 = vld [vmem:[#allocation115_spill] sm:$0xff] }
 0x329   : > { %v1392_v30 = vsel %vm1380_vm7, %v1359_v3, %v8480_v63  ;;  %v1402_v42 = vsel %vm1380_vm7, %v1369_v24, %v4918_v32  ;;  %v1305_v53 = vsel %vm1281_vm3, %v3734_v57, %v8499_v18  ;;  %v8500_v0 = vld [vmem:[#allocation70_spill] sm:$0xff]  ;;  %v8501_v3 = vld [vmem:[#allocation107_spill] sm:$0xff] }
 0x32a   : > { %v1425_v43 = vsel %vm1413_vm6, %v1392_v30, %v8481_v17  ;;  %v1435_v41 = vsel %vm1413_vm6, %v1402_v42, %v8482_v36  ;;  %v1295_v15 = vsel %vm1281_vm3, %v3735_v39, %v8500_v0  ;;  %v8503_v24 = vld [vmem:[#allocation126_spill] sm:$0xff]  ;;  %v8505_v17 = vld [vmem:[#allocation163_spill] sm:$0xff]  ;;  %v3738_v0 = vld [vmem:[%s3901_s9 + $0xb0] sm:$0xff] }
 0x32b   : > { %3592 = vmatmul.msk.f32.gmra.mxu0 %vm1554_vm11, %v1522_v10  ;;  %3602 = vmatmul.msk.f32.gmra.mxu2 %vm1554_vm11, %v1532_v37  ;;  %v1458_v16 = vsel %vm1446_vm8, %v1425_v43, %v8483_v62  ;;  %v1468_v51 = vsel %vm1446_vm8, %v1435_v41, %v8484_v40  ;;  %v8485_v10 = vld [vmem:[#allocation51_spill] sm:$0xff]  ;;  %v8504_v30 = vld [vmem:[#allocation150_spill] sm:$0xff] }
 0x32c   : > { %v1491_v37 = vsel %vm1479_vm10, %v1458_v16, %v8485_v10  ;;  %v1501_v8 = vsel %vm1479_vm10, %v1468_v51, %v5343_v58  ;;  %v1327_v58 = vsel %vm1314_vm4, %v1294_v26, %v8488_v27  ;;  %v8506_v36 = vld [vmem:[#allocation66_spill] sm:$0xff]  ;;  %v8508_v16 = vld [vmem:[#allocation185_spill] sm:$0xff]  ;;  %v1232_v51 = vpop.permute.xlu1 %1231  ;;  %v8509_v10 = vld [vmem:[#allocation192_spill] sm:$0xff] }
 0x32d   : > { %v1524_v32 = vsel %vm1512_vm9, %v1491_v37, %v5437_v7  ;;  %v1534_v45 = vsel %vm1512_vm9, %v1501_v8, %v1228_v5  ;;  %v1337_v7 = vsel %vm1314_vm4, %v1304_v59, %v8489_v47  ;;  %v1360_v49 = vsel %vm1347_vm5, %v1327_v58, %v8490_v60  ;;  %v8507_v5 = vld [vmem:[#allocation182_spill] sm:$0xff]  ;;  %v8510_v8 = vld [vmem:[#allocation37_spill] sm:$0xff]  ;;  %v3736_v59 = vld [vmem:[%s3901_s9 + $0xa8] sm:$0xff] }
 0x32e   : > { %v1370_v46 = vsel %vm1347_vm5, %v1337_v7, %v8491_v33  ;;  %v1393_v21 = vsel %vm1380_vm7, %v1360_v49, %v8492_v52  ;;  %v8513_v27 = vld [vmem:[#allocation52_spill] sm:$0xff]  ;;  %v3737_v47 = vld [vmem:[%s3901_s9 + $0x120] sm:$0xff]  ;;  %v8514_v7 = vld [vmem:[#allocation86_spill] sm:$0xff] }
 0x32f   : > { %v1403_v61 = vsel %vm1380_vm7, %v1370_v46, %v8493_v50  ;;  %v1426_v34 = vsel %vm1413_vm6, %v1393_v21, %v8494_v22  ;;  %v1296_v58 = vsel %vm1281_vm3, %v3736_v59, %v8513_v27  ;;  %v1306_v60 = vsel %vm1281_vm3, %v3737_v47, %v8514_v7  ;;  %v8515_v49 = vld [vmem:[#allocation106_spill] sm:$0xff]  ;;  %v8516_v46 = vld [vmem:[#allocation105_spill] sm:$0xff]  ;;  %v8517_v52 = vld [vmem:[#allocation140_spill] sm:$0xff] }
 0x330   : > { %v1436_v23 = vsel %vm1413_vm6, %v1403_v61, %v8495_v29  ;;  %v1459_v38 = vsel %vm1446_vm8, %v1426_v34, %v8496_v19  ;;  %v1329_v33 = vsel %vm1314_vm4, %v1296_v58, %v8515_v49  ;;  %v8518_v50 = vld [vmem:[#allocation149_spill] sm:$0xff]  ;;  %v8520_v29 = vld [vmem:[#allocation171_spill] sm:$0xff]  ;;  %v3740_v58 = vld [vmem:[%s3901_s9 + $0x138] sm:$0xff] }
 0x331   : > { %v1492_v31 = vsel %vm1479_vm10, %v1459_v38, %v8498_v6  ;;  %v1362_v21 = vsel %vm1347_vm5, %v1329_v33, %v8517_v52  ;;  %v8519_v22 = vld [vmem:[#allocation57_spill] sm:$0xff]  ;;  %v8522_v38 = vld [vmem:[#allocation180_spill] sm:$0xff]  ;;  %v8523_v6 = vld [vmem:[#allocation198_spill] sm:$0xff] }
 0x332   : > { %v1525_v54 = vsel %vm1512_vm9, %v1492_v31, %v5461_v2  ;;  %v1338_v2 = vsel %vm1314_vm4, %v1305_v53, %v8502_v28  ;;  %v1395_v34 = vsel %vm1380_vm7, %v1362_v21, %v8519_v22  ;;  %v8527_v28 = vld [vmem:[#allocation85_spill] sm:$0xff]  ;;  %v8540_v47 = vld [vmem:[#allocation74_spill] sm:$0xff]  ;;  %v8544_v52 = vld [vmem:[#allocation187_spill] sm:$0xff] }
 0x333   : > { %3593 = vmatmul.msk.f32.gmra.mxu0 %vm1554_vm11, %v1523_v55  ;;  %3603 = vmatmul.msk.f32.gmra.mxu2 %vm1554_vm11, %v1533_v56  ;;  %v8497_v55 = vld [vmem:[#allocation193_spill] sm:$0xff]  ;;  %v1371_v42 = vsel %vm1347_vm5, %v1338_v2, %v8504_v30  ;;  %v8530_v30 = vld [vmem:[#allocation139_spill] sm:$0xff]  ;;  %v1308_v7 = vsel %vm1281_vm3, %v3740_v58, %v8540_v47 }
 0x334   : > { %v1469_v56 = vsel %vm1446_vm8, %v1436_v23, %v8497_v55  ;;  %v1404_v41 = vsel %vm1380_vm7, %v1371_v42, %v8506_v36  ;;  %v8532_v36 = vld [vmem:[#allocation167_spill] sm:$0xff]  ;;  %v8542_v33 = vld [vmem:[#allocation153_spill] sm:$0xff] }
 0x335   : > { %v1502_v12 = vsel %vm1479_vm10, %v1469_v56, %v5341_v44  ;;  %v1328_v44 = vsel %vm1314_vm4, %v1295_v15, %v8501_v3  ;;  %v1437_v40 = vsel %vm1413_vm6, %v1404_v41, %v8508_v16  ;;  %v1234_v56 = vpop.permute.xlu2 %1233  ;;  %v8526_v15 = vld [vmem:[#allocation76_spill] sm:$0xff]  ;;  %v8534_v16 = vld [vmem:[#allocation177_spill] sm:$0xff] }
 0x336   : > { %v1535_v13 = vsel %vm1512_vm9, %v1502_v12, %v1230_v25  ;;  %v1361_v63 = vsel %vm1347_vm5, %v1328_v44, %v8503_v24  ;;  %v8521_v25 = vld [vmem:[#allocation181_spill] sm:$0xff]  ;;  %v8524_v12 = vld [vmem:[#allocation42_spill] sm:$0xff]  ;;  %v1297_v3 = vsel %vm1281_vm3, %v3738_v0, %v8526_v15  ;;  %v3739_v44 = vld [vmem:[%s3901_s9 + $0x128] sm:$0xff] }
 0x337   : > { %v1394_v43 = vsel %vm1380_vm7, %v1361_v63, %v8505_v17  ;;  %v1428_v19 = vsel %vm1413_vm6, %v1395_v34, %v8521_v25  ;;  %v1307_v2 = vsel %vm1281_vm3, %v3739_v44, %v8527_v28  ;;  %v8528_v24 = vld [vmem:[#allocation96_spill] sm:$0xff]  ;;  %v8529_v63 = vld [vmem:[#allocation119_spill] sm:$0xff]  ;;  %v8531_v17 = vld [vmem:[#allocation138_spill] sm:$0xff] }
 0x338   : > { %v1427_v62 = vsel %vm1413_vm6, %v1394_v43, %v8507_v5  ;;  %v1461_v31 = vsel %vm1446_vm8, %v1428_v19, %v8523_v6  ;;  %v8533_v5 = vld [vmem:[#allocation170_spill] sm:$0xff]  ;;  %v5829_v25 = vld [vmem:[%s7867_s2] ss:$0 sm:$0xff]  ;;  %v8548_v6 = vld [vmem:[#allocation108_spill] sm:$0xff] }
 0x339   : > { %v1460_v37 = vsel %vm1446_vm8, %v1427_v62, %v8509_v10  ;;  %v8552_v15 = vld [vmem:[#allocation38_spill] sm:$0xff]  ;;  %v8553_v28 = vld [vmem:[#allocation124_spill] sm:$0xff]  ;;  %v8562_v58 = vld [vmem:[#allocation81_spill] sm:$0xff] }
 0x33b   : > { %3594 = vmatmul.msk.f32.gmra.mxu0 %vm1554_vm11, %v1524_v32  ;;  %3604 = vmatmul.msk.f32.gmra.mxu2 %vm1554_vm11, %v1534_v45  ;;  %v1470_v32 = vsel %vm1446_vm8, %v1437_v40, %v8510_v8  ;;  %v8511_v45 = vld [vmem:[#allocation62_spill] sm:$0xff]  ;;  %v8536_v8 = vld [vmem:[#allocation197_spill] sm:$0xff] }
 0x33c   : > { %v1493_v11 = vsel %vm1479_vm10, %v1460_v37, %v8511_v45  ;;  %v1503_v26 = vsel %vm1479_vm10, %v1470_v32, %v8512_v48  ;;  %v1236_v37 = vpop.permute.xlu0 %1235  ;;  %v8537_v45 = vld [vmem:[#allocation196_spill] sm:$0xff]  ;;  %v8538_v48 = vld [vmem:[#allocation73_spill] sm:$0xff] }
 0x33d   : > { %v1526_v14 = vsel %vm1512_vm9, %v1493_v11, %v5452_v4  ;;  %v1536_v35 = vsel %vm1512_vm9, %v1503_v26, %v1232_v51  ;;  %v1339_v4 = vsel %vm1314_vm4, %v1306_v60, %v8516_v46  ;;  %v8535_v51 = vld [vmem:[#allocation188_spill] sm:$0xff]  ;;  %v8541_v60 = vld [vmem:[#allocation118_spill] sm:$0xff]  ;;  %v1240_v0 = vpop.permute.xlu2 %1239 }
 0x33e   : > { %v1372_v61 = vsel %vm1347_vm5, %v1339_v4, %v8518_v50  ;;  %v1341_v49 = vsel %vm1314_vm4, %v1308_v7, %v8541_v60  ;;  %v8543_v4 = vld [vmem:[#allocation165_spill] sm:$0xff]  ;;  %v1238_v50 = vpop.permute.xlu1 %1237 }
 0x33f   : > { %v1405_v23 = vsel %vm1380_vm7, %v1372_v61, %v8520_v29  ;;  %v1374_v46 = vsel %vm1347_vm5, %v1341_v49, %v8542_v33  ;;  %v8545_v61 = vld [vmem:[#allocation41_spill] sm:$0xff]  ;;  %v8546_v29 = vld [vmem:[#allocation72_spill] sm:$0xff] }
 0x340   : > { %v1438_v55 = vsel %vm1413_vm6, %v1405_v23, %v8522_v38  ;;  %v3741_v38 = vld [vmem:[%s3901_s9 + $0x140] sm:$0xff] }
 0x343   : > { %3595 = vmatmul.msk.f32.gmra.mxu0 %vm1554_vm11, %v1525_v54  ;;  %3605 = vmatmul.msk.f32.gmra.mxu2 %vm1554_vm11, %v1535_v13  ;;  %v1471_v54 = vsel %vm1446_vm8, %v1438_v55, %v8524_v12  ;;  %v8525_v13 = vld [vmem:[#allocation55_spill] sm:$0xff]  ;;  %v8547_v55 = vld [vmem:[#allocation89_spill] sm:$0xff]  ;;  %v8549_v12 = vld [vmem:[#allocation152_spill] sm:$0xff] }
 0x344   : > { %v1494_v57 = vsel %vm1479_vm10, %v1461_v31, %v8525_v13  ;;  %v1504_v18 = vsel %vm1479_vm10, %v1471_v54, %v5349_v20  ;;  %v1330_v20 = vsel %vm1314_vm4, %v1297_v3, %v8528_v24 }
 0x345   : > { %v1527_v53 = vsel %vm1512_vm9, %v1494_v57, %v5472_v1  ;;  %v1537_v39 = vsel %vm1512_vm9, %v1504_v18, %v1234_v56  ;;  %v1340_v1 = vsel %vm1314_vm4, %v1307_v2, %v8529_v63  ;;  %v1363_v42 = vsel %vm1347_vm5, %v1330_v20, %v8530_v30  ;;  %v8550_v57 = vld [vmem:[#allocation173_spill] sm:$0xff] }
 0x346   : > { %v1373_v43 = vsel %vm1347_vm5, %v1340_v1, %v8531_v17  ;;  %v1396_v41 = vsel %vm1380_vm7, %v1363_v42, %v8532_v36  ;;  %v1309_v56 = vsel %vm1281_vm3, %v3741_v38, %v8547_v55  ;;  %v3742_v63 = vld [vmem:[%s3901_s9 + $0x150] sm:$0xff]  ;;  %v8554_v1 = vld [vmem:[#allocation88_spill] sm:$0xff]  ;;  %v8555_v17 = vld [vmem:[#allocation122_spill] sm:$0xff]  ;;  %v1244_v38 = vpop.permute.xlu1 %1243 }
 0x347   : > { %v1406_v62 = vsel %vm1380_vm7, %v1373_v43, %v8533_v5  ;;  %v1429_v40 = vsel %vm1413_vm6, %v1396_v41, %v8534_v16  ;;  %v1672_v34 = vpop.f32.mrf.mxu0  ;;  %v1342_v31 = vsel %vm1314_vm4, %v1309_v56, %v8548_v6  ;;  %v1310_v30 = vsel %vm1281_vm3, %v3742_v63, %v8554_v1  ;;  %v8556_v41 = vld [vmem:[#allocation141_spill] sm:$0xff]  ;;  %v8577_v1 = vld [vmem:[#allocation184_spill] sm:$0xff] }
 0x348   : > { %v1439_v10 = vsel %vm1413_vm6, %v1406_v62, %v8535_v51  ;;  %v1462_v32 = vsel %vm1446_vm8, %v1429_v40, %v8536_v8  ;;  %v1375_v54 = vsel %vm1347_vm5, %v1342_v31, %v8549_v12  ;;  %v1673_v13 = vadd.f32 %v5829_v25, %v1672_v34  ;;  %v8557_v62 = vld [vmem:[#allocation172_spill] sm:$0xff]  ;;  %v8559_v8 = vld [vmem:[#allocation199_spill] sm:$0xff]  ;;  %v8571_v55 = vld [vmem:[#allocation45_spill] sm:$0xff] }
 0x349   : > { %v1472_v11 = vsel %vm1446_vm8, %v1439_v10, %v8537_v45  ;;  %v1495_v26 = vsel %vm1479_vm10, %v1462_v32, %v8538_v48  ;;  %v1408_v18 = vsel %vm1380_vm7, %v1375_v54, %v8550_v57  ;;  %v1343_v43 = vsel %vm1314_vm4, %v1310_v30, %v8555_v17  ;;  %v8558_v10 = vld [vmem:[#allocation190_spill] sm:$0xff]  ;;  %v1242_v45 = vpop.permute.xlu0 %1241  ;;  %v8569_v34 = vld [vmem:[#allocation168_spill] sm:$0xff]  ;;  %v8572_v31 = vld [vmem:[#allocation77_spill] sm:$0xff] }
 0x34a   : > { %v1528_v59 = vsel %vm1512_vm9, %v1495_v26, %v5508_v9  ;;  %v1407_v9 = vsel %vm1380_vm7, %v1374_v46, %v8543_v4  ;;  %v1768_v24 = vmax.f32 %v1673_v13, 0.0  ;;  %v1376_v5 = vsel %vm1347_vm5, %v1343_v43, %v8556_v41  ;;  %v3743_v46 = vld [vmem:[%s3901_s9 + $0x158] sm:$0xff] }
 0x34b   : > { %3596 = vmatmul.msk.f32.gmra.mxu0 %vm1554_vm11, %v1526_v14  ;;  %3606 = vmatmul.msk.f32.gmra.mxu2 %vm1554_vm11, %v1536_v35  ;;  %v8539_v14 = vld [vmem:[#allocation49_spill] sm:$0xff]  ;;  %v1440_v21 = vsel %vm1413_vm6, %v1407_v9, %v8544_v52  ;;  %v1409_v16 = vsel %vm1380_vm7, %v1376_v5, %v8557_v62  ;;  %v8566_v4 = vld [vmem:[#allocation78_spill] sm:$0xff] }
 0x34c   : > { %v1505_v35 = vsel %vm1479_vm10, %v1472_v11, %v8539_v14  ;;  %v1473_v22 = vsel %vm1446_vm8, %v1440_v21, %v8545_v61  ;;  %v1867_v40 = vrot.slane %v1768_v24, 7  ;;  %v1311_v9 = vsel %vm1281_vm3, %v3743_v46, %v8566_v4  ;;  %v8567_v52 = vld [vmem:[#allocation121_spill] sm:$0xff]  ;;  %v8586_v46 = vld [vmem:[#allocation174_spill] sm:$0xff] }
 0x34d   : > { %v1538_v27 = vsel %vm1512_vm9, %v1505_v35, %v1236_v37  ;;  %v1506_v23 = vsel %vm1479_vm10, %v1473_v22, %v8546_v29  ;;  %v1442_v37 = vsel %vm1413_vm6, %v1409_v16, %v8558_v10  ;;  %v1344_v21 = vsel %vm1314_vm4, %v1311_v9, %v8567_v52  ;;  %v8587_v9 = vld [vmem:[#allocation191_spill] sm:$0xff] }
 0x34e   : > { %v1539_v19 = vsel %vm1512_vm9, %v1506_v23, %v1238_v50  ;;  %v1475_v32 = vsel %vm1446_vm8, %v1442_v37, %v8559_v8  ;;  %v8568_v50 = vld [vmem:[#allocation154_spill] sm:$0xff]  ;;  %v8570_v23 = vld [vmem:[#allocation189_spill] sm:$0xff] }
 0x34f   : > { %v1508_v47 = vsel %vm1479_vm10, %v1475_v32, %v8562_v58  ;;  %v1377_v61 = vsel %vm1347_vm5, %v1344_v21, %v8568_v50  ;;  %v3745_v32 = vld [vmem:[%s3901_s9 + $0x170] sm:$0xff]  ;;  %v8585_v58 = vld [vmem:[#allocation146_spill] sm:$0xff]  ;;  %v8588_v50 = vld [vmem:[#allocation200_spill] sm:$0xff] }
 0x350   : > { %v1541_v60 = vsel %vm1512_vm9, %v1508_v47, %v1242_v45  ;;  %v1410_v29 = vsel %vm1380_vm7, %v1377_v61, %v8569_v34  ;;  %v8583_v45 = vld [vmem:[#allocation91_spill] sm:$0xff]  ;;  %v8589_v34 = vld [vmem:[#allocation157_spill] sm:$0xff] }
 0x351   : > { %v1248_v21 = vpop.permute.xlu0 %1247 }
 0x353   : > { %3597 = vmatmul.msk.f32.gmra.mxu0 %vm1554_vm11, %v1527_v53  ;;  %3607 = vmatmul.msk.f32.gmra.mxu2 %vm1554_vm11, %v1537_v39  ;;  %v8551_v53 = vld [vmem:[#allocation183_spill] sm:$0xff] }
 0x354   : > { %v1441_v39 = vsel %vm1413_vm6, %v1408_v18, %v8551_v53  ;;  %v3744_v18 = vld [vmem:[%s3901_s9 + $0x168] sm:$0xff] }
 0x355   : > { %v1474_v3 = vsel %vm1446_vm8, %v1441_v39, %v8552_v15  ;;  %v8573_v53 = vld [vmem:[#allocation92_spill] sm:$0xff]  ;;  %v8574_v15 = vld [vmem:[#allocation111_spill] sm:$0xff] }
 0x356   : > { %v1507_v2 = vsel %vm1479_vm10, %v1474_v3, %v8553_v28  ;;  %v1312_v39 = vsel %vm1281_vm3, %v3744_v18, %v8573_v53 }
 0x357   : > { %v1540_v42 = vsel %vm1512_vm9, %v1507_v2, %v1240_v0  ;;  %v1345_v3 = vsel %vm1314_vm4, %v1312_v39, %v8574_v15 }
 0x35b   : > { %3598 = vmatmul.msk.f32.gmra.mxu0 %vm1554_vm11, %v1528_v59  ;;  %3608 = vmatmul.msk.f32.gmra.mxu2 %vm1554_vm11, %v1538_v27 }
 0x363   : > { %3609 = vmatmul.msk.f32.gmra.mxu2 %vm1554_vm11, %v1539_v19  ;;  %v1443_v19 = vsel %vm1413_vm6, %v1410_v29, %v8570_v23 }
 0x364   : > { %v1476_v56 = vsel %vm1446_vm8, %v1443_v19, %v8571_v55 }
 0x365   : > { %v1509_v12 = vsel %vm1479_vm10, %v1476_v56, %v8572_v31 }
 0x366   : > { %v1542_v57 = vsel %vm1512_vm9, %v1509_v12, %v1244_v38 }
 0x368   : > { %v1675_v44 = vpop.f32.mrf.mxu0 }
 0x369   : > { %v1676_v20 = vadd.f32 %v5829_v25, %v1675_v44  ;;  %v8575_v44 = vld [vmem:[#allocation40_spill] sm:$0xff] }
 0x36a   : > { %v1378_v28 = vsel %vm1347_vm5, %v1345_v3, %v8575_v44 }
 0x36b   : > { %v1769_v36 = vmax.f32 %v1676_v20, 0.0  ;;  %3610 = vmatmul.msk.f32.gmra.mxu2 %vm1554_vm11, %v1540_v42  ;;  %v8576_v20 = vld [vmem:[#allocation175_spill] sm:$0xff]  ;;  %v1246_v42 = vpop.permute.xlu2 %1245 }
 0x36c   : > { %v1411_v63 = vsel %vm1380_vm7, %v1378_v28, %v8576_v20 }
 0x36d   : > { %v1817_v51 = vrot.slane %v1769_v36, 7  ;;  %v1444_v30 = vsel %vm1413_vm6, %v1411_v63, %v8577_v1  ;;  %v8580_v36 = vld [vmem:[#allocation44_spill] sm:$0xff] }
 0x36e   : > { %v1477_v41 = vsel %vm1446_vm8, %v1444_v30, %v8580_v36 }
 0x36f   : > { %v5866_v11 = vsel %vm1864_vm12, %v1867_v40, %v1817_v51  ;;  %v5869_v48 = vsel %vm1864_vm12, %v1817_v51, %v1867_v40  ;;  %v8581_v40 = vld [vmem:[#allocation202_spill] sm:$0xff] }
 0x370   : > { %8560 = vst [vmem:[#allocation54_spill] sm:$0xff] %v5866_v11  ;;  %v1678_v26 = vpop.f32.mrf.mxu0  ;;  %v1965_v14 = vrot.slane %v5869_v48, 1  ;;  %v1966_v35 = vrot.slane %v5866_v11, 1  ;;  %v7982_v59 = vrot.slane %v5869_v48, 2  ;;  %v7979_v27 = vrot.slane %v5866_v11, 2 }
 0x371   : > { %8561 = vst [vmem:[#allocation95_spill] sm:$0xff] %v5869_v48  ;;  %v1679_v22 = vadd.f32 %v5829_v25, %v1678_v26  ;;  %v1510_v51 = vsel %vm1479_vm10, %v1477_v41, %v8581_v40  ;;  %v1313_v26 = vsel %vm1281_vm3, %v3745_v32, %v8583_v45 }
 0x372   : > { %v5878_v7 = vsel %vm325_vm0, %v1965_v14, %v1966_v35  ;;  %v5882_v49 = vsel %vm325_vm0, %v1966_v35, %v1965_v14  ;;  %v5889_v33 = vsel %vm502_vm1, %v7982_v59, %v7979_v27  ;;  %v1543_v37 = vsel %vm1512_vm9, %v1510_v51, %v1246_v42  ;;  %v8584_v14 = vld [vmem:[#allocation125_spill] sm:$0xff] }
 0x373   : > { %8563 = vst [vmem:[#allocation114_spill] sm:$0xff] %v5878_v7  ;;  %2029 = vrot.lane.b32.xlu0 %v5878_v7, %s3810_s10  ;;  %3611 = vmatmul.msk.f32.gmra.mxu2 %vm1554_vm11, %v1541_v60  ;;  %v1770_v54 = vmax.f32 %v1679_v22, 0.0  ;;  %v1346_v35 = vsel %vm1314_vm4, %v1313_v26, %v8584_v14 }
 0x374   : > { %8564 = vst [vmem:[#allocation156_spill] sm:$0xff] %v5882_v49  ;;  %v1379_v47 = vsel %vm1347_vm5, %v1346_v35, %v8585_v58 }
 0x375   : > { %8565 = vst [vmem:[#allocation48_spill] sm:$0xff] %v5889_v33  ;;  %v1869_v2 = vrot.slane %v1770_v54, 7  ;;  %v1412_v4 = vsel %vm1380_vm7, %v1379_v47, %v8586_v46 }
 0x376   : > { %v1445_v52 = vsel %vm1413_vm6, %v1412_v4, %v8587_v9 }
 0x377   : > { %v1478_v61 = vsel %vm1446_vm8, %v1445_v52, %v8588_v50 }
 0x378   : > { %v1681_v6 = vpop.f32.mrf.mxu0  ;;  %v1511_v29 = vsel %vm1479_vm10, %v1478_v61, %v8589_v34 }
 0x379   : > { %v1682_v13 = vadd.f32 %v5829_v25, %v1681_v6  ;;  %v1544_v38 = vsel %vm1512_vm9, %v1511_v29, %v1248_v21 }
 0x37b   : > { %v1771_v0 = vmax.f32 %v1682_v13, 0.0  ;;  %3612 = vmatmul.msk.f32.gmra.mxu2 %vm1554_vm11, %v1542_v57 }
 0x37d   : > { %v1818_v24 = vrot.slane %v1771_v0, 7 }
 0x37f   : > { %v5925_v17 = vsel %vm1864_vm12, %v1869_v2, %v1818_v24  ;;  %v5928_v43 = vsel %vm1864_vm12, %v1818_v24, %v1869_v2 }
 0x380   : > { %8578 = vst [vmem:[#allocation94_spill] sm:$0xff] %v5925_v17  ;;  %v1684_v5 = vpop.f32.mrf.mxu0  ;;  %v1969_v62 = vrot.slane %v5928_v43, 1  ;;  %v1970_v16 = vrot.slane %v5925_v17, 1 }
 0x381   : > { %8579 = vst [vmem:[#allocation128_spill] sm:$0xff] %v5928_v43  ;;  %v1685_v60 = vadd.f32 %v5829_v25, %v1684_v5 }
 0x382   : > { %v5937_v10 = vsel %vm325_vm0, %v1970_v16, %v1969_v62  ;;  %v5941_v8 = vsel %vm325_vm0, %v1969_v62, %v1970_v16 }
 0x383   : > { %8582 = vst [vmem:[#allocation35_spill] sm:$0xff] %v5937_v10  ;;  %2035 = vrot.lane.b32.xlu0 %v5937_v10, %s3810_s10  ;;  %3613 = vmatmul.msk.f32.gmra.mxu2 %vm1554_vm11, %v1543_v37  ;;  %v1772_v23 = vmax.f32 %v1685_v60, 0.0 }
 0x385   : > { %v1871_v56 = vrot.slane %v1772_v23, 7 }
 0x388   : > { %v1687_v22 = vpop.f32.mrf.mxu0 }
 0x389   : > { %v1688_v19 = vadd.f32 %v5829_v25, %v1687_v22 }
 0x38b   : > { %v1773_v55 = vmax.f32 %v1688_v19, 0.0  ;;  %3614 = vmatmul.msk.f32.gmra.mxu2 %vm1554_vm11, %v1544_v38 }
 0x38d   : > { %v1819_v6 = vrot.slane %v1773_v55, 7 }
 0x38f   : > { %v5966_v31 = vsel %vm1864_vm12, %v1871_v56, %v1819_v6  ;;  %v5969_v12 = vsel %vm1864_vm12, %v1819_v6, %v1871_v56 }
 0x390   : > { %8590 = vst [vmem:[#allocation53_spill] sm:$0xff] %v5969_v12  ;;  %v1690_v54 = vpop.f32.mrf.mxu0  ;;  %v7977_v13 = vrot.slane %v5969_v12, 2  ;;  %v7978_v57 = vrot.slane %v5966_v31, 2 }
 0x391   : > { %v1691_v53 = vadd.f32 %v5829_v25, %v1690_v54 }
 0x392   : > { %v5978_v18 = vsel %vm502_vm1, %v7978_v57, %v7977_v13 }
 0x393   : > { %8591 = vst [vmem:[#allocation84_spill] sm:$0xff] %v5978_v18  ;;  %v1774_v15 = vmax.f32 %v1691_v53, 0.0 }
 0x395   : > { %v1873_v2 = vrot.slane %v1774_v15, 7 }
 0x396   : > { %v1720_v39 = vpop.f32.mrf.mxu2 }
 0x397   : > { %v1721_v44 = vadd.f32 %v5829_v25, %v1720_v39 }
 0x398   : > { %v1693_v0 = vpop.f32.mrf.mxu0 }
 0x399   : > { %v1694_v3 = vadd.f32 %v5829_v25, %v1693_v0  ;;  %v1784_v63 = vmax.f32 %v1721_v44, 0.0 }
 0x39b   : > { %v1775_v28 = vmax.f32 %v1694_v3, 0.0  ;;  %v1883_v45 = vrot.slane %v1784_v63, 7 }
 0x39d   : > { %v1820_v24 = vrot.slane %v1775_v28, 7 }
 0x39e   : > { %v1723_v20 = vpop.f32.mrf.mxu2 }
 0x39f   : > { %v5984_v1 = vsel %vm1864_vm12, %v1873_v2, %v1820_v24  ;;  %v5987_v30 = vsel %vm1864_vm12, %v1820_v24, %v1873_v2  ;;  %v1724_v42 = vadd.f32 %v5829_v25, %v1723_v20 }
 0x3a0   : > { %8592 = vst [vmem:[#allocation127_spill] sm:$0xff] %v5984_v1  ;;  %v1696_v36 = vpop.f32.mrf.mxu0  ;;  %v1977_v41 = vrot.slane %v5987_v30, 1  ;;  %v1978_v5 = vrot.slane %v5984_v1, 1  ;;  %v7976_v62 = vrot.slane %v5987_v30, 2  ;;  %v7975_v16 = vrot.slane %v5984_v1, 2 }
 0x3a1   : > { %8593 = vst [vmem:[#allocation158_spill] sm:$0xff] %v5987_v30  ;;  %v1785_v40 = vmax.f32 %v1724_v42, 0.0  ;;  %v1697_v58 = vadd.f32 %v5829_v25, %v1696_v36 }
 0x3a2   : > { %v5995_v51 = vsel %vm325_vm0, %v1977_v41, %v1978_v5  ;;  %v5998_v37 = vsel %vm325_vm0, %v1978_v5, %v1977_v41  ;;  %v6005_v32 = vsel %vm502_vm1, %v7976_v62, %v7975_v16 }
 0x3a3   : > { %8594 = vst [vmem:[#allocation36_spill] sm:$0xff] %v5995_v51  ;;  %v1825_v26 = vrot.slane %v1785_v40, 7  ;;  %2041 = vrot.lane.b32.xlu0 %v5995_v51, %s3810_s10  ;;  %v1776_v52 = vmax.f32 %v1697_v58, 0.0 }
 0x3a4   : > { %8595 = vst [vmem:[#allocation98_spill] sm:$0xff] %v5998_v37 }
 0x3a5   : > { %v6010_v14 = vsel %vm1864_vm12, %v1883_v45, %v1825_v26  ;;  %v6013_v35 = vsel %vm1864_vm12, %v1825_v26, %v1883_v45  ;;  %v1875_v22 = vrot.slane %v1776_v52, 7 }
 0x3a6   : > { %8596 = vst [vmem:[#allocation117_spill] sm:$0xff] %v6013_v35  ;;  %v1726_v47 = vpop.f32.mrf.mxu2  ;;  %v7969_v60 = vrot.slane %v6013_v35, 2  ;;  %v7970_v46 = vrot.slane %v6010_v14, 2 }
 0x3a7   : > { %v1727_v50 = vadd.f32 %v5829_v25, %v1726_v47 }
 0x3a8   : > { %v1699_v4 = vpop.f32.mrf.mxu0  ;;  %v6023_v9 = vsel %vm502_vm1, %v7970_v46, %v7969_v60 }
 0x3a9   : > { %8597 = vst [vmem:[#allocation50_spill] sm:$0xff] %v6023_v9  ;;  %v1700_v21 = vadd.f32 %v5829_v25, %v1699_v4  ;;  %v1786_v23 = vmax.f32 %v1727_v50, 0.0 }
 0x3ab   : > { %v1777_v61 = vmax.f32 %v1700_v21, 0.0  ;;  %v1885_v15 = vrot.slane %v1786_v23, 7 }
 0x3ad   : > { %v1821_v34 = vrot.slane %v1777_v61, 7 }
 0x3ae   : > { %v1729_v29 = vpop.f32.mrf.mxu2 }
 0x3af   : > { %v6028_v19 = vsel %vm1864_vm12, %v1875_v22, %v1821_v34  ;;  %v6031_v38 = vsel %vm1864_vm12, %v1821_v34, %v1875_v22  ;;  %v1730_v55 = vadd.f32 %v5829_v25, %v1729_v29 }
 0x3b0   : > { %8598 = vst [vmem:[#allocation39_spill] sm:$0xff] %v6028_v19  ;;  %v1702_v56 = vpop.f32.mrf.mxu0  ;;  %v1981_v6 = vrot.slane %v6031_v38, 1  ;;  %v1982_v54 = vrot.slane %v6028_v19, 1 }
 0x3b1   : > { %v1787_v53 = vmax.f32 %v1730_v55, 0.0  ;;  %v1703_v2 = vadd.f32 %v5829_v25, %v1702_v56 }
 0x3b2   : > { %v6037_v39 = vsel %vm325_vm0, %v1982_v54, %v1981_v6  ;;  %v6040_v0 = vsel %vm325_vm0, %v1981_v6, %v1982_v54 }
 0x3b3   : > { %8599 = vst [vmem:[#allocation97_spill] sm:$0xff] %v6037_v39  ;;  %v1826_v3 = vrot.slane %v1787_v53, 7  ;;  %2047 = vrot.lane.b32.xlu0 %v6037_v39, %s3810_s10  ;;  %v1778_v45 = vmax.f32 %v1703_v2, 0.0 }
 0x3b4   : > { %8600 = vst [vmem:[#allocation131_spill] sm:$0xff] %v6040_v0 }
 0x3b5   : > { %v6045_v44 = vsel %vm1864_vm12, %v1885_v15, %v1826_v3  ;;  %v6048_v28 = vsel %vm1864_vm12, %v1826_v3, %v1885_v15  ;;  %v1877_v4 = vrot.slane %v1778_v45, 7 }
 0x3b6   : > { %8601 = vst [vmem:[#allocation151_spill] sm:$0xff] %v6045_v44  ;;  %v1732_v24 = vpop.f32.mrf.mxu2  ;;  %v2001_v20 = vrot.slane %v6048_v28, 1  ;;  %v2002_v63 = vrot.slane %v6045_v44, 1  ;;  %v7968_v42 = vrot.slane %v6048_v28, 2  ;;  %v7967_v36 = vrot.slane %v6045_v44, 2 }
 0x3b7   : > { %v1733_v58 = vadd.f32 %v5829_v25, %v1732_v24 }
 0x3b8   : > { %v1705_v41 = vpop.f32.mrf.mxu0  ;;  %v6060_v5 = vsel %vm325_vm0, %v2002_v63, %v2001_v20  ;;  %v6067_v40 = vsel %vm502_vm1, %v7968_v42, %v7967_v36 }
 0x3b9   : > { %8602 = vst [vmem:[#allocation60_spill] sm:$0xff] %v6060_v5  ;;  %v1706_v26 = vadd.f32 %v5829_v25, %v1705_v41  ;;  %v1788_v50 = vmax.f32 %v1733_v58, 0.0 }
 0x3ba   : > { %8603 = vst [vmem:[#allocation75_spill] sm:$0xff] %v6067_v40 }
 0x3bb   : > { %v1779_v47 = vmax.f32 %v1706_v26, 0.0  ;;  %v1887_v54 = vrot.slane %v1788_v50, 7 }
 0x3bd   : > { %v1822_v52 = vrot.slane %v1779_v47, 7 }
 0x3be   : > { %v1735_v21 = vpop.f32.mrf.mxu2 }
 0x3bf   : > { %v6072_v61 = vsel %vm1864_vm12, %v1877_v4, %v1822_v52  ;;  %v6075_v22 = vsel %vm1864_vm12, %v1822_v52, %v1877_v4  ;;  %v1736_v34 = vadd.f32 %v5829_v25, %v1735_v21 }
 0x3c0   : > { %8604 = vst [vmem:[#allocation87_spill] sm:$0xff] %v6075_v22  ;;  %v1708_v29 = vpop.f32.mrf.mxu0  ;;  %v7971_v23 = vrot.slane %v6075_v22, 2  ;;  %v7974_v55 = vrot.slane %v6072_v61, 2 }
 0x3c1   : > { %v1789_v56 = vmax.f32 %v1736_v34, 0.0  ;;  %v1709_v2 = vadd.f32 %v5829_v25, %v1708_v29 }
 0x3c2   : > { %v6085_v6 = vsel %vm502_vm1, %v7974_v55, %v7971_v23 }
 0x3c3   : > { %8605 = vst [vmem:[#allocation110_spill] sm:$0xff] %v6085_v6  ;;  %v1827_v53 = vrot.slane %v1789_v56, 7  ;;  %v1780_v47 = vmax.f32 %v1709_v2, 0.0 }
 0x3c5   : > { %v6088_v15 = vsel %vm1864_vm12, %v1887_v54, %v1827_v53  ;;  %v6091_v3 = vsel %vm1864_vm12, %v1827_v53, %v1887_v54  ;;  %v1879_v50 = vrot.slane %v1780_v47, 7 }
 0x3c6   : > { %8606 = vst [vmem:[#allocation130_spill] sm:$0xff] %v6091_v3  ;;  %v1738_v24 = vpop.f32.mrf.mxu2  ;;  %v7984_v41 = vrot.slane %v6091_v3, 1  ;;  %v7983_v45 = vrot.slane %v6088_v15, 1 }
 0x3c7   : > { %v1739_v52 = vadd.f32 %v5829_v25, %v1738_v24 }
 0x3c8   : > { %v1711_v26 = vpop.f32.mrf.mxu0  ;;  %v6101_v58 = vsel %vm325_vm0, %v7984_v41, %v7983_v45 }
 0x3c9   : > { %8607 = vst [vmem:[#allocation129_spill] sm:$0xff] %v6101_v58  ;;  %v1712_v4 = vadd.f32 %v5829_v25, %v1711_v26  ;;  %v1790_v56 = vmax.f32 %v1739_v52, 0.0 }
 0x3cb   : > { %v1781_v21 = vmax.f32 %v1712_v4, 0.0 }
 0x3cd   : > { %v1823_v34 = vrot.slane %v1781_v21, 7 }
 0x3ce   : > { %v1741_v29 = vpop.f32.mrf.mxu2 }
 0x3cf   : > { %v6106_v54 = vsel %vm1864_vm12, %v1879_v50, %v1823_v34  ;;  %v6109_v53 = vsel %vm1864_vm12, %v1823_v34, %v1879_v50  ;;  %v1742_v36 = vadd.f32 %v5829_v25, %v1741_v29  ;;  %v1889_v34 = vrot.slane %v1790_v56, 7 }
 0x3d0   : > { %8608 = vst [vmem:[#allocation161_spill] sm:$0xff] %v6106_v54  ;;  %v1714_v42 = vpop.f32.mrf.mxu0  ;;  %v1989_v2 = vrot.slane %v6109_v53, 1  ;;  %v1990_v26 = vrot.slane %v6106_v54, 1  ;;  %v7973_v24 = vrot.slane %v6109_v53, 2  ;;  %v7972_v47 = vrot.slane %v6106_v54, 2 }
 0x3d1   : > { %8609 = vst [vmem:[#allocation166_spill] sm:$0xff] %v6109_v53  ;;  %v1791_v4 = vmax.f32 %v1742_v36, 0.0 }
 0x3d2   : > { %v6117_v52 = vsel %vm325_vm0, %v1989_v2, %v1990_v26  ;;  %v6120_v21 = vsel %vm325_vm0, %v1990_v26, %v1989_v2  ;;  %v6127_v50 = vsel %vm502_vm1, %v7973_v24, %v7972_v47  ;;  %v1715_v2 = vadd.f32 %v5829_v25, %v1714_v42 }
 0x3d3   : > { %8610 = vst [vmem:[#allocation58_spill] sm:$0xff] %v6117_v52  ;;  %v1828_v29 = vrot.slane %v1791_v4, 7  ;;  %2053 = vrot.lane.b32.xlu0 %v6117_v52, %s3810_s10 }
 0x3d4   : > { %8611 = vst [vmem:[#allocation59_spill] sm:$0xff] %v6120_v21  ;;  %v1782_v4 = vmax.f32 %v1715_v2, 0.0 }
 0x3d5   : > { %8612 = vst [vmem:[#allocation101_spill] sm:$0xff] %v6127_v50  ;;  %v6132_v36 = vsel %vm1864_vm12, %v1889_v34, %v1828_v29  ;;  %v6135_v60 = vsel %vm1864_vm12, %v1828_v29, %v1889_v34 }
 0x3d6   : > { %8613 = vst [vmem:[#allocation109_spill] sm:$0xff] %v6132_v36  ;;  %v1744_v26 = vpop.f32.mrf.mxu2  ;;  %v7980_v46 = vrot.slane %v6135_v60, 2  ;;  %v7981_v23 = vrot.slane %v6132_v36, 2  ;;  %v1881_v42 = vrot.slane %v1782_v4, 7 }
 0x3d7   : > { %8614 = vst [vmem:[#allocation120_spill] sm:$0xff] %v6135_v60  ;;  %v1745_v34 = vadd.f32 %v5829_v25, %v1744_v26 }
 0x3d8   : > { %v1717_v47 = vpop.f32.mrf.mxu0  ;;  %v6145_v56 = vsel %vm502_vm1, %v7981_v23, %v7980_v46 }
 0x3d9   : > { %8615 = vst [vmem:[#allocation143_spill] sm:$0xff] %v6145_v56  ;;  %v1718_v24 = vadd.f32 %v5829_v25, %v1717_v47  ;;  %v1792_v62 = vmax.f32 %v1745_v34, 0.0 }
 0x3db   : > { %v1783_v29 = vmax.f32 %v1718_v24, 0.0  ;;  %v1891_v4 = vrot.slane %v1792_v62, 7 }
 0x3dd   : > { %v1824_v55 = vrot.slane %v1783_v29, 7 }
 0x3de   : > { %v1747_v16 = vpop.f32.mrf.mxu2 }
 0x3df   : > { %v6150_v13 = vsel %vm1864_vm12, %v1881_v42, %v1824_v55  ;;  %v6153_v57 = vsel %vm1864_vm12, %v1824_v55, %v1881_v42  ;;  %v1748_v27 = vadd.f32 %v5829_v25, %v1747_v16 }
 0x3e0   : > { %v1993_v46 = vrot.slane %v6153_v57, 1  ;;  %v1994_v2 = vrot.slane %v6150_v13, 1 }
 0x3e1   : > { %v1793_v47 = vmax.f32 %v1748_v27, 0.0 }
 0x3e2   : > { %v6159_v26 = vsel %vm325_vm0, %v1994_v2, %v1993_v46  ;;  %v6162_v24 = vsel %vm325_vm0, %v1993_v46, %v1994_v2 }
 0x3e3   : > { %8616 = vst [vmem:[#allocation160_spill] sm:$0xff] %v6159_v26  ;;  %v1829_v34 = vrot.slane %v1793_v47, 7  ;;  %2059 = vrot.lane.b32.xlu0 %v6159_v26, %s3810_s10  ;;  %v6191_v47 = vsel %vm325_vm0, %v2001_v20, %v2002_v63 }
 0x3e4   : > { %8617 = vst [vmem:[#allocation159_spill] sm:$0xff] %v6162_v24 }
 0x3e5   : > { %v6167_v55 = vsel %vm1864_vm12, %v1891_v4, %v1829_v34  ;;  %v6170_v16 = vsel %vm1864_vm12, %v1829_v34, %v1891_v4  ;;  %8621 = vst [vmem:[#allocation99_spill] sm:$0xff] %v6191_v47 }
 0x3e6   : > { %8618 = vst [vmem:[#allocation43_spill] sm:$0xff] %v6167_v55  ;;  %v1750_v29 = vpop.f32.mrf.mxu2  ;;  %v2013_v27 = vrot.slane %v6170_v16, 1  ;;  %v2014_v42 = vrot.slane %v6167_v55, 1  ;;  %v7986_v23 = vrot.slane %v6170_v16, 2  ;;  %v7985_v46 = vrot.slane %v6167_v55, 2 }
 0x3e7   : > { %v1751_v4 = vadd.f32 %v5829_v25, %v1750_v29 }
 0x3e8   : > { %v6177_v62 = vsel %vm325_vm0, %v2014_v42, %v2013_v27  ;;  %v6184_v2 = vsel %vm502_vm1, %v7986_v23, %v7985_v46  ;;  %v8622_v46 = vrot.slane %v6091_v3, 1  ;;  %v8623_v23 = vrot.slane %v6088_v15, 1 }
 0x3e9   : > { %8619 = vst [vmem:[#allocation80_spill] sm:$0xff] %v6177_v62  ;;  %v1794_v59 = vmax.f32 %v1751_v4, 0.0 }
 0x3ea   : > { %8620 = vst [vmem:[#allocation100_spill] sm:$0xff] %v6184_v2  ;;  %v6202_v26 = vsel %vm325_vm0, %v8623_v23, %v8622_v46 }
 0x3eb   : > { %2065 = vrot.lane.b32.xlu0 %v6191_v47, %s3810_s10  ;;  %8624 = vst [vmem:[#allocation134_spill] sm:$0xff] %v6202_v26  ;;  %v1893_v52 = vrot.slane %v1794_v59, 7  ;;  %v6218_v59 = vsel %vm325_vm0, %v2013_v27, %v2014_v42 }
 0x3ec   : > { %8627 = vst [vmem:[#allocation65_spill] sm:$0xff] %v6218_v59 }
 0x3ee   : > { %v1753_v34 = vpop.f32.mrf.mxu2 }
 0x3ef   : > { %v1754_v45 = vadd.f32 %v5829_v25, %v1753_v34 }
 0x3f1   : > { %v1795_v41 = vmax.f32 %v1754_v45, 0.0 }
 0x3f3   : > { %v1830_v20 = vrot.slane %v1795_v41, 7  ;;  %2071 = vrot.lane.b32.xlu0 %v6202_v26, %s3810_s10 }
 0x3f5   : > { %v6207_v63 = vsel %vm1864_vm12, %v1893_v52, %v1830_v20  ;;  %v6210_v29 = vsel %vm1864_vm12, %v1830_v20, %v1893_v52 }
 0x3f6   : > { %8625 = vst [vmem:[#allocation142_spill] sm:$0xff] %v6207_v63  ;;  %v1756_v4 = vpop.f32.mrf.mxu2  ;;  %v2017_v45 = vrot.slane %v6210_v29, 1  ;;  %v2018_v34 = vrot.slane %v6207_v63, 1 }
 0x3f7   : > { %v1757_v23 = vadd.f32 %v5829_v25, %v1756_v4 }
 0x3f8   : > { %v6215_v47 = vsel %vm325_vm0, %v2017_v45, %v2018_v34  ;;  %v6225_v26 = vsel %vm325_vm0, %v2018_v34, %v2017_v45 }
 0x3f9   : > { %8626 = vst [vmem:[#allocation46_spill] sm:$0xff] %v6215_v47  ;;  %v1796_v46 = vmax.f32 %v1757_v23, 0.0 }
 0x3fa   : > { %8628 = vst [vmem:[#allocation79_spill] sm:$0xff] %v6225_v26 }
 0x3fb   : > { %2077 = vrot.lane.b32.xlu0 %v6218_v59, %s3810_s10  ;;  %v1895_v39 = vrot.slane %v1796_v46, 7 }
 0x3fe   : > { %v1759_v41 = vpop.f32.mrf.mxu2 }
 0x3ff   : > { %v1760_v52 = vadd.f32 %v5829_v25, %v1759_v41 }
 0x401   : > { %v1797_v20 = vmax.f32 %v1760_v52, 0.0 }
 0x403   : > { %v1831_v51 = vrot.slane %v1797_v20, 7  ;;  %2083 = vrot.lane.b32.xlu0 %v6225_v26, %s3810_s10 }
 0x405   : > { %v6230_v27 = vsel %vm1864_vm12, %v1895_v39, %v1831_v51  ;;  %v6233_v42 = vsel %vm1864_vm12, %v1831_v51, %v1895_v39 }
 0x406   : > { %8629 = vst [vmem:[#allocation90_spill] sm:$0xff] %v6230_v27  ;;  %v1762_v4 = vpop.f32.mrf.mxu2  ;;  %v8007_v23 = vrot.slane %v6233_v42, 2  ;;  %v8008_v41 = vrot.slane %v6230_v27, 2 }
 0x407   : > { %8630 = vst [vmem:[#allocation113_spill] sm:$0xff] %v6233_v42  ;;  %v1763_v34 = vadd.f32 %v5829_v25, %v1762_v4 }
 0x408   : > { %v6242_v45 = vsel %vm502_vm1, %v8008_v41, %v8007_v23 }
 0x409   : > { %v1798_v52 = vmax.f32 %v1763_v34, 0.0 }
 0x40b   : > { %v1865_v39 = vrot.slane %v1798_v52, 7  ;;  %v8637_v52 = vrot.slane %v5869_v48, 2 }
 0x40e   : > { %v1765_v46 = vpop.f32.mrf.mxu2 }
 0x40f   : > { %v1766_v20 = vadd.f32 %v5829_v25, %v1765_v46 }
 0x411   : > { %v1799_v51 = vmax.f32 %v1766_v20, 0.0  ;;  %v1974_v20 = vrot.slane %v5966_v31, 1 }
 0x413   : > { %v1816_v26 = vrot.slane %v1799_v51, 7  ;;  %v8640_v51 = vrot.slane %v5966_v31, 2 }
 0x415   : > { %v6247_v59 = vsel %vm1864_vm12, %v1865_v39, %v1816_v26  ;;  %v6250_v10 = vsel %vm1864_vm12, %v1816_v26, %v1865_v39  ;;  %v8641_v39 = vrot.slane %v5969_v12, 2 }
 0x416   : > { %8631 = vst [vmem:[#allocation133_spill] sm:$0xff] %v6247_v59  ;;  %v2121_v7 = vrot.slane %v6250_v10, 2  ;;  %v2122_v23 = vrot.slane %v6247_v59, 2  ;;  %v1961_v41 = vrot.slane %v6250_v10, 1  ;;  %v1962_v4 = vrot.slane %v6247_v59, 1 }
 0x417   : > { %8632 = vst [vmem:[#allocation132_spill] sm:$0xff] %v6250_v10 }
 0x418   : > { %v6257_v34 = vsel %vm502_vm1, %v2121_v7, %v2122_v23  ;;  %v6260_v25 = vsel %vm502_vm1, %v2122_v23, %v2121_v7  ;;  %v6265_v26 = vsel %vm325_vm0, %v1962_v4, %v1961_v41  ;;  %v6268_v46 = vsel %vm325_vm0, %v1961_v41, %v1962_v4 }
 0x419   : > { %8633 = vst [vmem:[#allocation162_spill] sm:$0xff] %v6257_v34  ;;  %2185 = vrot.lane.b32.xlu0 %v6257_v34, %s3811_s11  ;;  %2027 = vrot.lane.b32.xlu2 %v6265_v26, %s3810_s10  ;;  %v8638_v7 = vrot.slane %v5866_v11, 2  ;;  %v1973_v41 = vrot.slane %v5969_v12, 1  ;;  %v6294_v4 = vsel %vm502_vm1, %v8641_v39, %v8640_v51  ;;  %v8646_v51 = vrot.slane %v5984_v1, 2 }
 0x41a   : > { %8634 = vst [vmem:[#allocation63_spill] sm:$0xff] %v6260_v25  ;;  %2025 = vrot.lane.b32.xlu1 %v6268_v46, %s3810_s10  ;;  %v8659_v34 = vrot.slane %v6010_v14, 2 }
 0x41b   : > { %8635 = vst [vmem:[#allocation64_spill] sm:$0xff] %v6265_v26  ;;  %v6279_v23 = vsel %vm502_vm1, %v8638_v7, %v8637_v52  ;;  %v6299_v52 = vsel %vm325_vm0, %v1974_v20, %v1973_v41  ;;  %v6302_v7 = vsel %vm325_vm0, %v1973_v41, %v1974_v20  ;;  %v6321_v41 = vpop.permute.xlu0 %2029  ;;  %v1985_v20 = vrot.slane %v6075_v22, 1 }
 0x41c   : > { %8636 = vst [vmem:[#allocation104_spill] sm:$0xff] %v6268_v46  ;;  %v8649_v46 = vrot.slane %v6072_v61, 2 }
 0x41d   : > { %8639 = vst [vmem:[#allocation112_spill] sm:$0xff] %v6279_v23 }
 0x41e   : > { %8642 = vst [vmem:[#allocation123_spill] sm:$0xff] %v6294_v4 }
 0x41f   : > { %8643 = vst [vmem:[#allocation148_spill] sm:$0xff] %v6299_v52 }
 0x420   : > { %8644 = vst [vmem:[#allocation61_spill] sm:$0xff] %v6302_v7 }
 0x421   : > { %2191 = vrot.lane.b32.xlu0 %v6279_v23, %s3811_s11  ;;  %2033 = vrot.lane.b32.xlu2 %v5941_v8, %s3810_s10  ;;  %v8645_v23 = vrot.slane %v5987_v30, 2  ;;  %8648 = vst [vmem:[#allocation47_spill] sm:$0xff] %v6321_v41 }
 0x422   : > { %2031 = vrot.lane.b32.xlu1 %v5882_v49, %s3810_s10 }
 0x423   : > { %v6313_v39 = vsel %vm502_vm1, %v8646_v51, %v8645_v23  ;;  %v8650_v23 = vrot.slane %v6075_v22, 2  ;;  %v6344_v41 = vpop.permute.xlu0 %2035 }
 0x424   : > { %8647 = vst [vmem:[#allocation68_spill] sm:$0xff] %v6313_v39 }
 0x425   : > { %v6330_v51 = vsel %vm502_vm1, %v8650_v23, %v8649_v46  ;;  %8654 = vst [vmem:[#allocation137_spill] sm:$0xff] %v6344_v41  ;;  %v8655_v46 = vrot.slane %v6109_v53, 2  ;;  %v8656_v23 = vrot.slane %v6106_v54, 2  ;;  %v1998_v41 = vrot.slane %v6010_v14, 1 }
 0x426   : > { %8651 = vst [vmem:[#allocation83_spill] sm:$0xff] %v6330_v51 }
 0x429   : > { %2197 = vrot.lane.b32.xlu0 %v6294_v4, %s3811_s11  ;;  %2039 = vrot.lane.b32.xlu2 %v6299_v52, %s3810_s10  ;;  %v1986_v4 = vrot.slane %v6072_v61, 1 }
 0x42a   : > { %2037 = vrot.lane.b32.xlu1 %v6302_v7, %s3810_s10 }
 0x42b   : > { %v6338_v26 = vsel %vm325_vm0, %v1985_v20, %v1986_v4 }
 0x42c   : > { %8653 = vst [vmem:[#allocation102_spill] sm:$0xff] %v6338_v26 }
 0x431   : > { %2203 = vrot.lane.b32.xlu0 %v6313_v39, %s3811_s11  ;;  %2045 = vrot.lane.b32.xlu2 %v6040_v0, %s3810_s10  ;;  %v6335_v39 = vsel %vm325_vm0, %v1986_v4, %v1985_v20  ;;  %v6359_v4 = vpop.permute.xlu0 %2041  ;;  %v1997_v20 = vrot.slane %v6013_v35, 1 }
 0x432   : > { %2043 = vrot.lane.b32.xlu1 %v5998_v37, %s3810_s10  ;;  %8652 = vst [vmem:[#allocation103_spill] sm:$0xff] %v6335_v39 }
 0x433   : > { %8658 = vst [vmem:[#allocation155_spill] sm:$0xff] %v6359_v4 }
 0x439   : > { %2209 = vrot.lane.b32.xlu0 %v6330_v51, %s3811_s11  ;;  %2051 = vrot.lane.b32.xlu2 %v6335_v39, %s3810_s10  ;;  %v6351_v51 = vsel %vm502_vm1, %v8656_v23, %v8655_v46  ;;  %v8660_v46 = vrot.slane %v6013_v35, 2  ;;  %v6382_v4 = vpop.permute.xlu0 %2047 }
 0x43a   : > { %2049 = vrot.lane.b32.xlu1 %v6338_v26, %s3810_s10  ;;  %8657 = vst [vmem:[#allocation147_spill] sm:$0xff] %v6351_v51 }
 0x43b   : > { %v6368_v23 = vsel %vm502_vm1, %v8660_v46, %v8659_v34  ;;  %8664 = vst [vmem:[#allocation201_spill] sm:$0xff] %v6382_v4  ;;  %v8665_v34 = vrot.slane %v6048_v28, 2  ;;  %v8666_v46 = vrot.slane %v6045_v44, 2  ;;  %v2010_v4 = vrot.slane %v6132_v36, 1 }
 0x43c   : > { %8661 = vst [vmem:[#allocation179_spill] sm:$0xff] %v6368_v23 }
 0x441   : > { %2215 = vrot.lane.b32.xlu0 %v6351_v51, %s3811_s11  ;;  %2057 = vrot.lane.b32.xlu2 %v6162_v24, %s3810_s10  ;;  %v6373_v51 = vsel %vm325_vm0, %v1998_v41, %v1997_v20 }
 0x442   : > { %2055 = vrot.lane.b32.xlu1 %v6120_v21, %s3810_s10  ;;  %8662 = vst [vmem:[#allocation178_spill] sm:$0xff] %v6373_v51  ;;  %v6376_v21 = vsel %vm325_vm0, %v1997_v20, %v1998_v41  ;;  %v2009_v20 = vrot.slane %v6135_v60, 1 }
 0x443   : > { %8663 = vst [vmem:[#allocation195_spill] sm:$0xff] %v6376_v21 }
 0x445   : > { %v6397_v41 = vpop.permute.xlu0 %2053 }
 0x446   : > { %8668 = vst [vmem:[#allocation71_spill] sm:$0xff] %v6397_v41 }
 0x449   : > { %2221 = vrot.lane.b32.xlu0 %v6368_v23, %s3811_s11  ;;  %2063 = vrot.lane.b32.xlu2 %v6373_v51, %s3810_s10  ;;  %v6389_v23 = vsel %vm502_vm1, %v8666_v46, %v8665_v34  ;;  %v8670_v34 = vrot.slane %v6135_v60, 2 }
 0x44a   : > { %2061 = vrot.lane.b32.xlu1 %v6376_v21, %s3810_s10  ;;  %8667 = vst [vmem:[#allocation51_spill] sm:$0xff] %v6389_v23  ;;  %v8669_v21 = vrot.slane %v6132_v36, 2 }
 0x44c   : > { %v6406_v46 = vsel %vm502_vm1, %v8670_v34, %v8669_v21  ;;  %v8675_v21 = vrot.slane %v6170_v16, 2  ;;  %v8676_v34 = vrot.slane %v6167_v55, 2 }
 0x44d   : > { %8671 = vst [vmem:[#allocation82_spill] sm:$0xff] %v6406_v46 }
 0x451   : > { %2227 = vrot.lane.b32.xlu0 %v6389_v23, %s3811_s11  ;;  %2069 = vrot.lane.b32.xlu2 %v6101_v58, %s3810_s10  ;;  %v6411_v23 = vsel %vm325_vm0, %v2010_v4, %v2009_v20 }
 0x452   : > { %2067 = vrot.lane.b32.xlu1 %v6060_v5, %s3810_s10  ;;  %8672 = vst [vmem:[#allocation93_spill] sm:$0xff] %v6411_v23  ;;  %v6414_v5 = vsel %vm325_vm0, %v2009_v20, %v2010_v4  ;;  %v2021_v20 = vrot.slane %v6233_v42, 1 }
 0x453   : > { %8673 = vst [vmem:[#allocation116_spill] sm:$0xff] %v6414_v5 }
 0x455   : > { %v6420_v41 = vpop.permute.xlu0 %2059 }
 0x456   : > { %8674 = vst [vmem:[#allocation136_spill] sm:$0xff] %v6420_v41  ;;  %v2022_v41 = vrot.slane %v6230_v27, 1 }
 0x459   : > { %2233 = vrot.lane.b32.xlu0 %v6406_v46, %s3811_s11  ;;  %2075 = vrot.lane.b32.xlu2 %v6411_v23, %s3810_s10  ;;  %v6427_v46 = vsel %vm502_vm1, %v8676_v34, %v8675_v21  ;;  %v8680_v21 = vrot.slane %v6233_v42, 2 }
 0x45a   : > { %2073 = vrot.lane.b32.xlu1 %v6414_v5, %s3810_s10  ;;  %8677 = vst [vmem:[#allocation135_spill] sm:$0xff] %v6427_v46  ;;  %v8679_v5 = vrot.slane %v6230_v27, 2 }
 0x45c   : > { %v6444_v34 = vsel %vm502_vm1, %v8680_v21, %v8679_v5 }
 0x45d   : > { %v6435_v4 = vpop.permute.xlu0 %2065  ;;  %8681 = vst [vmem:[#allocation169_spill] sm:$0xff] %v6444_v34 }
 0x45e   : > { %8678 = vst [vmem:[#allocation164_spill] sm:$0xff] %v6435_v4 }
 0x461   : > { %2239 = vrot.lane.b32.xlu0 %v6427_v46, %s3811_s11  ;;  %2081 = vrot.lane.b32.xlu2 %v6215_v47, %s3810_s10  ;;  %v6449_v46 = vsel %vm325_vm0, %v2022_v41, %v2021_v20 }
 0x462   : > { %2079 = vrot.lane.b32.xlu1 %v6177_v62, %s3810_s10  ;;  %8682 = vst [vmem:[#allocation176_spill] sm:$0xff] %v6449_v46  ;;  %v6452_v62 = vsel %vm325_vm0, %v2021_v20, %v2022_v41  ;;  %v2129_v41 = vrot.slane %v5928_v43, 2  ;;  %v2130_v20 = vrot.slane %v5925_v17, 2 }
 0x463   : > { %8683 = vst [vmem:[#allocation186_spill] sm:$0xff] %v6452_v62 }
 0x465   : > { %v6458_v4 = vpop.permute.xlu0 %2071 }
 0x466   : > { %8684 = vst [vmem:[#allocation194_spill] sm:$0xff] %v6458_v4  ;;  %v6475_v4 = vsel %vm502_vm1, %v2130_v20, %v2129_v41 }
 0x469   : > { %2245 = vrot.lane.b32.xlu0 %v6444_v34, %s3811_s11  ;;  %2087 = vrot.lane.b32.xlu2 %v6449_v46, %s3810_s10 }
 0x46a   : > { %2085 = vrot.lane.b32.xlu1 %v6452_v62, %s3810_s10  ;;  %s3512_s10 = scalar_lea.hbm %s7870_s5, %s3653_s30 }
 0x46d   : > { %v6470_v21 = vpop.permute.xlu0 %2077 }
 0x46e   : > { %8686 = vst [vmem:[#allocation67_spill] sm:$0xff] %v6470_v21 }
 0x471   : > { %2283 = vrot.lane.b32.xlu0 %v5866_v11, %s3812_s12  ;;  %2189 = vrot.lane.b32.xlu2 %v5889_v33, %s3811_s11  ;;  %v6478_v11 = vsel %vm502_vm1, %v2129_v41, %v2130_v20  ;;  %v2141_v20 = vrot.slane %v6031_v38, 2 }
 0x472   : > { %2187 = vrot.lane.b32.xlu1 %v6260_v25, %s3811_s11  ;;  %8687 = vst [vmem:[#allocation69_spill] sm:$0xff] %v6478_v11 }
 0x473   : > { %v6466_v5 = vpop.permute.xlu2 %2027 }
 0x474   : > { %8685 = vst [vmem:[#allocation193_spill] sm:$0xff] %v6466_v5 }
 0x475   : > { %v6492_v21 = vpop.permute.xlu0 %2083 }
 0x476   : > { %8689 = vst [vmem:[#allocation107_spill] sm:$0xff] %v6492_v21 }
 0x479   : > { %2289 = vrot.lane.b32.xlu0 %v5969_v12, %s3812_s12  ;;  %2195 = vrot.lane.b32.xlu2 %v6475_v4, %s3811_s11  ;;  %v2142_v12 = vrot.slane %v6028_v19, 2 }
 0x47a   : > { %2193 = vrot.lane.b32.xlu1 %v6478_v11, %s3811_s11 }
 0x47b   : > { %v6484_v5 = vpop.permute.xlu2 %2033 }
 0x47c   : > { %8688 = vst [vmem:[#allocation70_spill] sm:$0xff] %v6484_v5  ;;  %v6501_v5 = vsel %vm502_vm1, %v2142_v12, %v2141_v20 }
 0x47d   : > { %8691 = vst [vmem:[#allocation126_spill] sm:$0xff] %v6501_v5 }
 0x481   : > { %2295 = vrot.lane.b32.xlu0 %v5984_v1, %s3812_s12  ;;  %2201 = vrot.lane.b32.xlu2 %v6005_v32, %s3811_s11  ;;  %v6504_v1 = vsel %vm502_vm1, %v2141_v20, %v2142_v12 }
 0x482   : > { %2199 = vrot.lane.b32.xlu1 %v5978_v18, %s3811_s11  ;;  %8692 = vst [vmem:[#allocation150_spill] sm:$0xff] %v6504_v1 }
 0x483   : > { %v6494_v41 = vpop.permute.xlu2 %2039 }
 0x484   : > { %8690 = vst [vmem:[#allocation115_spill] sm:$0xff] %v6494_v41 }
 0x489   : > { %2301 = vrot.lane.b32.xlu0 %v6075_v22, %s3812_s12  ;;  %2207 = vrot.lane.b32.xlu2 %v6501_v5, %s3811_s11 }
 0x48a   : > { %2205 = vrot.lane.b32.xlu1 %v6504_v1, %s3811_s11 }
 0x48b   : > { %v6510_v21 = vpop.permute.xlu0 %2185  ;;  %v6512_v41 = vpop.permute.xlu2 %2045 }
 0x48c   : > { %8693 = vst [vmem:[#allocation163_spill] sm:$0xff] %v6510_v21  ;;  %v6514_v25 = vpop.permute.xlu1 %2025  ;;  %v2153_v21 = vrot.slane %v6153_v57, 2 }
 0x48d   : > { %8694 = vst [vmem:[#allocation66_spill] sm:$0xff] %v6512_v41  ;;  %v2154_v41 = vrot.slane %v6150_v13, 2 }
 0x48e   : > { %8695 = vst [vmem:[#allocation182_spill] sm:$0xff] %v6514_v25 }
 0x48f   : > { %v6533_v25 = vsel %vm502_vm1, %v2154_v41, %v2153_v21  ;;  %v6536_v34 = vsel %vm502_vm1, %v2153_v21, %v2154_v41 }
 0x490   : > { %8699 = vst [vmem:[#allocation62_spill] sm:$0xff] %v6533_v25 }
 0x491   : > { %2307 = vrot.lane.b32.xlu0 %v6106_v54, %s3812_s12  ;;  %2213 = vrot.lane.b32.xlu2 %v6127_v50, %s3811_s11  ;;  %8700 = vst [vmem:[#allocation56_spill] sm:$0xff] %v6536_v34 }
 0x492   : > { %2211 = vrot.lane.b32.xlu1 %v6085_v6, %s3811_s11 }
 0x493   : > { %v6522_v12 = vpop.permute.xlu0 %2191  ;;  %v6524_v20 = vpop.permute.xlu2 %2051 }
 0x494   : > { %8696 = vst [vmem:[#allocation185_spill] sm:$0xff] %v6522_v12  ;;  %v6526_v22 = vpop.permute.xlu1 %2031 }
 0x495   : > { %8697 = vst [vmem:[#allocation192_spill] sm:$0xff] %v6524_v20 }
 0x496   : > { %8698 = vst [vmem:[#allocation37_spill] sm:$0xff] %v6526_v22 }
 0x499   : > { %2313 = vrot.lane.b32.xlu0 %v6013_v35, %s3812_s12  ;;  %2219 = vrot.lane.b32.xlu2 %v6533_v25, %s3811_s11 }
 0x49a   : > { %2217 = vrot.lane.b32.xlu1 %v6536_v34, %s3811_s11 }
 0x49b   : > { %v6542_v12 = vpop.permute.xlu0 %2197  ;;  %v6544_v22 = vpop.permute.xlu2 %2057 }
 0x49c   : > { %8701 = vst [vmem:[#allocation52_spill] sm:$0xff] %v6542_v12  ;;  %v6546_v20 = vpop.permute.xlu1 %2037  ;;  %v2165_v12 = vrot.slane %v6091_v3, 2 }
 0x49d   : > { %8702 = vst [vmem:[#allocation86_spill] sm:$0xff] %v6544_v22  ;;  %v2166_v22 = vrot.slane %v6088_v15, 2 }
 0x49e   : > { %8703 = vst [vmem:[#allocation106_spill] sm:$0xff] %v6546_v20 }
 0x49f   : > { %v6565_v20 = vsel %vm502_vm1, %v2166_v22, %v2165_v12 }
 0x4a0   : > { %8707 = vst [vmem:[#allocation57_spill] sm:$0xff] %v6565_v20 }
 0x4a1   : > { %2319 = vrot.lane.b32.xlu0 %v6045_v44, %s3812_s12  ;;  %2225 = vrot.lane.b32.xlu2 %v6067_v40, %s3811_s11  ;;  %v6568_v44 = vsel %vm502_vm1, %v2165_v12, %v2166_v22 }
 0x4a2   : > { %2223 = vrot.lane.b32.xlu1 %v6023_v9, %s3811_s11  ;;  %8708 = vst [vmem:[#allocation171_spill] sm:$0xff] %v6568_v44 }
 0x4a3   : > { %v6554_v21 = vpop.permute.xlu0 %2203  ;;  %v6556_v41 = vpop.permute.xlu2 %2063 }
 0x4a4   : > { %8704 = vst [vmem:[#allocation105_spill] sm:$0xff] %v6554_v21  ;;  %v6558_v35 = vpop.permute.xlu1 %2043 }
 0x4a5   : > { %8705 = vst [vmem:[#allocation140_spill] sm:$0xff] %v6556_v41 }
 0x4a6   : > { %8706 = vst [vmem:[#allocation149_spill] sm:$0xff] %v6558_v35 }
 0x4a9   : > { %2325 = vrot.lane.b32.xlu0 %v6135_v60, %s3812_s12  ;;  %2231 = vrot.lane.b32.xlu2 %v6565_v20, %s3811_s11 }
 0x4aa   : > { %2229 = vrot.lane.b32.xlu1 %v6568_v44, %s3811_s11 }
 0x4ab   : > { %v6574_v21 = vpop.permute.xlu0 %2209  ;;  %v6576_v35 = vpop.permute.xlu2 %2069 }
 0x4ac   : > { %8709 = vst [vmem:[#allocation181_spill] sm:$0xff] %v6574_v21  ;;  %v6578_v41 = vpop.permute.xlu1 %2049  ;;  %v2177_v21 = vrot.slane %v6210_v29, 2 }
 0x4ad   : > { %8710 = vst [vmem:[#allocation180_spill] sm:$0xff] %v6576_v35  ;;  %v2178_v35 = vrot.slane %v6207_v63, 2 }
 0x4ae   : > { %8711 = vst [vmem:[#allocation198_spill] sm:$0xff] %v6578_v41 }
 0x4af   : > { %v6597_v41 = vsel %vm502_vm1, %v2178_v35, %v2177_v21 }
 0x4b0   : > { %8714 = vst [vmem:[#allocation76_spill] sm:$0xff] %v6597_v41 }
 0x4b1   : > { %2331 = vrot.lane.b32.xlu0 %v6167_v55, %s3812_s12  ;;  %2237 = vrot.lane.b32.xlu2 %v6184_v2, %s3811_s11  ;;  %v6600_v55 = vsel %vm502_vm1, %v2177_v21, %v2178_v35 }
 0x4b2   : > { %2235 = vrot.lane.b32.xlu1 %v6145_v56, %s3811_s11  ;;  %8715 = vst [vmem:[#allocation85_spill] sm:$0xff] %v6600_v55 }
 0x4b3   : > { %v6586_v22 = vpop.permute.xlu0 %2215  ;;  %v6588_v12 = vpop.permute.xlu2 %2075 }
 0x4b4   : > { %8712 = vst [vmem:[#allocation42_spill] sm:$0xff] %v6586_v22  ;;  %v6590_v60 = vpop.permute.xlu1 %2055 }
 0x4b5   : > { %8713 = vst [vmem:[#allocation55_spill] sm:$0xff] %v6588_v12 }
 0x4b9   : > { %2337 = vrot.lane.b32.xlu0 %v6233_v42, %s3812_s12  ;;  %2243 = vrot.lane.b32.xlu2 %v6597_v41, %s3811_s11 }
 0x4ba   : > { %2241 = vrot.lane.b32.xlu1 %v6600_v55, %s3811_s11 }
 0x4bb   : > { %v6606_v12 = vpop.permute.xlu0 %2221  ;;  %v6608_v22 = vpop.permute.xlu2 %2081 }
 0x4bc   : > { %8716 = vst [vmem:[#allocation96_spill] sm:$0xff] %v6608_v22  ;;  %v6610_v54 = vpop.permute.xlu1 %2061 }
 0x4c1   : > { %2343 = vrot.lane.b32.xlu0 %v6247_v59, %s3812_s12  ;;  %2281 = vrot.lane.b32.xlu2 %v5869_v48, %s3812_s12 }
 0x4c2   : > { %2247 = vrot.lane.b32.xlu1 %v6242_v45, %s3811_s11 }
 0x4c3   : > { %v6618_v35 = vpop.permute.xlu0 %2227  ;;  %v6620_v21 = vpop.permute.xlu2 %2087 }
 0x4c4   : > { %8717 = vst [vmem:[#allocation119_spill] sm:$0xff] %v6618_v35  ;;  %v6622_v42 = vpop.permute.xlu1 %2067 }
 0x4c5   : > { %8718 = vst [vmem:[#allocation139_spill] sm:$0xff] %v6620_v21 }
 0x4c9   : > { %2381 = vrot.lane.b32.xlu0 %v5941_v8, %s3813_s13  ;;  %2287 = vrot.lane.b32.xlu2 %v5925_v17, %s3812_s12 }
 0x4ca   : > { %2285 = vrot.lane.b32.xlu1 %v5928_v43, %s3812_s12 }
 0x4cb   : > { %v6630_v22 = vpop.permute.xlu0 %2233  ;;  %v6632_v48 = vpop.permute.xlu2 %2189 }
 0x4cc   : > { %8719 = vst [vmem:[#allocation138_spill] sm:$0xff] %v6630_v22  ;;  %v6634_v59 = vpop.permute.xlu1 %2073 }
 0x4cd   : > { %8720 = vst [vmem:[#allocation167_spill] sm:$0xff] %v6632_v48 }
 0x4d1   : > { %2387 = vrot.lane.b32.xlu0 %v6299_v52, %s3813_s13  ;;  %2293 = vrot.lane.b32.xlu2 %v5987_v30, %s3812_s12 }
 0x4d2   : > { %2291 = vrot.lane.b32.xlu1 %v5966_v31, %s3812_s12 }
 0x4d3   : > { %v6642_v21 = vpop.permute.xlu0 %2239  ;;  %v6644_v35 = vpop.permute.xlu2 %2195 }
 0x4d4   : > { %8721 = vst [vmem:[#allocation170_spill] sm:$0xff] %v6642_v21  ;;  %v6646_v43 = vpop.permute.xlu1 %2079 }
 0x4d5   : > { %8722 = vst [vmem:[#allocation177_spill] sm:$0xff] %v6644_v35 }
 0x4d9   : > { %2393 = vrot.lane.b32.xlu0 %v6040_v0, %s3813_s13  ;;  %2299 = vrot.lane.b32.xlu2 %v6028_v19, %s3812_s12 }
 0x4da   : > { %2297 = vrot.lane.b32.xlu1 %v6031_v38, %s3812_s12 }
 0x4db   : > { %v6654_v48 = vpop.permute.xlu0 %2245  ;;  %v6656_v52 = vpop.permute.xlu2 %2201 }
 0x4dc   : > { %8723 = vst [vmem:[#allocation188_spill] sm:$0xff] %v6654_v48  ;;  %v6658_v22 = vpop.permute.xlu1 %2085 }
 0x4dd   : > { %8724 = vst [vmem:[#allocation197_spill] sm:$0xff] %v6656_v52 }
 0x4e1   : > { %2399 = vrot.lane.b32.xlu0 %v6335_v39, %s3813_s13  ;;  %2305 = vrot.lane.b32.xlu2 %v6109_v53, %s3812_s12 }
 0x4e2   : > { %2303 = vrot.lane.b32.xlu1 %v6072_v61, %s3812_s12 }
 0x4e3   : > { %v6666_v35 = vpop.permute.xlu0 %2283  ;;  %v6668_v0 = vpop.permute.xlu2 %2207 }
 0x4e4   : > { %8725 = vst [vmem:[#allocation196_spill] sm:$0xff] %v6666_v35  ;;  %v6670_v21 = vpop.permute.xlu1 %2187 }
 0x4e5   : > { %8726 = vst [vmem:[#allocation73_spill] sm:$0xff] %v6668_v0 }
 0x4e9   : > { %2405 = vrot.lane.b32.xlu0 %v6162_v24, %s3813_s13  ;;  %2311 = vrot.lane.b32.xlu2 %v6150_v13, %s3812_s12 }
 0x4ea   : > { %2309 = vrot.lane.b32.xlu1 %v6153_v57, %s3812_s12 }
 0x4eb   : > { %v6678_v39 = vpop.permute.xlu0 %2289  ;;  %v6680_v52 = vpop.permute.xlu2 %2213 }
 0x4ec   : > { %8727 = vst [vmem:[#allocation49_spill] sm:$0xff] %v6678_v39  ;;  %v6682_v48 = vpop.permute.xlu1 %2193 }
 0x4ed   : > { %8728 = vst [vmem:[#allocation74_spill] sm:$0xff] %v6680_v52 }
 0x4f1   : > { %2411 = vrot.lane.b32.xlu0 %v6373_v51, %s3813_s13  ;;  %2317 = vrot.lane.b32.xlu2 %v6048_v28, %s3812_s12 }
 0x4f2   : > { %2315 = vrot.lane.b32.xlu1 %v6010_v14, %s3812_s12 }
 0x4f3   : > { %v6690_v24 = vpop.permute.xlu0 %2295  ;;  %v6692_v0 = vpop.permute.xlu2 %2219 }
 0x4f4   : > { %8729 = vst [vmem:[#allocation118_spill] sm:$0xff] %v6690_v24  ;;  %v6694_v35 = vpop.permute.xlu1 %2199 }
 0x4f9   : > { %2417 = vrot.lane.b32.xlu0 %v6101_v58, %s3813_s13  ;;  %2323 = vrot.lane.b32.xlu2 %v6088_v15, %s3812_s12 }
 0x4fa   : > { %2321 = vrot.lane.b32.xlu1 %v6091_v3, %s3812_s12 }
 0x4fb   : > { %v6702_v51 = vpop.permute.xlu0 %2301  ;;  %v6704_v52 = vpop.permute.xlu2 %2225 }
 0x4fc   : > { %8730 = vst [vmem:[#allocation153_spill] sm:$0xff] %v6702_v51  ;;  %v6706_v39 = vpop.permute.xlu1 %2205 }
 0x501   : > { %2423 = vrot.lane.b32.xlu0 %v6411_v23, %s3813_s13  ;;  %2329 = vrot.lane.b32.xlu2 %v6170_v16, %s3812_s12 }
 0x502   : > { %2327 = vrot.lane.b32.xlu1 %v6132_v36, %s3812_s12 }
 0x503   : > { %v6714_v58 = vpop.permute.xlu0 %2307  ;;  %v6716_v24 = vpop.permute.xlu2 %2231 }
 0x504   : > { %8731 = vst [vmem:[#allocation165_spill] sm:$0xff] %v6714_v58  ;;  %v6718_v3 = vpop.permute.xlu1 %2211 }
 0x509   : > { %2429 = vrot.lane.b32.xlu0 %v6215_v47, %s3813_s13  ;;  %2335 = vrot.lane.b32.xlu2 %v6207_v63, %s3812_s12 }
 0x50a   : > { %2333 = vrot.lane.b32.xlu1 %v6210_v29, %s3812_s12 }
 0x50b   : > { %v6726_v23 = vpop.permute.xlu0 %2313  ;;  %v6728_v51 = vpop.permute.xlu2 %2237 }
 0x50c   : > { %8732 = vst [vmem:[#allocation187_spill] sm:$0xff] %v6726_v23  ;;  %v6730_v36 = vpop.permute.xlu1 %2217 }
 0x511   : > { %2435 = vrot.lane.b32.xlu0 %v6449_v46, %s3813_s13  ;;  %2341 = vrot.lane.b32.xlu2 %v6250_v10, %s3812_s12  ;;  %v8736_v46 = vld [vmem:[#allocation114_spill] sm:$0xff] }
 0x512   : > { %2339 = vrot.lane.b32.xlu1 %v6230_v27, %s3812_s12 }
 0x513   : > { %v6738_v47 = vpop.permute.xlu0 %2319  ;;  %v6740_v63 = vpop.permute.xlu2 %2243 }
 0x514   : > { %8733 = vst [vmem:[#allocation41_spill] sm:$0xff] %v6738_v47  ;;  %v6742_v58 = vpop.permute.xlu1 %2223 }
 0x515   : > { %8734 = vst [vmem:[#allocation72_spill] sm:$0xff] %v6740_v63 }
 0x516   : > { %8735 = vst [vmem:[#allocation89_spill] sm:$0xff] %v6742_v58 }
 0x519   : > { %2473 = vrot.lane.b32.xlu0 %v5889_v33, %s3814_s14  ;;  %2379 = vrot.lane.b32.xlu2 %v5882_v49, %s3813_s13  ;;  %v8740_v33 = vld [vmem:[#allocation35_spill] sm:$0xff] }
 0x51a   : > { %2377 = vrot.lane.b32.xlu1 %v8736_v46, %s3813_s13 }
 0x51b   : > { %v6750_v23 = vpop.permute.xlu0 %2325  ;;  %v6752_v10 = vpop.permute.xlu2 %2281 }
 0x51c   : > { %8737 = vst [vmem:[#allocation108_spill] sm:$0xff] %v6750_v23  ;;  %v6754_v27 = vpop.permute.xlu1 %2229  ;;  %v8744_v23 = vld [vmem:[#allocation36_spill] sm:$0xff] }
 0x51d   : > { %8738 = vst [vmem:[#allocation152_spill] sm:$0xff] %v6752_v10 }
 0x51e   : > { %8739 = vst [vmem:[#allocation173_spill] sm:$0xff] %v6754_v27 }
 0x521   : > { %2479 = vrot.lane.b32.xlu0 %v6475_v4, %s3814_s14  ;;  %2385 = vrot.lane.b32.xlu2 %v6302_v7, %s3813_s13 }
 0x522   : > { %2383 = vrot.lane.b32.xlu1 %v8740_v33, %s3813_s13 }
 0x523   : > { %v6762_v47 = vpop.permute.xlu0 %2331  ;;  %v6764_v49 = vpop.permute.xlu2 %2287 }
 0x524   : > { %8741 = vst [vmem:[#allocation183_spill] sm:$0xff] %v6762_v47  ;;  %v6766_v46 = vpop.permute.xlu1 %2235  ;;  %v8748_v47 = vld [vmem:[#allocation97_spill] sm:$0xff] }
 0x525   : > { %8742 = vst [vmem:[#allocation38_spill] sm:$0xff] %v6764_v49 }
 0x526   : > { %8743 = vst [vmem:[#allocation124_spill] sm:$0xff] %v6766_v46 }
 0x529   : > { %2485 = vrot.lane.b32.xlu0 %v6005_v32, %s3814_s14  ;;  %2391 = vrot.lane.b32.xlu2 %v5998_v37, %s3813_s13 }
 0x52a   : > { %2389 = vrot.lane.b32.xlu1 %v8744_v23, %s3813_s13 }
 0x52b   : > { %v6774_v27 = vpop.permute.xlu0 %2337  ;;  %v6776_v7 = vpop.permute.xlu2 %2293 }
 0x52c   : > { %8745 = vst [vmem:[#allocation88_spill] sm:$0xff] %v6774_v27  ;;  %v6778_v33 = vpop.permute.xlu1 %2241  ;;  %v8752_v27 = vld [vmem:[#allocation59_spill] sm:$0xff] }
 0x52d   : > { %8746 = vst [vmem:[#allocation122_spill] sm:$0xff] %v6776_v7 }
 0x52e   : > { %8747 = vst [vmem:[#allocation141_spill] sm:$0xff] %v6778_v33  ;;  %v8753_v33 = vld [vmem:[#allocation58_spill] sm:$0xff] }
 0x531   : > { %2491 = vrot.lane.b32.xlu0 %v6501_v5, %s3814_s14  ;;  %2397 = vrot.lane.b32.xlu2 %v6338_v26, %s3813_s13 }
 0x532   : > { %2395 = vrot.lane.b32.xlu1 %v8748_v47, %s3813_s13 }
 0x533   : > { %v6786_v46 = vpop.permute.xlu0 %2343  ;;  %v6788_v37 = vpop.permute.xlu2 %2299 }
 0x534   : > { %8749 = vst [vmem:[#allocation172_spill] sm:$0xff] %v6786_v46  ;;  %v6790_v23 = vpop.permute.xlu1 %2247  ;;  %v8757_v46 = vld [vmem:[#allocation195_spill] sm:$0xff] }
 0x535   : > { %8750 = vst [vmem:[#allocation190_spill] sm:$0xff] %v6788_v37 }
 0x536   : > { %8751 = vst [vmem:[#allocation199_spill] sm:$0xff] %v6790_v23 }
 0x539   : > { %2497 = vrot.lane.b32.xlu0 %v6127_v50, %s3814_s14  ;;  %2403 = vrot.lane.b32.xlu2 %v8752_v27, %s3813_s13  ;;  %v8758_v50 = vld [vmem:[#allocation160_spill] sm:$0xff] }
 0x53a   : > { %2401 = vrot.lane.b32.xlu1 %v8753_v33, %s3813_s13 }
 0x53b   : > { %v6798_v7 = vpop.permute.xlu0 %2381  ;;  %v6800_v26 = vpop.permute.xlu2 %2305 }
 0x53c   : > { %8754 = vst [vmem:[#allocation81_spill] sm:$0xff] %v6798_v7  ;;  %v6802_v47 = vpop.permute.xlu1 %2285  ;;  %v8761_v7 = vld [vmem:[#allocation60_spill] sm:$0xff] }
 0x53d   : > { %8755 = vst [vmem:[#allocation78_spill] sm:$0xff] %v6800_v26 }
 0x53e   : > { %8756 = vst [vmem:[#allocation121_spill] sm:$0xff] %v6802_v47 }
 0x541   : > { %2503 = vrot.lane.b32.xlu0 %v6533_v25, %s3814_s14  ;;  %2409 = vrot.lane.b32.xlu2 %v8757_v46, %s3813_s13  ;;  %v8762_v25 = vld [vmem:[#allocation99_spill] sm:$0xff] }
 0x542   : > { %2407 = vrot.lane.b32.xlu1 %v8758_v50, %s3813_s13 }
 0x543   : > { %v6810_v23 = vpop.permute.xlu0 %2387  ;;  %v6812_v27 = vpop.permute.xlu2 %2311 }
 0x544   : > { %8759 = vst [vmem:[#allocation154_spill] sm:$0xff] %v6810_v23  ;;  %v6814_v37 = vpop.permute.xlu1 %2291  ;;  %v8765_v23 = vld [vmem:[#allocation116_spill] sm:$0xff] }
 0x545   : > { %8760 = vst [vmem:[#allocation168_spill] sm:$0xff] %v6814_v37  ;;  %v8766_v37 = vld [vmem:[#allocation134_spill] sm:$0xff] }
 0x549   : > { %2509 = vrot.lane.b32.xlu0 %v6067_v40, %s3814_s14  ;;  %2415 = vrot.lane.b32.xlu2 %v8761_v7, %s3813_s13 }
 0x54a   : > { %2413 = vrot.lane.b32.xlu1 %v8762_v25, %s3813_s13 }
 0x54b   : > { %v6822_v47 = vpop.permute.xlu0 %2393  ;;  %v6824_v46 = vpop.permute.xlu2 %2317 }
 0x54c   : > { %8763 = vst [vmem:[#allocation189_spill] sm:$0xff] %v6822_v47  ;;  %v6826_v50 = vpop.permute.xlu1 %2297  ;;  %v8769_v47 = vld [vmem:[#allocation80_spill] sm:$0xff] }
 0x54d   : > { %8764 = vst [vmem:[#allocation45_spill] sm:$0xff] %v6826_v50  ;;  %v8770_v50 = vld [vmem:[#allocation65_spill] sm:$0xff] }
 0x551   : > { %2515 = vrot.lane.b32.xlu0 %v6565_v20, %s3814_s14  ;;  %2421 = vrot.lane.b32.xlu2 %v8765_v23, %s3813_s13 }
 0x552   : > { %2419 = vrot.lane.b32.xlu1 %v8766_v37, %s3813_s13 }
 0x553   : > { %v6834_v26 = vpop.permute.xlu0 %2399  ;;  %v6836_v33 = vpop.permute.xlu2 %2323 }
 0x554   : > { %8767 = vst [vmem:[#allocation77_spill] sm:$0xff] %v6834_v26  ;;  %v6838_v49 = vpop.permute.xlu1 %2303  ;;  %v8773_v26 = vld [vmem:[#allocation79_spill] sm:$0xff] }
 0x555   : > { %8768 = vst [vmem:[#allocation92_spill] sm:$0xff] %v6838_v49 }
 0x559   : > { %2521 = vrot.lane.b32.xlu0 %v6184_v2, %s3814_s14  ;;  %2427 = vrot.lane.b32.xlu2 %v8769_v47, %s3813_s13 }
 0x55a   : > { %2425 = vrot.lane.b32.xlu1 %v8770_v50, %s3813_s13 }
 0x55b   : > { %v6846_v20 = vpop.permute.xlu0 %2405  ;;  %v6848_v23 = vpop.permute.xlu2 %2329 }
 0x55c   : > { %8771 = vst [vmem:[#allocation111_spill] sm:$0xff] %v6846_v20  ;;  %v6850_v10 = vpop.permute.xlu1 %2309  ;;  %v8774_v20 = vld [vmem:[#allocation162_spill] sm:$0xff] }
 0x55d   : > { %8772 = vst [vmem:[#allocation40_spill] sm:$0xff] %v6850_v10  ;;  %v8775_v10 = vld [vmem:[#allocation64_spill] sm:$0xff] }
 0x561   : > { %2527 = vrot.lane.b32.xlu0 %v6597_v41, %s3814_s14  ;;  %2433 = vrot.lane.b32.xlu2 %v6452_v62, %s3813_s13  ;;  %v8776_v41 = vld [vmem:[#allocation104_spill] sm:$0xff] }
 0x562   : > { %2431 = vrot.lane.b32.xlu1 %v8773_v26, %s3813_s13 }
 0x563   : > { %v6858_v49 = vpop.permute.xlu0 %2411  ;;  %v6860_v47 = vpop.permute.xlu2 %2335 }
 0x564   : > { %v6862_v2 = vpop.permute.xlu1 %2315 }
 0x569   : > { %2533 = vrot.lane.b32.xlu0 %v8774_v20, %s3814_s14  ;;  %2439 = vrot.lane.b32.xlu2 %v8775_v10, %s3813_s13  ;;  %v8777_v20 = vld [vmem:[#allocation112_spill] sm:$0xff] }
 0x56a   : > { %2437 = vrot.lane.b32.xlu1 %v8776_v41, %s3813_s13  ;;  %s3516_s13 = sshll.u32 %s3512_s10, 4  ;;  %s3517_s13 = int_to_ptr.hbm [resolvable:$true] %s3516_s13 }
 0x56b   : > { %v6870_v7 = vpop.permute.xlu0 %2417  ;;  %v6872_v62 = vpop.permute.xlu2 %2341  ;;  %s3760_s7 = sshra.s32 %s3517_s13, 4  ;;  %s3761_s7 = int_to_ptr.hbm [resolvable:$true] %s3760_s7 }
 0x56c   : > { %v6874_v26 = vpop.permute.xlu1 %2321  ;;  %s3762_s22 = scalar_lea.hbm %s3761_s7, 8  ;;  %p3767_p0 = scmp.lt.s32.totalorder %s3761_s7, %s7870_s5 }
 0x56d   : > { %p3763_p11 = scmp.ne.s32.totalorder %s3761_s7, %s3762_s22  ;;  %p3768_p1 = scmp.lt.s32.totalorder %s3766_s25, %s3762_s22 }
 0x56f   : > { %p3764_p12 = pnand %p3763_p11, %p3886_p5  ;;  %p3769_p2 = por %p3768_p1, %p3767_p0 }
 0x571   : > { %2571 = vrot.lane.b32.xlu0 %v5925_v17, %s3815_s15  ;;  %2477 = vrot.lane.b32.xlu2 %v6478_v11, %s3814_s14  ;;  %v8778_v17 = vld [vmem:[#allocation123_spill] sm:$0xff]  ;;  %p3765_p13 = pneg %p3764_p12 }
 0x572   : > { %2475 = vrot.lane.b32.xlu1 %v8777_v20, %s3814_s14 }
 0x573   : > { %v6882_v58 = vpop.permute.xlu0 %2423  ;;  %v6884_v10 = vpop.permute.xlu2 %2379  ;;  %p3770_p3 = pnand %p3769_p2, %p3765_p13 }
 0x574   : > { %v6886_v41 = vpop.permute.xlu1 %2327 }
 0x579   : > { %2577 = vrot.lane.b32.xlu0 %v5987_v30, %s3815_s15  ;;  %2483 = vrot.lane.b32.xlu2 %v5978_v18, %s3814_s14  ;;  %v8781_v30 = vld [vmem:[#allocation68_spill] sm:$0xff] }
 0x57a   : > { %2481 = vrot.lane.b32.xlu1 %v8778_v17, %s3814_s14 }
 0x57b   : > { %v6894_v63 = vpop.permute.xlu0 %2429  ;;  %v6896_v11 = vpop.permute.xlu2 %2385 }
 0x57c   : > { %8779 = vst [vmem:[#allocation175_spill] sm:$0xff] %v6894_v63  ;;  %v6898_v20 = vpop.permute.xlu1 %2333 }
 0x57d   : > { %8780 = vst [vmem:[#allocation184_spill] sm:$0xff] %v6898_v20 }
 0x581   : > { %2583 = vrot.lane.b32.xlu0 %v6028_v19, %s3815_s15  ;;  %2489 = vrot.lane.b32.xlu2 %v6504_v1, %s3814_s14  ;;  %v8784_v19 = vld [vmem:[#allocation83_spill] sm:$0xff] }
 0x582   : > { %2487 = vrot.lane.b32.xlu1 %v8781_v30, %s3814_s14 }
 0x583   : > { %v6906_v40 = vpop.permute.xlu0 %2435  ;;  %v6908_v18 = vpop.permute.xlu2 %2391 }
 0x584   : > { %8782 = vst [vmem:[#allocation44_spill] sm:$0xff] %v6906_v40  ;;  %v6910_v17 = vpop.permute.xlu1 %2339 }
 0x585   : > { %8783 = vst [vmem:[#allocation202_spill] sm:$0xff] %v6910_v17 }
 0x589   : > { %2589 = vrot.lane.b32.xlu0 %v6109_v53, %s3815_s15  ;;  %2495 = vrot.lane.b32.xlu2 %v6085_v6, %s3814_s14  ;;  %v8787_v53 = vld [vmem:[#allocation147_spill] sm:$0xff] }
 0x58a   : > { %2493 = vrot.lane.b32.xlu1 %v8784_v19, %s3814_s14 }
 0x58b   : > { %v6918_v63 = vpop.permute.xlu0 %2473  ;;  %v6920_v1 = vpop.permute.xlu2 %2397 }
 0x58c   : > { %8785 = vst [vmem:[#allocation91_spill] sm:$0xff] %v6918_v63  ;;  %v6922_v30 = vpop.permute.xlu1 %2377  ;;  %v8790_v63 = vld [vmem:[#allocation179_spill] sm:$0xff] }
 0x58d   : > { %8786 = vst [vmem:[#allocation125_spill] sm:$0xff] %v6922_v30 }
 0x591   : > { %2595 = vrot.lane.b32.xlu0 %v6150_v13, %s3815_s15  ;;  %2501 = vrot.lane.b32.xlu2 %v6536_v34, %s3814_s14 }
 0x592   : > { %2499 = vrot.lane.b32.xlu1 %v8787_v53, %s3814_s14 }
 0x593   : > { %v6930_v40 = vpop.permute.xlu0 %2479  ;;  %v6932_v6 = vpop.permute.xlu2 %2403 }
 0x594   : > { %8788 = vst [vmem:[#allocation146_spill] sm:$0xff] %v6930_v40  ;;  %v6934_v19 = vpop.permute.xlu1 %2383  ;;  %v8794_v40 = vld [vmem:[#allocation51_spill] sm:$0xff] }
 0x595   : > { %8789 = vst [vmem:[#allocation174_spill] sm:$0xff] %v6934_v19 }
 0x599   : > { %2601 = vrot.lane.b32.xlu0 %v6048_v28, %s3815_s15  ;;  %2507 = vrot.lane.b32.xlu2 %v6023_v9, %s3814_s14 }
 0x59a   : > { %2505 = vrot.lane.b32.xlu1 %v8790_v63, %s3814_s14 }
 0x59b   : > { %v6942_v30 = vpop.permute.xlu0 %2485  ;;  %v6944_v34 = vpop.permute.xlu2 %2409 }
 0x59c   : > { %8791 = vst [vmem:[#allocation191_spill] sm:$0xff] %v6942_v30  ;;  %v6946_v53 = vpop.permute.xlu1 %2389  ;;  %v8798_v30 = vld [vmem:[#allocation82_spill] sm:$0xff] }
 0x59d   : > { %8792 = vst [vmem:[#allocation200_spill] sm:$0xff] %v6944_v34 }
 0x59e   : > { %8793 = vst [vmem:[#allocation157_spill] sm:$0xff] %v6946_v53 }
 0x5a1   : > { %2607 = vrot.lane.b32.xlu0 %v6088_v15, %s3815_s15  ;;  %2513 = vrot.lane.b32.xlu2 %v6568_v44, %s3814_s14 }
 0x5a2   : > { %2511 = vrot.lane.b32.xlu1 %v8794_v40, %s3814_s14 }
 0x5a3   : > { %v6954_v19 = vpop.permute.xlu0 %2491  ;;  %v6956_v9 = vpop.permute.xlu2 %2415 }
 0x5a4   : > { %8795 = vst [vmem:[#allocation99_spill] sm:$0xff] %v6954_v19  ;;  %v6958_v63 = vpop.permute.xlu1 %2395  ;;  %v8802_v19 = vld [vmem:[#allocation161_spill] sm:$0xff] }
 0x5a5   : > { %8796 = vst [vmem:[#allocation134_spill] sm:$0xff] %v6956_v9  ;;  %v2872_v9 = vsel %vm1281_vm3, %v8802_v19, %v6590_v60 }
 0x5a6   : > { %8797 = vst [vmem:[#allocation65_spill] sm:$0xff] %v6958_v63  ;;  %v8804_v63 = vld [vmem:[#allocation42_spill] sm:$0xff] }
 0x5a9   : > { %2613 = vrot.lane.b32.xlu0 %v6170_v16, %s3815_s15  ;;  %2519 = vrot.lane.b32.xlu2 %v6145_v56, %s3814_s14  ;;  %v8803_v56 = vld [vmem:[#allocation135_spill] sm:$0xff] }
 0x5aa   : > { %2517 = vrot.lane.b32.xlu1 %v8798_v30, %s3814_s14 }
 0x5ab   : > { %v6966_v53 = vpop.permute.xlu0 %2497  ;;  %v6968_v44 = vpop.permute.xlu2 %2421 }
 0x5ac   : > { %8799 = vst [vmem:[#allocation51_spill] sm:$0xff] %v6966_v53  ;;  %v6970_v17 = vpop.permute.xlu1 %2401  ;;  %v2904_v53 = vsel %vm1314_vm4, %v2872_v9, %v8804_v63  ;;  %v8807_v9 = vld [vmem:[#allocation169_spill] sm:$0xff] }
 0x5ad   : > { %8800 = vst [vmem:[#allocation82_spill] sm:$0xff] %v6968_v44 }
 0x5ae   : > { %8801 = vst [vmem:[#allocation203_spill] sm:$0xff] %v6970_v17  ;;  %v2936_v17 = vsel %vm1347_vm5, %v2904_v53, %v6812_v27 }
 0x5b1   : > { %2697 = vrot.lane.b32.xlu0 %v8762_v25, %s3816_s16  ;;  %2525 = vrot.lane.b32.xlu2 %v6600_v55, %s3814_s14  ;;  %v8806_v55 = vld [vmem:[#allocation117_spill] sm:$0xff] }
 0x5b2   : > { %2523 = vrot.lane.b32.xlu1 %v8803_v56, %s3814_s14  ;;  %v2875_v20 = vsel %vm1281_vm3, %v8806_v55, %v6610_v54 }
 0x5b3   : > { %v2504_v34 = vpop.permute.xlu0 %2503  ;;  %v6985_v44 = vpop.permute.xlu2 %2427  ;;  %v2907_v53 = vsel %vm1314_vm4, %v2875_v20, %v6606_v12  ;;  %v8810_v20 = vld [vmem:[#allocation128_spill] sm:$0xff]  ;;  %v8812_v12 = vld [vmem:[#allocation119_spill] sm:$0xff] }
 0x5b4   : > { %v2408_v5 = vpop.permute.xlu1 %2407  ;;  %v2939_v63 = vsel %vm1347_vm5, %v2907_v53, %v6824_v46  ;;  %v8811_v46 = vld [vmem:[#allocation63_spill] sm:$0xff] }
 0x5b5   : > { %v2968_v60 = vsel %vm1380_vm7, %v2936_v17, %v2408_v5  ;;  %v8809_v5 = vld [vmem:[#allocation151_spill] sm:$0xff] }
 0x5b6   : > { %v6989_v25 = vsel %vm1413_vm6, %v2968_v60, %v2504_v34  ;;  %v2878_v60 = vsel %vm1281_vm3, %v8809_v5, %v6622_v42 }
 0x5b7   : > { %8805 = vst [vmem:[#allocation161_spill] sm:$0xff] %v6989_v25  ;;  %v2910_v53 = vsel %vm1314_vm4, %v2878_v60, %v8812_v12  ;;  %v8816_v60 = vld [vmem:[#allocation138_spill] sm:$0xff] }
 0x5b9   : > { %2665 = vrot.lane.b32.xlu0 %v5941_v8, %s3816_s16  ;;  %2531 = vrot.lane.b32.xlu2 %v6242_v45, %s3814_s14 }
 0x5ba   : > { %2529 = vrot.lane.b32.xlu1 %v8807_v9, %s3814_s14  ;;  %v8814_v9 = vld [vmem:[#allocation120_spill] sm:$0xff] }
 0x5bb   : > { %v2510_v17 = vpop.permute.xlu0 %2509  ;;  %v7004_v27 = vpop.permute.xlu2 %2433 }
 0x5bc   : > { %v2414_v34 = vpop.permute.xlu1 %2413 }
 0x5bd   : > { %v2971_v54 = vsel %vm1380_vm7, %v2939_v63, %v2414_v34 }
 0x5be   : > { %v7008_v8 = vsel %vm1413_vm6, %v2971_v54, %v2510_v17  ;;  %v2942_v17 = vsel %vm1347_vm5, %v2910_v53, %v6836_v33  ;;  %v8815_v33 = vld [vmem:[#allocation53_spill] sm:$0xff] }
 0x5bf   : > { %8808 = vst [vmem:[#allocation135_spill] sm:$0xff] %v7008_v8  ;;  %v2881_v8 = vsel %vm1281_vm3, %v8814_v9, %v6634_v59 }
 0x5c0   : > { %v2913_v12 = vsel %vm1314_vm4, %v2881_v8, %v8816_v60  ;;  %v8820_v8 = vld [vmem:[#allocation170_spill] sm:$0xff] }
 0x5c1   : > { %2795 = vrot.lane.b32.xlu0 %v8794_v40, %s3817_s17  ;;  %2569 = vrot.lane.b32.xlu2 %v8810_v20, %s3815_s15 }
 0x5c2   : > { %2535 = vrot.lane.b32.xlu1 %v8811_v46, %s3814_s14 }
 0x5c3   : > { %v2516_v63 = vpop.permute.xlu0 %2515  ;;  %v7023_v34 = vpop.permute.xlu2 %2439 }
 0x5c4   : > { %v2420_v54 = vpop.permute.xlu1 %2419 }
 0x5c5   : > { %v2974_v42 = vsel %vm1380_vm7, %v2942_v17, %v2420_v54 }
 0x5c6   : > { %v7027_v40 = vsel %vm1413_vm6, %v2974_v42, %v2516_v63  ;;  %v2945_v63 = vsel %vm1347_vm5, %v2913_v12, %v6848_v23  ;;  %v8818_v42 = vld [vmem:[#allocation43_spill] sm:$0xff] }
 0x5c7   : > { %8813 = vst [vmem:[#allocation42_spill] sm:$0xff] %v7027_v40  ;;  %v2884_v46 = vsel %vm1281_vm3, %v8818_v42, %v6646_v43  ;;  %v8819_v23 = vld [vmem:[#allocation127_spill] sm:$0xff]  ;;  %v8824_v40 = vld [vmem:[#allocation148_spill] sm:$0xff] }
 0x5c8   : > { %v2916_v60 = vsel %vm1314_vm4, %v2884_v46, %v8820_v8  ;;  %v8826_v46 = vld [vmem:[#allocation188_spill] sm:$0xff] }
 0x5c9   : > { %2763 = vrot.lane.b32.xlu0 %v6475_v4, %s3817_s17  ;;  %2575 = vrot.lane.b32.xlu2 %v5966_v31, %s3815_s15 }
 0x5ca   : > { %2573 = vrot.lane.b32.xlu1 %v8815_v33, %s3815_s15 }
 0x5cb   : > { %v2522_v53 = vpop.permute.xlu0 %2521  ;;  %v7042_v17 = vpop.permute.xlu2 %2477 }
 0x5cc   : > { %v2426_v54 = vpop.permute.xlu1 %2425 }
 0x5cd   : > { %v2977_v59 = vsel %vm1380_vm7, %v2945_v63, %v2426_v54 }
 0x5ce   : > { %v7046_v4 = vsel %vm1413_vm6, %v2977_v59, %v2522_v53  ;;  %v2948_v53 = vsel %vm1347_vm5, %v2916_v60, %v6860_v47  ;;  %v8823_v59 = vld [vmem:[#allocation113_spill] sm:$0xff]  ;;  %v8825_v47 = vld [vmem:[#allocation87_spill] sm:$0xff] }
 0x5cf   : > { %8817 = vst [vmem:[#allocation117_spill] sm:$0xff] %v7046_v4  ;;  %v2887_v4 = vsel %vm1281_vm3, %v8823_v59, %v6658_v22 }
 0x5d0   : > { %v2919_v8 = vsel %vm1314_vm4, %v2887_v4, %v8826_v46 }
 0x5d1   : > { %2703 = vrot.lane.b32.xlu0 %v8766_v37, %s3816_s16  ;;  %2581 = vrot.lane.b32.xlu2 %v6031_v38, %s3815_s15 }
 0x5d2   : > { %2579 = vrot.lane.b32.xlu1 %v8819_v23, %s3815_s15 }
 0x5d3   : > { %v2528_v12 = vpop.permute.xlu0 %2527  ;;  %v7061_v63 = vpop.permute.xlu2 %2483 }
 0x5d4   : > { %8821 = vst [vmem:[#allocation151_spill] sm:$0xff] %v7061_v63  ;;  %v2432_v54 = vpop.permute.xlu1 %2431 }
 0x5d5   : > { %v2980_v43 = vsel %vm1380_vm7, %v2948_v53, %v2432_v54 }
 0x5d6   : > { %v7065_v37 = vsel %vm1413_vm6, %v2980_v43, %v2528_v12  ;;  %v2951_v12 = vsel %vm1347_vm5, %v2919_v8, %v6872_v62  ;;  %v8827_v43 = vld [vmem:[#allocation193_spill] sm:$0xff]  ;;  %v8829_v62 = vld [vmem:[#allocation196_spill] sm:$0xff] }
 0x5d7   : > { %8822 = vst [vmem:[#allocation128_spill] sm:$0xff] %v7065_v37  ;;  %v8828_v37 = vld [vmem:[#allocation133_spill] sm:$0xff] }
 0x5d8   : > { %v2858_v25 = vsel %vm1281_vm3, %v8828_v37, %v8827_v43 }
 0x5d9   : > { %2671 = vrot.lane.b32.xlu0 %v8824_v40, %s3816_s16  ;;  %2587 = vrot.lane.b32.xlu2 %v6072_v61, %s3815_s15  ;;  %v2890_v63 = vsel %vm1314_vm4, %v2858_v25, %v6670_v21  ;;  %v8830_v25 = vld [vmem:[#allocation70_spill] sm:$0xff] }
 0x5da   : > { %2585 = vrot.lane.b32.xlu1 %v8825_v47, %s3815_s15  ;;  %v2922_v4 = vsel %vm1347_vm5, %v2890_v63, %v8829_v62 }
 0x5db   : > { %v2534_v60 = vpop.permute.xlu0 %2533  ;;  %v7080_v53 = vpop.permute.xlu2 %2489  ;;  %v2954_v8 = vsel %vm1380_vm7, %v2922_v4, %v6884_v10  ;;  %v8831_v10 = vld [vmem:[#allocation49_spill] sm:$0xff]  ;;  %v8832_v4 = vld [vmem:[#allocation136_spill] sm:$0xff] }
 0x5dc   : > { %v2438_v54 = vpop.permute.xlu1 %2437 }
 0x5dd   : > { %v2983_v22 = vsel %vm1380_vm7, %v2951_v12, %v2438_v54  ;;  %v2861_v54 = vsel %vm1281_vm3, %v8810_v20, %v8830_v25  ;;  %v8834_v25 = vld [vmem:[#allocation130_spill] sm:$0xff] }
 0x5de   : > { %v7084_v40 = vsel %vm1413_vm6, %v2983_v22, %v2534_v60 }
 0x5e1   : > { %2801 = vrot.lane.b32.xlu0 %v8798_v30, %s3817_s17  ;;  %2593 = vrot.lane.b32.xlu2 %v6153_v57, %s3815_s15 }
 0x5e2   : > { %2591 = vrot.lane.b32.xlu1 %v8802_v19, %s3815_s15  ;;  %v2893_v19 = vsel %vm1314_vm4, %v2861_v54, %v6682_v48 }
 0x5e3   : > { %v2572_v46 = vpop.permute.xlu0 %2571  ;;  %v7101_v60 = vpop.permute.xlu2 %2495  ;;  %v2925_v63 = vsel %vm1347_vm5, %v2893_v19, %v8831_v10 }
 0x5e4   : > { %v2476_v12 = vpop.permute.xlu1 %2475  ;;  %v2957_v43 = vsel %vm1380_vm7, %v2925_v63, %v6896_v11 }
 0x5e5   : > { %v2986_v21 = vsel %vm1413_vm6, %v2954_v8, %v2476_v12 }
 0x5e6   : > { %v7105_v30 = vsel %vm1446_vm8, %v2986_v21, %v2572_v46  ;;  %v2874_v46 = vsel %vm1281_vm3, %v6150_v13, %v8832_v4  ;;  %v8835_v13 = vld [vmem:[#allocation118_spill] sm:$0xff]  ;;  %v8838_v4 = vld [vmem:[#allocation131_spill] sm:$0xff] }
 0x5e7   : > { %v2906_v12 = vsel %vm1314_vm4, %v2874_v46, %v6692_v0  ;;  %v8839_v46 = vld [vmem:[#allocation109_spill] sm:$0xff] }
 0x5e8   : > { %v2938_v21 = vsel %vm1347_vm5, %v2906_v12, %v6862_v2 }
 0x5e9   : > { %2769 = vrot.lane.b32.xlu0 %v6005_v32, %s3817_s17  ;;  %2599 = vrot.lane.b32.xlu2 %v6010_v14, %s3815_s15  ;;  %v2970_v0 = vsel %vm1380_vm7, %v2938_v21, %v6858_v49 }
 0x5ea   : > { %2597 = vrot.lane.b32.xlu1 %v8806_v55, %s3815_s15  ;;  %v8833_v55 = vld [vmem:[#allocation115_spill] sm:$0xff] }
 0x5eb   : > { %v2578_v22 = vpop.permute.xlu0 %2577  ;;  %v7122_v20 = vpop.permute.xlu2 %2501  ;;  %v2864_v8 = vsel %vm1281_vm3, %v5966_v31, %v8833_v55 }
 0x5ec   : > { %v2482_v62 = vpop.permute.xlu1 %2481  ;;  %v2896_v11 = vsel %vm1314_vm4, %v2864_v8, %v6694_v35 }
 0x5ed   : > { %v2989_v48 = vsel %vm1413_vm6, %v2957_v43, %v2482_v62  ;;  %v2928_v31 = vsel %vm1347_vm5, %v2896_v11, %v8835_v13  ;;  %v8837_v43 = vld [vmem:[#allocation66_spill] sm:$0xff] }
 0x5ee   : > { %v7126_v32 = vsel %vm1446_vm8, %v2989_v48, %v2578_v22  ;;  %v2960_v35 = vsel %vm1380_vm7, %v2928_v31, %v6908_v18  ;;  %v2867_v49 = vsel %vm1281_vm3, %v6031_v38, %v8837_v43  ;;  %v8842_v31 = vld [vmem:[#allocation192_spill] sm:$0xff] }
 0x5ef   : > { %v2899_v62 = vsel %vm1314_vm4, %v2867_v49, %v6706_v39  ;;  %v8846_v49 = vld [vmem:[#allocation184_spill] sm:$0xff] }
 0x5f1   : > { %2709 = vrot.lane.b32.xlu0 %v8770_v50, %s3816_s16  ;;  %2605 = vrot.lane.b32.xlu2 %v8834_v25, %s3815_s15 }
 0x5f2   : > { %2603 = vrot.lane.b32.xlu1 %v8809_v5, %s3815_s15  ;;  %v8836_v5 = vld [vmem:[#allocation164_spill] sm:$0xff] }
 0x5f3   : > { %v2584_v54 = vpop.permute.xlu0 %2583  ;;  %v2508_v2 = vpop.permute.xlu2 %2507  ;;  %v2877_v22 = vsel %vm1281_vm3, %v6048_v28, %v8836_v5  ;;  %v8840_v28 = vld [vmem:[#allocation153_spill] sm:$0xff] }
 0x5f4   : > { %v2488_v19 = vpop.permute.xlu1 %2487  ;;  %v7153_v50 = vsel %vm1413_vm6, %v2970_v0, %v2508_v2  ;;  %v2909_v18 = vsel %vm1314_vm4, %v2877_v22, %v6704_v52  ;;  %v2931_v38 = vsel %vm1347_vm5, %v2899_v62, %v8840_v28  ;;  %v8845_v22 = vld [vmem:[#allocation86_spill] sm:$0xff] }
 0x5f5   : > { %v2992_v10 = vsel %vm1413_vm6, %v2960_v35, %v2488_v19  ;;  %v2941_v48 = vsel %vm1347_vm5, %v2909_v18, %v6874_v26  ;;  %v2963_v39 = vsel %vm1380_vm7, %v2931_v38, %v6920_v1  ;;  %v8847_v62 = vld [vmem:[#allocation126_spill] sm:$0xff]  ;;  %v8852_v38 = vld [vmem:[#allocation200_spill] sm:$0xff] }
 0x5f6   : > { %v7157_v63 = vsel %vm1446_vm8, %v2992_v10, %v2584_v54  ;;  %v2973_v52 = vsel %vm1380_vm7, %v2941_v48, %v6870_v7  ;;  %v2870_v7 = vsel %vm1281_vm3, %v6072_v61, %v8842_v31  ;;  %v8848_v48 = vld [vmem:[#allocation142_spill] sm:$0xff] }
 0x5f7   : > { %v2902_v54 = vsel %vm1314_vm4, %v2870_v7, %v6718_v3  ;;  %v8855_v7 = vld [vmem:[#allocation72_spill] sm:$0xff] }
 0x5f9   : > { %2677 = vrot.lane.b32.xlu0 %v8838_v4, %s3816_s16  ;;  %2611 = vrot.lane.b32.xlu2 %v8839_v46, %s3815_s15  ;;  %v8850_v4 = vld [vmem:[#allocation187_spill] sm:$0xff] }
 0x5fa   : > { %2609 = vrot.lane.b32.xlu1 %v8814_v9, %s3815_s15  ;;  %v8841_v9 = vld [vmem:[#allocation194_spill] sm:$0xff] }
 0x5fb   : > { %v2590_v55 = vpop.permute.xlu0 %2589  ;;  %v2514_v26 = vpop.permute.xlu2 %2513  ;;  %v2880_v13 = vsel %vm1281_vm3, %v6088_v15, %v8841_v9  ;;  %v8843_v15 = vld [vmem:[#allocation165_spill] sm:$0xff] }
 0x5fc   : > { %v2494_v8 = vpop.permute.xlu1 %2493  ;;  %v7184_v12 = vsel %vm1413_vm6, %v2973_v52, %v2514_v26  ;;  %v2912_v1 = vsel %vm1314_vm4, %v2880_v13, %v6716_v24  ;;  %v2934_v61 = vsel %vm1347_vm5, %v2902_v54, %v8843_v15  ;;  %v8854_v13 = vld [vmem:[#allocation140_spill] sm:$0xff]  ;;  %v8856_v54 = vld [vmem:[#allocation89_spill] sm:$0xff]  ;;  %v8857_v15 = vld [vmem:[#allocation202_spill] sm:$0xff] }
 0x5fd   : > { %v2995_v11 = vsel %vm1413_vm6, %v2963_v39, %v2494_v8  ;;  %v2944_v0 = vsel %vm1347_vm5, %v2912_v1, %v6886_v41  ;;  %v2966_v3 = vsel %vm1380_vm7, %v2934_v61, %v6932_v6  ;;  %v2876_v31 = vsel %vm1281_vm3, %v6010_v14, %v8854_v13  ;;  %v8871_v13 = vld [vmem:[#allocation129_spill] sm:$0xff] }
 0x5fe   : > { %v7188_v21 = vsel %vm1446_vm8, %v2995_v11, %v2590_v55  ;;  %v2976_v24 = vsel %vm1380_vm7, %v2944_v0, %v6882_v58  ;;  %v2873_v58 = vsel %vm1281_vm3, %v6153_v57, %v8845_v22  ;;  %v8853_v11 = vld [vmem:[#allocation107_spill] sm:$0xff]  ;;  %v2908_v0 = vsel %vm1314_vm4, %v2876_v31, %v8856_v54  ;;  %v8864_v22 = vld [vmem:[#allocation44_spill] sm:$0xff]  ;;  %v8874_v54 = vld [vmem:[#allocation37_spill] sm:$0xff] }
 0x5ff   : > { %v2905_v43 = vsel %vm1314_vm4, %v2873_v58, %v6730_v36  ;;  %v2886_v9 = vsel %vm1281_vm3, %v8848_v48, %v8853_v11  ;;  %v8870_v11 = vld [vmem:[#allocation125_spill] sm:$0xff]  ;;  %v8872_v31 = vld [vmem:[#allocation35_spill] sm:$0xff] }
 0x600   : > { %v2937_v57 = vsel %vm1347_vm5, %v2905_v43, %v8850_v4  ;;  %v2918_v1 = vsel %vm1314_vm4, %v2886_v9, %v8855_v7  ;;  %v8866_v4 = vld [vmem:[#allocation163_spill] sm:$0xff]  ;;  %v8873_v7 = vld [vmem:[#allocation108_spill] sm:$0xff] }
 0x601   : > { %2807 = vrot.lane.b32.xlu0 %v8803_v56, %s3817_s17  ;;  %2617 = vrot.lane.b32.xlu2 %v6210_v29, %s3815_s15  ;;  %v2969_v55 = vsel %vm1380_vm7, %v2937_v57, %v8852_v38  ;;  %v2950_v61 = vsel %vm1347_vm5, %v2918_v1, %v8857_v15  ;;  %v8868_v38 = vld [vmem:[#allocation152_spill] sm:$0xff] }
 0x602   : > { %2615 = vrot.lane.b32.xlu1 %v8818_v42, %s3815_s15  ;;  %v8844_v42 = vld [vmem:[#allocation67_spill] sm:$0xff]  ;;  %v2982_v58 = vsel %vm1380_vm7, %v2950_v61, %v8864_v22 }
 0x603   : > { %v2596_v35 = vpop.permute.xlu0 %2595  ;;  %v2520_v41 = vpop.permute.xlu2 %2519  ;;  %v2883_v5 = vsel %vm1281_vm3, %v6170_v16, %v8844_v42  ;;  %v8849_v16 = vld [vmem:[#allocation75_spill] sm:$0xff]  ;;  %v8863_v42 = vld [vmem:[#allocation132_spill] sm:$0xff] }
 0x604   : > { %v2500_v2 = vpop.permute.xlu1 %2499  ;;  %v7215_v56 = vsel %vm1413_vm6, %v2976_v24, %v2520_v41  ;;  %v2915_v6 = vsel %vm1314_vm4, %v2883_v5, %v6728_v51  ;;  %v8851_v51 = vld [vmem:[#allocation175_spill] sm:$0xff]  ;;  %v8859_v24 = vld [vmem:[#allocation69_spill] sm:$0xff] }
 0x605   : > { %v2998_v19 = vsel %vm1413_vm6, %v2966_v3, %v2500_v2  ;;  %v2947_v18 = vsel %vm1347_vm5, %v2915_v6, %v8846_v49  ;;  %v8860_v3 = vld [vmem:[#allocation60_spill] sm:$0xff]  ;;  %v8861_v41 = vld [vmem:[#allocation41_spill] sm:$0xff]  ;;  %v8865_v6 = vld [vmem:[#allocation134_spill] sm:$0xff] }
 0x606   : > { %v7219_v10 = vsel %vm1446_vm8, %v2998_v19, %v2596_v35  ;;  %v2979_v36 = vsel %vm1380_vm7, %v2947_v18, %v8851_v51  ;;  %v8858_v35 = vld [vmem:[#allocation79_spill] sm:$0xff]  ;;  %v2940_v14 = vsel %vm1347_vm5, %v2908_v0, %v8861_v41  ;;  %v8862_v19 = vld [vmem:[#allocation182_spill] sm:$0xff]  ;;  %v8867_v51 = vld [vmem:[#allocation180_spill] sm:$0xff] }
 0x607   : > { %v2857_v5 = vsel %vm1281_vm3, %v8863_v42, %v8862_v19  ;;  %v2972_v43 = vsel %vm1380_vm7, %v2940_v14, %v8865_v6  ;;  %v8875_v0 = vld [vmem:[#allocation54_spill] sm:$0xff]  ;;  %v8876_v61 = vld [vmem:[#allocation91_spill] sm:$0xff] }
 0x608   : > { %v2889_v57 = vsel %vm1314_vm4, %v2857_v5, %v8866_v4  ;;  %v2860_v15 = vsel %vm1281_vm3, %v8875_v0, %v8874_v54  ;;  %v8878_v5 = vld [vmem:[#allocation185_spill] sm:$0xff]  ;;  %v8882_v4 = vld [vmem:[#allocation174_spill] sm:$0xff]  ;;  %v8889_v54 = vld [vmem:[#allocation52_spill] sm:$0xff] }
 0x609   : > { %2775 = vrot.lane.b32.xlu0 %v8847_v62, %s3817_s17  ;;  %2619 = vrot.lane.b32.xlu2 %v8848_v48, %s3815_s15  ;;  %v2892_v22 = vsel %vm1314_vm4, %v2860_v15, %v8878_v5  ;;  %v8895_v5 = vld [vmem:[#allocation57_spill] sm:$0xff] }
 0x60a   : > { %2793 = vrot.lane.b32.xlu1 %v8849_v16, %s3817_s17 }
 0x60b   : > { %v7241_v28 = vpop.permute.xlu0 %2601  ;;  %v2526_v52 = vpop.permute.xlu2 %2525 }
 0x60c   : > { %v2506_v39 = vpop.permute.xlu1 %2505  ;;  %v7248_v26 = vsel %vm1413_vm6, %v2979_v36, %v2526_v52  ;;  %v2879_v36 = vsel %vm1281_vm3, %v8834_v25, %v8867_v51  ;;  %v8869_v52 = vld [vmem:[#allocation173_spill] sm:$0xff]  ;;  %v8883_v51 = vld [vmem:[#allocation110_spill] sm:$0xff] }
 0x60d   : > { %v7251_v8 = vsel %vm1413_vm6, %v2969_v55, %v2506_v39  ;;  %v2921_v55 = vsel %vm1347_vm5, %v2889_v57, %v8868_v38  ;;  %v2911_v39 = vsel %vm1314_vm4, %v2879_v36, %v8869_v52  ;;  %v8884_v36 = vld [vmem:[#allocation61_spill] sm:$0xff]  ;;  %v8885_v38 = vld [vmem:[#allocation171_spill] sm:$0xff]  ;;  %v8887_v52 = vld [vmem:[#allocation106_spill] sm:$0xff] }
 0x60e   : > { %v2953_v9 = vsel %vm1380_vm7, %v2921_v55, %v8870_v11  ;;  %v2943_v25 = vsel %vm1347_vm5, %v2911_v39, %v8873_v7  ;;  %v8886_v55 = vld [vmem:[#allocation183_spill] sm:$0xff]  ;;  %v2863_v39 = vsel %vm1281_vm3, %v8815_v33, %v8887_v52  ;;  %v8888_v11 = vld [vmem:[#allocation146_spill] sm:$0xff] }
 0x60f   : > { %v2895_v15 = vsel %vm1314_vm4, %v2863_v39, %v8889_v54  ;;  %v8902_v52 = vld [vmem:[#allocation90_spill] sm:$0xff]  ;;  %v8907_v54 = vld [vmem:[#allocation116_spill] sm:$0xff] }
 0x610   : > { %v8903_v39 = vld [vmem:[#allocation190_spill] sm:$0xff] }
 0x611   : > { %2715 = vrot.lane.b32.xlu0 %v8858_v35, %s3816_s16  ;;  %2761 = vrot.lane.b32.xlu2 %v8859_v24, %s3817_s17  ;;  %v2985_v35 = vsel %vm1413_vm6, %v2953_v9, %v8876_v61  ;;  %v8877_v24 = vld [vmem:[#allocation82_spill] sm:$0xff]  ;;  %v8890_v61 = vld [vmem:[#allocation96_spill] sm:$0xff] }
 0x612   : > { %2699 = vrot.lane.b32.xlu1 %v8860_v3, %s3816_s16  ;;  %v2885_v33 = vsel %vm1281_vm3, %v6210_v29, %v8890_v61 }
 0x613   : > { %v2608_v2 = vpop.permute.xlu0 %2607  ;;  %v2532_v49 = vpop.permute.xlu2 %2531 }
 0x614   : > { %v2512_v18 = vpop.permute.xlu1 %2511  ;;  %v7281_v62 = vsel %vm1413_vm6, %v2982_v58, %v2532_v49  ;;  %v8879_v58 = vld [vmem:[#allocation55_spill] sm:$0xff] }
 0x615   : > { %v3004_v48 = vsel %vm1413_vm6, %v2972_v43, %v2512_v18  ;;  %v2882_v6 = vsel %vm1281_vm3, %v8839_v46, %v8879_v58  ;;  %v8880_v43 = vld [vmem:[#allocation38_spill] sm:$0xff]  ;;  %v8881_v18 = vld [vmem:[#allocation124_spill] sm:$0xff] }
 0x616   : > { %v7285_v16 = vsel %vm1446_vm8, %v3004_v48, %v2608_v2  ;;  %v2924_v49 = vsel %vm1347_vm5, %v2892_v22, %v8880_v43  ;;  %v2914_v48 = vsel %vm1314_vm4, %v2882_v6, %v8881_v18  ;;  %v8896_v22 = vld [vmem:[#allocation123_spill] sm:$0xff]  ;;  %v8897_v58 = vld [vmem:[#allocation88_spill] sm:$0xff]  ;;  %v8898_v6 = vld [vmem:[#allocation149_spill] sm:$0xff] }
 0x617   : > { %v2956_v57 = vsel %vm1380_vm7, %v2924_v49, %v8882_v4  ;;  %v2946_v46 = vsel %vm1347_vm5, %v2914_v48, %v8886_v55  ;;  %v2866_v43 = vsel %vm1281_vm3, %v8819_v23, %v8898_v6  ;;  %v8899_v49 = vld [vmem:[#allocation191_spill] sm:$0xff] }
 0x618   : > { %v2988_v9 = vsel %vm1413_vm6, %v2956_v57, %v8888_v11  ;;  %v8914_v6 = vld [vmem:[#allocation167_spill] sm:$0xff] }
 0x619   : > { %2621 = vrot.lane.b32.xlu0 %v8823_v59, %s3815_s15  ;;  %2701 = vrot.lane.b32.xlu2 %v8871_v13, %s3816_s16  ;;  %v2975_v59 = vsel %vm1380_vm7, %v2943_v25, %v8877_v24  ;;  %v2978_v13 = vsel %vm1380_vm7, %v2946_v46, %v6985_v44  ;;  %v8901_v46 = vld [vmem:[#allocation139_spill] sm:$0xff] }
 0x61a   : > { %2667 = vrot.lane.b32.xlu1 %v8872_v31, %s3816_s16  ;;  %v2888_v23 = vsel %vm1281_vm3, %v8902_v52, %v8901_v46  ;;  %v8920_v46 = vld [vmem:[#allocation36_spill] sm:$0xff] }
 0x61b   : > { %v2614_v1 = vpop.permute.xlu0 %2613  ;;  %v2570_v3 = vpop.permute.xlu2 %2569 }
 0x61c   : > { %v2518_v41 = vpop.permute.xlu1 %2517  ;;  %v7314_v14 = vsel %vm1446_vm8, %v2985_v35, %v2570_v3  ;;  %v8891_v35 = vld [vmem:[#allocation122_spill] sm:$0xff]  ;;  %v8893_v3 = vld [vmem:[#allocation157_spill] sm:$0xff] }
 0x61d   : > { %v3007_v2 = vsel %vm1413_vm6, %v2975_v59, %v2518_v41  ;;  %v2927_v24 = vsel %vm1347_vm5, %v2895_v15, %v8891_v35  ;;  %v8892_v59 = vld [vmem:[#allocation141_spill] sm:$0xff]  ;;  %v8908_v15 = vld [vmem:[#allocation172_spill] sm:$0xff] }
 0x61e   : > { %v7318_v19 = vsel %vm1446_vm8, %v3007_v2, %v2614_v1  ;;  %v2917_v44 = vsel %vm1314_vm4, %v2885_v33, %v8892_v59  ;;  %v2959_v41 = vsel %vm1380_vm7, %v2927_v24, %v8893_v3  ;;  %v8894_v2 = vld [vmem:[#allocation58_spill] sm:$0xff]  ;;  %v8910_v24 = vld [vmem:[#allocation99_spill] sm:$0xff] }
 0x61f   : > { %v2949_v29 = vsel %vm1347_vm5, %v2917_v44, %v8897_v58  ;;  %v2991_v18 = vsel %vm1413_vm6, %v2959_v41, %v8899_v49  ;;  %v8909_v33 = vld [vmem:[#allocation198_spill] sm:$0xff] }
 0x620   : > { %v2981_v48 = vsel %vm1380_vm7, %v2949_v29, %v7004_v27  ;;  %v2869_v35 = vsel %vm1281_vm3, %v8825_v47, %v8909_v33  ;;  %v8913_v29 = vld [vmem:[#allocation181_spill] sm:$0xff]  ;;  %v8915_v49 = vld [vmem:[#allocation78_spill] sm:$0xff] }
 0x621   : > { %2779 = vrot.lane.b32.xlu0 %v8883_v51, %s3817_s17  ;;  %2669 = vrot.lane.b32.xlu2 %v8884_v36, %s3816_s16  ;;  %v2901_v47 = vsel %vm1314_vm4, %v2869_v35, %v8913_v29  ;;  %v8925_v35 = vld [vmem:[#allocation177_spill] sm:$0xff] }
 0x622   : > { %2797 = vrot.lane.b32.xlu1 %v8885_v38, %s3817_s17  ;;  %v8900_v38 = vld [vmem:[#allocation105_spill] sm:$0xff] }
 0x623   : > { %v2576_v31 = vpop.permute.xlu2 %2575  ;;  %v2898_v55 = vsel %vm1314_vm4, %v2866_v43, %v8900_v38  ;;  %v8918_v38 = vld [vmem:[#allocation104_spill] sm:$0xff] }
 0x624   : > { %v2524_v7 = vpop.permute.xlu1 %2523  ;;  %v7347_v25 = vsel %vm1446_vm8, %v2988_v9, %v2576_v31  ;;  %v2930_v11 = vsel %vm1347_vm5, %v2898_v55, %v8903_v39  ;;  %v8904_v9 = vld [vmem:[#allocation199_spill] sm:$0xff]  ;;  %v8919_v55 = vld [vmem:[#allocation93_spill] sm:$0xff] }
 0x625   : > { %v7350_v1 = vsel %vm1413_vm6, %v2978_v13, %v2524_v7  ;;  %v2920_v27 = vsel %vm1314_vm4, %v2888_v23, %v8904_v9  ;;  %v8905_v13 = vld [vmem:[#allocation65_spill] sm:$0xff]  ;;  %v8906_v7 = vld [vmem:[#allocation84_spill] sm:$0xff] }
 0x626   : > { %v2962_v31 = vsel %vm1380_vm7, %v2930_v11, %v8905_v13  ;;  %v2952_v61 = vsel %vm1347_vm5, %v2920_v27, %v8908_v15  ;;  %v8921_v23 = vld [vmem:[#allocation81_spill] sm:$0xff]  ;;  %v8922_v11 = vld [vmem:[#allocation51_spill] sm:$0xff] }
 0x627   : > { %v2994_v59 = vsel %vm1413_vm6, %v2962_v31, %v8910_v24  ;;  %v2984_v44 = vsel %vm1380_vm7, %v2952_v61, %v7023_v34  ;;  %v2933_v34 = vsel %vm1347_vm5, %v2901_v47, %v8915_v49  ;;  %v8923_v15 = vld [vmem:[#allocation137_spill] sm:$0xff]  ;;  %v8924_v61 = vld [vmem:[#allocation94_spill] sm:$0xff] }
 0x628   : > { %v2862_v33 = vsel %vm1281_vm3, %v8924_v61, %v8923_v15  ;;  %v8931_v49 = vld [vmem:[#allocation161_spill] sm:$0xff] }
 0x629   : > { %2685 = vrot.lane.b32.xlu0 %v8894_v2, %s3816_s16  ;;  %2799 = vrot.lane.b32.xlu2 %v8895_v5, %s3817_s17  ;;  %v8911_v5 = vld [vmem:[#allocation47_spill] sm:$0xff]  ;;  %v2894_v24 = vsel %vm1314_vm4, %v2862_v33, %v8925_v35  ;;  %v8939_v15 = vld [vmem:[#allocation189_spill] sm:$0xff] }
 0x62a   : > { %2765 = vrot.lane.b32.xlu1 %v8896_v22, %s3817_s17  ;;  %v8912_v22 = vld [vmem:[#allocation95_spill] sm:$0xff] }
 0x62b   : > { %v2582_v4 = vpop.permute.xlu2 %2581  ;;  %v2859_v58 = vsel %vm1281_vm3, %v8912_v22, %v8911_v5 }
 0x62c   : > { %v2530_v57 = vpop.permute.xlu1 %2529  ;;  %v7379_v51 = vsel %vm1446_vm8, %v2991_v18, %v2582_v4  ;;  %v2891_v43 = vsel %vm1314_vm4, %v2859_v58, %v8914_v6  ;;  %v8916_v18 = vld [vmem:[#allocation121_spill] sm:$0xff]  ;;  %v8917_v4 = vld [vmem:[#allocation203_spill] sm:$0xff] }
 0x62d   : > { %v7382_v36 = vsel %vm1413_vm6, %v2981_v48, %v2530_v57  ;;  %v2923_v48 = vsel %vm1347_vm5, %v2891_v43, %v8916_v18  ;;  %v2965_v57 = vsel %vm1380_vm7, %v2933_v34, %v8917_v4  ;;  %v8930_v58 = vld [vmem:[#allocation151_spill] sm:$0xff]  ;;  %v3116_v18 = vld [vmem:[%s7868_s3 + $0x18] sm:$0xff] }
 0x62e   : > { %v2955_v39 = vsel %vm1380_vm7, %v2923_v48, %v8921_v23  ;;  %v2997_v9 = vsel %vm1413_vm6, %v2965_v57, %v8922_v11  ;;  %v3117_v43 = vld [vmem:[%s7868_s3 + $0x20] sm:$0xf]  ;;  %v8933_v4 = vld [vmem:[#allocation158_spill] sm:$0xff]  ;;  %v8935_v23 = vld [vmem:[#allocation45_spill] sm:$0xff]  ;;  %v7489_v11 = vpop.permute.xlu0 %2697 }
 0x62f   : > { %v2987_v27 = vsel %vm1413_vm6, %v2955_v39, %v7042_v17  ;;  %v8927_v17 = vld [vmem:[#allocation98_spill] sm:$0xff]  ;;  %3615 = vmatpush.msk.msra.mxu1 %vm1651_vm2, %v3117_v43  ;;  %3659 = vmatpush.msk.msra.mxu3 %vm1651_vm2, %v3117_v43  ;;  %v8932_v48 = vld [vmem:[#allocation155_spill] sm:$0xff]  ;;  %v8945_v43 = vld [vmem:[#allocation160_spill] sm:$0xff] }
 0x630   : > { %v2865_v57 = vsel %vm1281_vm3, %v8933_v4, %v8932_v48  ;;  %v8948_v48 = vld [vmem:[#allocation77_spill] sm:$0xff] }
 0x631   : > { %2815 = vrot.lane.b32.xlu0 %v6242_v45, %s3817_s17  ;;  %2767 = vrot.lane.b32.xlu2 %v8906_v7, %s3817_s17 }
 0x632   : > { %2705 = vrot.lane.b32.xlu1 %v8907_v54, %s3816_s16  ;;  %3233 = vmatpush.msra.mxu1 %v3116_v18 }
 0x633   : > { %v2588_v45 = vpop.permute.xlu2 %2587  ;;  %3660 = vmatpush.msra.mxu3 %v3116_v18  ;;  %v8947_v18 = vld [vmem:[#allocation80_spill] sm:$0xff] }
 0x634   : > { %v2536_v3 = vpop.permute.xlu1 %2535  ;;  %v7411_v41 = vsel %vm1446_vm8, %v2994_v59, %v2588_v45  ;;  %v8926_v59 = vld [vmem:[#allocation168_spill] sm:$0xff]  ;;  %v8928_v45 = vld [vmem:[#allocation143_spill] sm:$0xff] }
 0x635   : > { %v7414_v2 = vsel %vm1413_vm6, %v2984_v44, %v2536_v3  ;;  %v2926_v44 = vsel %vm1347_vm5, %v2894_v24, %v8926_v59  ;;  %v8929_v3 = vld [vmem:[#allocation154_spill] sm:$0xff]  ;;  %v3113_v59 = vld [vmem:[%s7868_s3] sm:$0xff] }
 0x636   : > { %v2958_v5 = vsel %vm1380_vm7, %v2926_v44, %v8929_v3  ;;  %v8940_v44 = vld [vmem:[#allocation135_spill] sm:$0xff]  ;;  %v8941_v3 = vld [vmem:[#allocation201_spill] sm:$0xff] }
 0x637   : > { %v2990_v29 = vsel %vm1413_vm6, %v2958_v5, %v8930_v58  ;;  %v8942_v5 = vld [vmem:[#allocation39_spill] sm:$0xff] }
 0x638   : > { %v2868_v58 = vsel %vm1281_vm3, %v8942_v5, %v8941_v3 }
 0x639   : > { %2721 = vrot.lane.b32.xlu0 %v8918_v38, %s3816_s16  ;;  %2707 = vrot.lane.b32.xlu2 %v8919_v55, %s3816_s16  ;;  %v3115_v38 = vld [vmem:[%s7868_s3 + $0x10] sm:$0xff] }
 0x63a   : > { %2673 = vrot.lane.b32.xlu1 %v8920_v46, %s3816_s16  ;;  %v8934_v55 = vld [vmem:[#allocation197_spill] sm:$0xff]  ;;  %3234 = vmatpush.msra.mxu1 %v3115_v38 }
 0x63b   : > { %v2594_v13 = vpop.permute.xlu2 %2593  ;;  %v2897_v46 = vsel %vm1314_vm4, %v2865_v57, %v8934_v55  ;;  %3661 = vmatpush.msra.mxu3 %v3115_v38  ;;  %v2666_v57 = vpop.permute.xlu0 %2665 }
 0x63c   : > { %v2574_v31 = vpop.permute.xlu1 %2573  ;;  %v7442_v7 = vsel %vm1446_vm8, %v2997_v9, %v2594_v13  ;;  %v2929_v39 = vsel %vm1347_vm5, %v2897_v46, %v8935_v23  ;;  %v8936_v9 = vld [vmem:[#allocation56_spill] sm:$0xff]  ;;  %v8949_v23 = vld [vmem:[#allocation42_spill] sm:$0xff] }
 0x63d   : > { %v7445_v54 = vsel %vm1446_vm8, %v2987_v27, %v2574_v31  ;;  %v8937_v27 = vld [vmem:[#allocation100_spill] sm:$0xff]  ;;  %v2961_v61 = vsel %vm1380_vm7, %v2929_v39, %v8939_v15  ;;  %v8952_v15 = vld [vmem:[#allocation74_spill] sm:$0xff] }
 0x63e   : > { %v8938_v13 = vld [vmem:[#allocation68_spill] sm:$0xff]  ;;  %v2993_v33 = vsel %vm1413_vm6, %v2961_v61, %v7080_v53  ;;  %v8943_v53 = vld [vmem:[#allocation73_spill] sm:$0xff] }
 0x63f   : > { %v3114_v31 = vld [vmem:[%s7868_s3 + $0x8] sm:$0xff] }
 0x640   : > { %3235 = vmatpush.msra.mxu1 %v3114_v31  ;;  %3662 = vmatpush.msra.mxu3 %v3114_v31 }
 0x641   : > { %2627 = vrot.lane.b32.xlu0 %v8828_v37, %s3815_s15  ;;  %2675 = vrot.lane.b32.xlu2 %v8927_v17, %s3816_s16 }
 0x642   : > { %2803 = vrot.lane.b32.xlu1 %v8928_v45, %s3817_s17  ;;  %3236 = vmatpush.msra.mxu1 %v3113_v59 }
 0x643   : > { %v2600_v47 = vpop.permute.xlu2 %2599  ;;  %3663 = vmatpush.msra.mxu3 %v3113_v59  ;;  %v8956_v59 = vld [vmem:[#allocation97_spill] sm:$0xff] }
 0x644   : > { %v2580_v6 = vpop.permute.xlu1 %2579  ;;  %v7469_v37 = vsel %vm1446_vm8, %v8931_v49, %v2600_v47  ;;  %v8944_v47 = vld [vmem:[#allocation92_spill] sm:$0xff]  ;;  %v8946_v49 = vld [vmem:[#allocation150_spill] sm:$0xff] }
 0x645   : > { %v7472_v34 = vsel %vm1446_vm8, %v2990_v29, %v2580_v6  ;;  %v2900_v29 = vsel %vm1314_vm4, %v2868_v58, %v8943_v53 }
 0x646   : > { %v2932_v6 = vsel %vm1347_vm5, %v2900_v29, %v8944_v47  ;;  %v2796_v29 = vpop.permute.xlu0 %2795  ;;  %v8958_v47 = vld [vmem:[#allocation117_spill] sm:$0xff] }
 0x647   : > { %v2964_v4 = vsel %vm1380_vm7, %v2932_v6, %v8948_v48  ;;  %v8961_v48 = vld [vmem:[#allocation85_spill] sm:$0xff] }
 0x648   : > { %v2996_v38 = vsel %vm1413_vm6, %v2964_v4, %v7101_v60  ;;  %v8954_v60 = vld [vmem:[#allocation48_spill] sm:$0xff] }
 0x649   : > { %2785 = vrot.lane.b32.xlu0 %v8936_v9, %s3817_s17  ;;  %2805 = vrot.lane.b32.xlu2 %v8937_v27, %s3817_s17  ;;  %v8950_v27 = vld [vmem:[#allocation71_spill] sm:$0xff] }
 0x64a   : > { %2771 = vrot.lane.b32.xlu1 %v8938_v13, %s3817_s17  ;;  %v8951_v13 = vld [vmem:[#allocation166_spill] sm:$0xff] }
 0x64b   : > { %v2606_v35 = vpop.permute.xlu2 %2605  ;;  %v2871_v31 = vsel %vm1281_vm3, %v8951_v13, %v8950_v27  ;;  %v8964_v27 = vld [vmem:[#allocation83_spill] sm:$0xff]  ;;  %v3049_v13 = vsel %vm1479_vm10, %v7314_v14, %v2666_v57  ;;  %v8967_v14 = vld [vmem:[#allocation169_spill] sm:$0xff]  ;;  %v3033_v57 = vsel %vm1446_vm8, %v7251_v8, %v7241_v28 }
 0x64c   : > { %v2586_v24 = vpop.permute.xlu1 %2585  ;;  %v7509_v17 = vsel %vm1446_vm8, %v8940_v44, %v2606_v35  ;;  %v2903_v61 = vsel %vm1314_vm4, %v2871_v31, %v8952_v15  ;;  %v8957_v44 = vld [vmem:[#allocation111_spill] sm:$0xff] }
 0x64d   : > { %v7512_v45 = vsel %vm1446_vm8, %v2993_v33, %v2586_v24  ;;  %v8953_v33 = vld [vmem:[#allocation40_spill] sm:$0xff]  ;;  %v8955_v24 = vld [vmem:[#allocation46_spill] sm:$0xff] }
 0x64e   : > { %v2935_v35 = vsel %vm1347_vm5, %v2903_v61, %v8953_v33  ;;  %v8965_v33 = vld [vmem:[#allocation186_spill] sm:$0xff] }
 0x64f   : > { %v2967_v3 = vsel %vm1380_vm7, %v2935_v35, %v8957_v44  ;;  %v8966_v35 = vld [vmem:[#allocation103_spill] sm:$0xff] }
 0x650   : > { %v2999_v5 = vsel %vm1413_vm6, %v2967_v3, %v7122_v20  ;;  %v3065_v3 = vsel %vm1479_vm10, %v3033_v57, %v7489_v11 }
 0x651   : > { %2691 = vrot.lane.b32.xlu0 %v8945_v43, %s3816_s16  ;;  %2773 = vrot.lane.b32.xlu2 %v8946_v49, %s3817_s17  ;;  %v8959_v49 = vld [vmem:[#allocation156_spill] sm:$0xff] }
 0x652   : > { %2711 = vrot.lane.b32.xlu1 %v8947_v18, %s3816_s16  ;;  %v8960_v18 = vld [vmem:[#allocation102_spill] sm:$0xff] }
 0x653   : > { %v2612_v55 = vpop.permute.xlu2 %2611 }
 0x654   : > { %v2592_v46 = vpop.permute.xlu1 %2591  ;;  %v7533_v39 = vsel %vm1446_vm8, %v8949_v23, %v2612_v55  ;;  %v2764_v55 = vpop.permute.xlu0 %2763  ;;  %v8963_v23 = vld [vmem:[#allocation76_spill] sm:$0xff] }
 0x655   : > { %v7536_v9 = vsel %vm1446_vm8, %v2996_v38, %v2592_v46  ;;  %v8962_v46 = vld [vmem:[#allocation178_spill] sm:$0xff] }
 0x659   : > { %2821 = vrot.lane.b32.xlu0 %v8954_v60, %s3817_s17  ;;  %2713 = vrot.lane.b32.xlu2 %v8955_v24, %s3816_s16 }
 0x65a   : > { %2679 = vrot.lane.b32.xlu1 %v8956_v59, %s3816_s16 }
 0x65b   : > { %v2618_v58 = vpop.permute.xlu2 %2617 }
 0x65c   : > { %v2598_v53 = vpop.permute.xlu1 %2597  ;;  %v7557_v6 = vsel %vm1446_vm8, %v8958_v47, %v2618_v58 }
 0x65d   : > { %v7560_v43 = vsel %vm1446_vm8, %v2999_v5, %v2598_v53 }
 0x661   : > { %2727 = vrot.lane.b32.xlu0 %v8959_v49, %s3816_s16  ;;  %2681 = vrot.lane.b32.xlu2 %v8960_v18, %s3816_s16 }
 0x662   : > { %2809 = vrot.lane.b32.xlu1 %v8961_v48, %s3817_s17  ;;  %v8970_v48 = vld [vmem:[#allocation59_spill] sm:$0xff] }
 0x663   : > { %v2620_v20 = vpop.permute.xlu2 %2619 }
 0x664   : > { %v2604_v4 = vpop.permute.xlu1 %2603  ;;  %v7570_v38 = vsel %vm1446_vm8, %v7350_v1, %v2620_v20  ;;  %v2704_v1 = vpop.permute.xlu0 %2703 }
 0x665   : > { %v3034_v47 = vsel %vm1446_vm8, %v7153_v50, %v2604_v4 }
 0x669   : > { %2695 = vrot.lane.b32.xlu0 %v8962_v46, %s3816_s16  ;;  %2811 = vrot.lane.b32.xlu2 %v8963_v23, %s3817_s17 }
 0x66a   : > { %2777 = vrot.lane.b32.xlu1 %v8964_v27, %s3817_s17  ;;  %v8972_v27 = vld [vmem:[#allocation147_spill] sm:$0xff] }
 0x66b   : > { %v2762_v31 = vpop.permute.xlu2 %2761 }
 0x66c   : > { %v2610_v15 = vpop.permute.xlu1 %2609  ;;  %v3081_v61 = vsel %vm1512_vm9, %v3049_v13, %v2762_v31  ;;  %v2672_v44 = vpop.permute.xlu0 %2671 }
 0x66d   : > { %3616 = vmatmul.msk.f32.vlgmr.msra.gmra.mxu1 %vm1554_vm11, %v3081_v61 }
 0x671   : > { %2717 = vrot.lane.b32.xlu2 %v8965_v33, %s3816_s16  ;;  %v8974_v33 = vld [vmem:[#allocation159_spill] sm:$0xff] }
 0x672   : > { %2683 = vrot.lane.b32.xlu1 %v8966_v35, %s3816_s16  ;;  %v3068_v35 = vsel %vm1479_vm10, %v7285_v16, %v2704_v1  ;;  %v3037_v1 = vsel %vm1446_vm8, %v7184_v12, %v2610_v15 }
 0x673   : > { %v2702_v60 = vpop.permute.xlu2 %2701 }
 0x674   : > { %v2616_v24 = vpop.permute.xlu1 %2615  ;;  %v2802_v49 = vpop.permute.xlu0 %2801  ;;  %v3067_v13 = vsel %vm1479_vm10, %v7509_v17, %v2702_v60 }
 0x675   : > { %v7588_v59 = vsel %vm1446_vm8, %v7215_v56, %v2616_v24  ;;  %v8968_v56 = vld [vmem:[#allocation101_spill] sm:$0xff] }
 0x679   : > { %2623 = vrot.lane.b32.xlu2 %v8902_v52, %s3815_s15  ;;  %v8969_v52 = vld [vmem:[#allocation176_spill] sm:$0xff] }
 0x67a   : > { %2813 = vrot.lane.b32.xlu1 %v8967_v14, %s3817_s17 }
 0x67b   : > { %v2670_v5 = vpop.permute.xlu2 %2669 }
 0x67c   : > { %v2794_v58 = vpop.permute.xlu1 %2793  ;;  %v2770_v23 = vpop.permute.xlu0 %2769  ;;  %v3051_v24 = vsel %vm1479_vm10, %v7445_v54, %v2670_v5  ;;  %v3052_v54 = vsel %vm1479_vm10, %v7347_v25, %v2672_v44  ;;  %v8977_v25 = vld [vmem:[#allocation114_spill] sm:$0xff] }
 0x67d   : > { %v3097_v53 = vsel %vm1512_vm9, %v3065_v3, %v2794_v58  ;;  %v8975_v3 = vld [vmem:[#allocation63_spill] sm:$0xff] }
 0x67e   : > { %3632 = vmatmul.msk.f32.vlgmr.msra.gmra.mxu3 %vm1554_vm11, %v3097_v53 }
 0x681   : > { %2781 = vrot.lane.b32.xlu2 %v8968_v56, %s3817_s17 }
 0x682   : > { %2719 = vrot.lane.b32.xlu1 %v8969_v52, %s3816_s16  ;;  %v8976_v52 = vld [vmem:[#allocation62_spill] sm:$0xff] }
 0x683   : > { %v2800_v28 = vpop.permute.xlu2 %2799 }
 0x684   : > { %v2700_v8 = vpop.permute.xlu1 %2699  ;;  %v3100_v57 = vsel %vm1512_vm9, %v3068_v35, %v2800_v28 }
 0x685   : > { %v3066_v11 = vsel %vm1479_vm10, %v3034_v47, %v2700_v8  ;;  %v8978_v8 = vld [vmem:[#allocation195_spill] sm:$0xff] }
 0x686   : > { %v3098_v18 = vsel %vm1512_vm9, %v3066_v11, %v2796_v29  ;;  %v8971_v29 = vld [vmem:[#allocation162_spill] sm:$0xff] }
 0x687   : > { %3633 = vmatmul.msk.f32.gmra.mxu3 %vm1554_vm11, %v3098_v18 }
 0x689   : > { %2687 = vrot.lane.b32.xlu2 %v8970_v48, %s3816_s16 }
 0x68a   : > { %2625 = vrot.lane.b32.xlu1 %v8863_v42, %s3815_s15 }
 0x68b   : > { %v2768_v20 = vpop.permute.xlu2 %2767 }
 0x68c   : > { %v2668_v46 = vpop.permute.xlu1 %2667  ;;  %v3084_v56 = vsel %vm1512_vm9, %v3052_v54, %v2768_v20  ;;  %v8979_v20 = vld [vmem:[#allocation112_spill] sm:$0xff] }
 0x68d   : > { %v3050_v50 = vsel %vm1479_vm10, %v7105_v30, %v2668_v46  ;;  %v2710_v30 = vpop.permute.xlu0 %2709  ;;  %v8980_v46 = vld [vmem:[#allocation179_spill] sm:$0xff] }
 0x68e   : > { %v3082_v4 = vsel %vm1512_vm9, %v3050_v50, %v2764_v55  ;;  %v8973_v55 = vld [vmem:[#allocation64_spill] sm:$0xff]  ;;  %v3071_v50 = vsel %vm1479_vm10, %v7318_v19, %v2710_v30 }
 0x68f   : > { %3617 = vmatmul.msk.f32.gmra.mxu1 %vm1554_vm11, %v3082_v4 }
 0x691   : > { %2817 = vrot.lane.b32.xlu2 %v8971_v29, %s3817_s17 }
 0x692   : > { %2783 = vrot.lane.b32.xlu1 %v8972_v27, %s3817_s17 }
 0x693   : > { %v2708_v42 = vpop.permute.xlu2 %2707 }
 0x694   : > { %v2798_v31 = vpop.permute.xlu1 %2797 }
 0x695   : > { %v3099_v61 = vsel %vm1512_vm9, %v3067_v13, %v2798_v31  ;;  %v2678_v16 = vpop.permute.xlu0 %2677  ;;  %v8981_v13 = vld [vmem:[#allocation50_spill] sm:$0xff] }
 0x696   : > { %3634 = vmatmul.msk.f32.gmra.mxu3 %vm1554_vm11, %v3099_v61  ;;  %v3055_v19 = vsel %vm1479_vm10, %v7379_v51, %v2678_v16 }
 0x699   : > { %2723 = vrot.lane.b32.xlu2 %v8973_v55, %s3816_s16 }
 0x69a   : > { %2689 = vrot.lane.b32.xlu1 %v8974_v33, %s3816_s16 }
 0x69b   : > { %v2676_v17 = vpop.permute.xlu2 %2675 }
 0x69c   : > { %v2766_v60 = vpop.permute.xlu1 %2765 }
 0x69d   : > { %v3083_v14 = vsel %vm1512_vm9, %v3051_v24, %v2766_v60  ;;  %v2808_v15 = vpop.permute.xlu0 %2807 }
 0x69e   : > { %3618 = vmatmul.msk.f32.gmra.mxu1 %vm1554_vm11, %v3083_v14  ;;  %3635 = vmatmul.msk.f32.gmra.mxu3 %vm1554_vm11, %v3100_v57 }
 0x6a1   : > { %2629 = vrot.lane.b32.xlu2 %v8912_v22, %s3815_s15 }
 0x6a2   : > { %2819 = vrot.lane.b32.xlu1 %v8975_v3, %s3817_s17 }
 0x6a3   : > { %v2806_v5 = vpop.permute.xlu2 %2805 }
 0x6a4   : > { %v2706_v58 = vpop.permute.xlu1 %2705  ;;  %v3103_v29 = vsel %vm1512_vm9, %v3071_v50, %v2806_v5 }
 0x6a5   : > { %v3069_v53 = vsel %vm1479_vm10, %v3037_v1, %v2706_v58 }
 0x6a6   : > { %3619 = vmatmul.msk.f32.gmra.mxu1 %vm1554_vm11, %v3084_v56  ;;  %v3101_v22 = vsel %vm1512_vm9, %v3069_v53, %v2802_v49  ;;  %v3070_v49 = vsel %vm1479_vm10, %v7533_v39, %v2708_v42 }
 0x6a7   : > { %3636 = vmatmul.msk.f32.gmra.mxu3 %vm1554_vm11, %v3101_v22 }
 0x6a9   : > { %2787 = vrot.lane.b32.xlu2 %v8976_v52, %s3817_s17 }
 0x6aa   : > { %2725 = vrot.lane.b32.xlu1 %v8977_v25, %s3816_s16 }
 0x6ab   : > { %v2774_v44 = vpop.permute.xlu2 %2773 }
 0x6ac   : > { %v2674_v12 = vpop.permute.xlu1 %2673  ;;  %v3087_v61 = vsel %vm1512_vm9, %v3055_v19, %v2774_v44 }
 0x6ad   : > { %v3053_v47 = vsel %vm1479_vm10, %v7126_v32, %v2674_v12  ;;  %v2776_v32 = vpop.permute.xlu0 %2775 }
 0x6ae   : > { %v3085_v28 = vsel %vm1512_vm9, %v3053_v47, %v2770_v23 }
 0x6af   : > { %3620 = vmatmul.msk.f32.gmra.mxu1 %vm1554_vm11, %v3085_v28 }
 0x6b1   : > { %2693 = vrot.lane.b32.xlu2 %v8978_v8, %s3816_s16 }
 0x6b2   : > { %2631 = vrot.lane.b32.xlu1 %v8875_v0, %s3815_s15  ;;  %v3054_v0 = vsel %vm1479_vm10, %v7472_v34, %v2676_v17 }
 0x6b3   : > { %v2714_v11 = vpop.permute.xlu2 %2713 }
 0x6b4   : > { %v2804_v18 = vpop.permute.xlu1 %2803 }
 0x6b5   : > { %v3102_v48 = vsel %vm1512_vm9, %v3070_v49, %v2804_v18  ;;  %v2716_v27 = vpop.permute.xlu0 %2715  ;;  %v8982_v49 = vld [vmem:[#allocation6_spill] sm:$0xff]  ;;  %v8983_v18 = vld [vmem:[#allocation128_spill] sm:$0xff] }
 0x6b6   : > { %3637 = vmatmul.msk.f32.gmra.mxu3 %vm1554_vm11, %v3102_v48  ;;  %v3074_v3 = vsel %vm1479_vm10, %v7570_v38, %v2716_v27 }
 0x6b9   : > { %2823 = vrot.lane.b32.xlu2 %v8979_v20, %s3817_s17 }
 0x6ba   : > { %2789 = vrot.lane.b32.xlu1 %v8980_v46, %s3817_s17 }
 0x6bb   : > { %v2682_v39 = vpop.permute.xlu2 %2681 }
 0x6bc   : > { %v2772_v4 = vpop.permute.xlu1 %2771 }
 0x6bd   : > { %v3086_v23 = vsel %vm1512_vm9, %v3054_v0, %v2772_v4  ;;  %v2622_v55 = vpop.permute.xlu0 %2621 }
 0x6be   : > { %3621 = vmatmul.msk.f32.gmra.mxu1 %vm1554_vm11, %v3086_v23  ;;  %3638 = vmatmul.msk.f32.gmra.mxu3 %vm1554_vm11, %v3103_v29  ;;  %v3043_v52 = vsel %vm1446_vm8, %v7248_v26, %v2622_v55 }
 0x6c2   : > { %2791 = vrot.lane.b32.xlu1 %v8981_v13, %s3817_s17  ;;  %s215_s17 = sand.u32 1, %s3800_s19  }
 0x6c3   : > { %v2812_v42 = vpop.permute.xlu2 %2811  ;;  %s3580_s26 = sshll.u32 %s215_s17, 3  ;;  %s3501_s14 = scalar_lea.sflag [#allocation3], %s215_s17 }
 0x6c4   : > { %v2712_v31 = vpop.permute.xlu1 %2711  ;;  %v3106_v1 = vsel %vm1512_vm9, %v3074_v3, %v2812_v42  ;;  %s217_s11 = scalar_lea.vmem [#allocation2], %s3580_s26 }
 0x6c5   : > { %v3072_v34 = vsel %vm1479_vm10, %v7588_v59, %v2712_v31  ;;  %v3073_v59 = vsel %vm1479_vm10, %v7557_v6, %v2714_v11  ;;  %v2780_v60 = vpop.permute.xlu0 %2779  ;;  %s3514_s12 = sshll.u32 %s217_s11, 4  ;;  %s3515_s12 = int_to_ptr.vmem [resolvable:$true] %s3514_s12 }
 0x6c6   : > { %3622 = vmatmul.msk.f32.gmra.mxu1 %vm1554_vm11, %v3087_v61  ;;  %v3104_v30 = vsel %vm1512_vm9, %v3072_v34, %v2808_v15  ;;  %v8984_v61 = vld [vmem:[#allocation23_spill] sm:$0xff] }
 0x6c7   : > { %3639 = vmatmul.msk.f32.gmra.mxu3 %vm1554_vm11, %v3104_v30 }
 0x6cb   : > { %v2718_v33 = vpop.permute.xlu2 %2717 }
 0x6cc   : > { %v2680_v35 = vpop.permute.xlu1 %2679  ;;  %v3075_v44 = vsel %vm1479_vm10, %v3043_v52, %v2718_v33 }
 0x6cd   : > { %v3056_v24 = vsel %vm1479_vm10, %v7157_v63, %v2680_v35  ;;  %v3057_v63 = vsel %vm1479_vm10, %v7512_v45, %v2682_v39  ;;  %v2686_v6 = vpop.permute.xlu0 %2685  ;;  %v7712_v45 = vld [vmem:[%s7869_s4] ss:$0 sm:$0xff] }
 0x6ce   : > { %v3088_v51 = vsel %vm1512_vm9, %v3056_v24, %v2776_v32  ;;  %v3059_v15 = vsel %vm1479_vm10, %v7188_v21, %v2686_v6 }
 0x6cf   : > { %3623 = vmatmul.msk.f32.gmra.mxu1 %vm1554_vm11, %v3088_v51 }
 0x6d3   : > { %v2624_v57 = vpop.permute.xlu2 %2623 }
 0x6d4   : > { %v2810_v17 = vpop.permute.xlu1 %2809  ;;  %v3044_v48 = vsel %vm1446_vm8, %v8983_v18, %v2624_v57 }
 0x6d5   : > { %v3105_v14 = vsel %vm1512_vm9, %v3073_v59, %v2810_v17  ;;  %v2816_v56 = vpop.permute.xlu0 %2815 }
 0x6d6   : > { %3640 = vmatmul.msk.f32.gmra.mxu3 %vm1554_vm11, %v3105_v14  ;;  %v8985_v14 = vld [vmem:[#allocation22_spill] sm:$0xff] }
 0x6db   : > { %v2782_v5 = vpop.permute.xlu2 %2781 }
 0x6dc   : > { %v2778_v16 = vpop.permute.xlu1 %2777  ;;  %v3091_v8 = vsel %vm1512_vm9, %v3059_v15, %v2782_v5 }
 0x6dd   : > { %v3089_v54 = vsel %vm1512_vm9, %v3057_v63, %v2778_v16  ;;  %v2722_v11 = vpop.permute.xlu0 %2721 }
 0x6de   : > { %3624 = vmatmul.msk.f32.gmra.mxu1 %vm1554_vm11, %v3089_v54  ;;  %3641 = vmatmul.msk.f32.gmra.mxu3 %vm1554_vm11, %v3106_v1  ;;  %v8986_v54 = vld [vmem:[#allocation8_spill] sm:$0xff] }
 0x6e3   : > { %v2688_v22 = vpop.permute.xlu2 %2687 }
 0x6e4   : > { %v2684_v58 = vpop.permute.xlu1 %2683  ;;  %v3060_v19 = vsel %vm1479_vm10, %v7536_v9, %v2688_v22 }
 0x6e5   : > { %v3058_v53 = vsel %vm1479_vm10, %v7411_v41, %v2684_v58  ;;  %v2628_v0 = vpop.permute.xlu0 %2627 }
 0x6e6   : > { %v3090_v38 = vsel %vm1512_vm9, %v3058_v53, %v2780_v60  ;;  %v3046_v6 = vsel %vm1446_vm8, %v7281_v62, %v2628_v0 }
 0x6e7   : > { %3625 = vmatmul.msk.f32.gmra.mxu1 %vm1554_vm11, %v3090_v38 }
 0x6ea   : > { %v3238_v25 = vpop.f32.mrf.mxu1 }
 0x6eb   : > { %v3239_v12 = vadd.f32 %v7712_v45, %v3238_v25  ;;  %v2818_v32 = vpop.permute.xlu2 %2817 }
 0x6ec   : > { %v2814_v41 = vpop.permute.xlu1 %2813 }
 0x6ed   : > { %v3107_v47 = vsel %vm1512_vm9, %v3075_v44, %v2814_v41  ;;  %v3334_v28 = vmax.f32 %v3239_v12, 0.0 }
 0x6ee   : > { %3642 = vmatmul.msk.f32.gmra.mxu3 %vm1554_vm11, %v3107_v47  ;;  %v8987_v47 = vld [vmem:[#allocation21_spill] sm:$0xff] }
 0x6ef   : > { %3626 = vmatmul.msk.f32.gmra.mxu1 %vm1554_vm11, %v3091_v8  ;;  %v3398_v26 = vadd.f32 %v3334_v28, %v8982_v49 }
 0x6f1   : > { %3430 = vxpose.xlu2.b32.start [1/16] (narrow) %v3398_v26, 8  ;;  %v8988_v26 = vld [vmem:[#allocation5_spill] sm:$0xff] }
 0x6f3   : > { %v2724_v4 = vpop.permute.xlu2 %2723 }
 0x6f4   : > { %v2720_v20 = vpop.permute.xlu1 %2719 }
 0x6f5   : > { %v3076_v21 = vsel %vm1479_vm10, %v3044_v48, %v2720_v20 }
 0x6f6   : > { %v3108_v46 = vsel %vm1512_vm9, %v3076_v21, %v2816_v56 }
 0x6f7   : > { %3643 = vmatmul.msk.f32.gmra.mxu3 %vm1554_vm11, %v3108_v46 }
 0x6fb   : > { %v2630_v55 = vpop.permute.xlu2 %2629 }
 0x6fc   : > { %v2626_v50 = vpop.permute.xlu1 %2625  ;;  %v3047_v25 = vsel %vm1446_vm8, %v7084_v40, %v2630_v55 }
 0x6fd   : > { %v3045_v39 = vsel %vm1446_vm8, %v7382_v36, %v2626_v50  ;;  %v2786_v36 = vpop.permute.xlu0 %2785 }
 0x6fe   : > { %v3077_v23 = vsel %vm1479_vm10, %v3045_v39, %v2722_v11  ;;  %v8989_v39 = vld [vmem:[#allocation26_spill] sm:$0xff] }
 0x6ff   : > { %v3109_v29 = vsel %vm1512_vm9, %v3077_v23, %v2818_v32 }
 0x700   : > { %3644 = vmatmul.msk.f32.gmra.mxu3 %vm1554_vm11, %v3109_v29 }
 0x701   : > { %v3286_v27 = vpop.f32.mrf.mxu3 }
 0x702   : > { %v3287_v13 = vadd.f32 %v7712_v45, %v3286_v27 }
 0x703   : > { %v2788_v16 = vpop.permute.xlu2 %2787 }
 0x704   : > { %v3350_v42 = vmax.f32 %v3287_v13, 0.0  ;;  %v2784_v31 = vpop.permute.xlu1 %2783  ;;  %v8990_v13 = vld [vmem:[#allocation7_spill] sm:$0xff] }
 0x705   : > { %v3092_v34 = vsel %vm1512_vm9, %v3060_v19, %v2784_v31  ;;  %v2692_v63 = vpop.permute.xlu0 %2691 }
 0x706   : > { %v3414_v30 = vadd.f32 %v3350_v42, %v8984_v61  ;;  %3627 = vmatmul.msk.f32.gmra.mxu1 %vm1554_vm11, %v3092_v34  ;;  %v3062_v58 = vsel %vm1479_vm10, %v7219_v10, %v2692_v63 }
 0x707   : > { %v3094_v38 = vsel %vm1512_vm9, %v3062_v58, %v2788_v16 }
 0x708   : > { %3462 = vxpose.xlu0.b32.start [1/16] (narrow) %v3414_v30, 8 }
 0x70a   : > { %v3289_v33 = vpop.f32.mrf.mxu3 }
 0x70b   : > { %v3290_v35 = vadd.f32 %v7712_v45, %v3289_v33  ;;  %v2694_v44 = vpop.permute.xlu2 %2693  ;;  %v8991_v33 = vld [vmem:[#allocation25_spill] sm:$0xff] }
 0x70c   : > { %v2690_v24 = vpop.permute.xlu1 %2689  ;;  %v3241_v9 = vpop.f32.mrf.mxu1 }
 0x70d   : > { %v3351_v51 = vmax.f32 %v3290_v35, 0.0  ;;  %v3061_v59 = vsel %vm1479_vm10, %v7442_v7, %v2690_v24  ;;  %v3242_v17 = vadd.f32 %v7712_v45, %v3241_v9  ;;  %v3078_v7 = vsel %vm1479_vm10, %v3046_v6, %v2724_v4  ;;  %v2822_v52 = vpop.permute.xlu0 %2821 }
 0x70e   : > { %v3093_v60 = vsel %vm1512_vm9, %v3061_v59, %v2786_v36  ;;  %v8992_v59 = vld [vmem:[#allocation11_spill] sm:$0xff] }
 0x70f   : > { %v3415_v57 = vadd.f32 %v3351_v51, %v8985_v14  ;;  %3628 = vmatmul.msk.f32.gmra.mxu1 %vm1554_vm11, %v3093_v60  ;;  %v3335_v3 = vmax.f32 %v3242_v17, 0.0 }
 0x711   : > { %3463 = vxpose.xlu0.b32.cont [2/16] (narrow) %v3415_v57, 8  ;;  %v3399_v1 = vadd.f32 %v3335_v3, %v8986_v54  ;;  %v8993_v54 = vld [vmem:[#allocation24_spill] sm:$0xff] }
 0x713   : > { %3431 = vxpose.xlu2.b32.cont [2/16] (narrow) %v3399_v1, 8  ;;  %v2824_v0 = vpop.permute.xlu2 %2823 }
 0x714   : > { %v2820_v5 = vpop.permute.xlu1 %2819 }
 0x715   : > { %v3110_v53 = vsel %vm1512_vm9, %v3078_v7, %v2820_v5  ;;  %v2728_v46 = vpop.permute.xlu0 %2727  ;;  %v8994_v7 = vld [vmem:[#allocation10_spill] sm:$0xff] }
 0x716   : > { %3645 = vmatmul.msk.f32.gmra.mxu3 %vm1554_vm11, %v3110_v53 }
 0x717   : > { %3629 = vmatmul.msk.f32.gmra.mxu1 %vm1554_vm11, %v3094_v38 }
 0x719   : > { %v3292_v56 = vpop.f32.mrf.mxu3 }
 0x71a   : > { %v3293_v22 = vadd.f32 %v7712_v45, %v3292_v56 }
 0x71b   : > { %v3244_v62 = vpop.f32.mrf.mxu1 }
 0x71c   : > { %v3352_v12 = vmax.f32 %v3293_v22, 0.0  ;;  %v3245_v10 = vadd.f32 %v7712_v45, %v3244_v62  ;;  %v2726_v41 = vpop.permute.xlu1 %2725  ;;  %v8995_v22 = vld [vmem:[#allocation29_spill] sm:$0xff] }
 0x71d   : > { %v3079_v15 = vsel %vm1479_vm10, %v3047_v25, %v2726_v41  ;;  %v2696_v51 = vpop.permute.xlu0 %2695  ;;  %v8996_v25 = vld [vmem:[#allocation9_spill] sm:$0xff] }
 0x71e   : > { %v3416_v28 = vadd.f32 %v3352_v12, %v8987_v47  ;;  %v3336_v8 = vmax.f32 %v3245_v10, 0.0  ;;  %v3111_v49 = vsel %vm1512_vm9, %v3079_v15, %v2822_v52 }
 0x71f   : > { %3646 = vmatmul.msk.f32.gmra.mxu3 %vm1554_vm11, %v3111_v49 }
 0x720   : > { %v3400_v11 = vadd.f32 %v3336_v8, %v8988_v26  ;;  %3464 = vxpose.xlu0.b32.cont [3/16] (narrow) %v3416_v28, 8  ;;  %v8997_v28 = vld [vmem:[#allocation28_spill] sm:$0xff]  ;;  %v8998_v26 = vld [vmem:[#allocation14_spill] sm:$0xff] }
 0x721   : > { %v3295_v18 = vpop.f32.mrf.mxu3 }
 0x722   : > { %v3296_v40 = vadd.f32 %v7712_v45, %v3295_v18  ;;  %3432 = vxpose.xlu2.b32.cont [3/16] (narrow) %v3400_v11, 8 }
 0x723   : > { %v3247_v48 = vpop.f32.mrf.mxu1 }
 0x724   : > { %v3353_v32 = vmax.f32 %v3296_v40, 0.0  ;;  %v3248_v20 = vadd.f32 %v7712_v45, %v3247_v48  ;;  %v2632_v21 = vpop.permute.xlu1 %2631 }
 0x725   : > { %v3048_v50 = vsel %vm1446_vm8, %v7414_v2, %v2632_v21  ;;  %v3063_v2 = vsel %vm1479_vm10, %v7560_v43, %v2694_v44  ;;  %v3064_v43 = vsel %vm1479_vm10, %v7469_v37, %v2696_v51  ;;  %v8999_v21 = vld [vmem:[#allocation27_spill] sm:$0xff] }
 0x726   : > { %v3417_v4 = vadd.f32 %v3353_v32, %v8989_v39  ;;  %v3337_v23 = vmax.f32 %v3248_v20, 0.0  ;;  %v3080_v29 = vsel %vm1479_vm10, %v3048_v50, %v2728_v46 }
 0x727   : > { %v3112_v27 = vsel %vm1512_vm9, %v3080_v29, %v2824_v0  ;;  %v9000_v0 = vld [vmem:[#allocation13_spill] sm:$0xff] }
 0x728   : > { %v3401_v19 = vadd.f32 %v3337_v23, %v8990_v13  ;;  %3465 = vxpose.xlu0.b32.cont [4/16] (narrow) %v3417_v4, 8  ;;  %3647 = vmatmul.msk.f32.gmra.mxu3 %vm1554_vm11, %v3112_v27 }
 0x72a   : > { %3433 = vxpose.xlu2.b32.cont [4/16] (narrow) %v3401_v19, 8  ;;  %v3298_v42 = vpop.f32.mrf.mxu3  ;;  %v9001_v19 = vld [vmem:[#allocation32_spill] sm:$0xff] }
 0x72b   : > { %v3299_v31 = vadd.f32 %v7712_v45, %v3298_v42 }
 0x72c   : > { %v2790_v34 = vpop.permute.xlu1 %2789  ;;  %v3250_v61 = vpop.f32.mrf.mxu1 }
 0x72d   : > { %v3354_v30 = vmax.f32 %v3299_v31, 0.0  ;;  %v3251_v36 = vadd.f32 %v7712_v45, %v3250_v61  ;;  %v3095_v55 = vsel %vm1512_vm9, %v3063_v2, %v2790_v34  ;;  %v9002_v2 = vld [vmem:[#allocation12_spill] sm:$0xff] }
 0x72e   : > { %3630 = vmatmul.msk.f32.gmra.mxu1 %vm1554_vm11, %v3095_v55  ;;  %v9003_v55 = vld [vmem:[#allocation17_spill] sm:$0xff] }
 0x72f   : > { %v3418_v35 = vadd.f32 %v3354_v30, %v8991_v33  ;;  %v3338_v24 = vmax.f32 %v3251_v36, 0.0 }
 0x731   : > { %v3402_v9 = vadd.f32 %v3338_v24, %v8992_v59  ;;  %3466 = vxpose.xlu0.b32.cont [5/16] (narrow) %v3418_v35, 8  ;;  %v9004_v59 = vld [vmem:[#allocation31_spill] sm:$0xff] }
 0x733   : > { %3434 = vxpose.xlu2.b32.cont [5/16] (narrow) %v3402_v9, 8 }
 0x734   : > { %v2792_v17 = vpop.permute.xlu1 %2791 }
 0x735   : > { %v3096_v60 = vsel %vm1512_vm9, %v3064_v43, %v2792_v17 }
 0x736   : > { %3631 = vmatmul.msk.f32.gmra.mxu1 %vm1554_vm11, %v3096_v60 }
 0x739   : > { %v3301_v14 = vpop.f32.mrf.mxu3 }
 0x73a   : > { %v3302_v57 = vadd.f32 %v7712_v45, %v3301_v14  ;;  %v9005_v14 = vld [vmem:[#allocation30_spill] sm:$0xff] }
 0x73b   : > { %v3253_v3 = vpop.f32.mrf.mxu1 }
 0x73c   : > { %v3355_v63 = vmax.f32 %v3302_v57, 0.0  ;;  %v3254_v16 = vadd.f32 %v7712_v45, %v3253_v3 }
 0x73e   : > { %v3419_v1 = vadd.f32 %v3355_v63, %v8993_v54  ;;  %v3339_v6 = vmax.f32 %v3254_v16, 0.0 }
 0x740   : > { %v3403_v5 = vadd.f32 %v3339_v6, %v8994_v7  ;;  %3467 = vxpose.xlu0.b32.cont [6/16] (narrow) %v3419_v1, 8  ;;  %v9006_v7 = vld [vmem:[#allocation16_spill] sm:$0xff] }
 0x741   : > { %v3304_v58 = vpop.f32.mrf.mxu3 }
 0x742   : > { %v3305_v37 = vadd.f32 %v7712_v45, %v3304_v58  ;;  %3435 = vxpose.xlu2.b32.cont [6/16] (narrow) %v3403_v5, 8  ;;  %v9007_v58 = vld [vmem:[#allocation34_spill] sm:$0xff] }
 0x743   : > { %v3256_v53 = vpop.f32.mrf.mxu1 }
 0x744   : > { %v3356_v38 = vmax.f32 %v3305_v37, 0.0  ;;  %v3257_v56 = vadd.f32 %v7712_v45, %v3256_v53 }
 0x746   : > { %v3420_v52 = vadd.f32 %v3356_v38, %v8995_v22  ;;  %v3340_v62 = vmax.f32 %v3257_v56, 0.0  ;;  %v9008_v22 = vld [vmem:[#allocation15_spill] sm:$0xff] }
 0x748   : > { %v3404_v44 = vadd.f32 %v3340_v62, %v8996_v25  ;;  %3468 = vxpose.xlu0.b32.cont [7/16] (narrow) %v3420_v52, 8 }
 0x74a   : > { %3436 = vxpose.xlu2.b32.cont [7/16] (narrow) %v3404_v44, 8  ;;  %v3307_v12 = vpop.f32.mrf.mxu3 }
 0x74b   : > { %v3308_v10 = vadd.f32 %v7712_v45, %v3307_v12  ;;  %v9009_v12 = vld [vmem:[#allocation20_spill] sm:$0xff] }
 0x74c   : > { %v3259_v41 = vpop.f32.mrf.mxu1 }
 0x74d   : > { %v3357_v15 = vmax.f32 %v3308_v10, 0.0  ;;  %v3260_v47 = vadd.f32 %v7712_v45, %v3259_v41 }
 0x74f   : > { %v3421_v8 = vadd.f32 %v3357_v15, %v8997_v28  ;;  %v3341_v49 = vmax.f32 %v3260_v47, 0.0  ;;  %v9010_v28 = vld [vmem:[#allocation33_spill] sm:$0xff] }
 0x751   : > { %v3405_v11 = vadd.f32 %v3341_v49, %v8998_v26  ;;  %3469 = vxpose.xlu0.b32.cont [8/16] (narrow) %v3421_v8, 8 }
 0x753   : > { %3437 = vxpose.xlu2.b32.cont [8/16] (narrow) %v3405_v11, 8 }
 0x759   : > { %v3310_v18 = vpop.f32.mrf.mxu3 }
 0x75a   : > { %v3311_v40 = vadd.f32 %v7712_v45, %v3310_v18  ;;  %v9011_v18 = vld [vmem:[#allocation145_spill] sm:$0xff] }
 0x75b   : > { %v3262_v48 = vpop.f32.mrf.mxu1 }
 0x75c   : > { %v3358_v32 = vmax.f32 %v3311_v40, 0.0  ;;  %v3263_v20 = vadd.f32 %v7712_v45, %v3262_v48 }
 0x75e   : > { %v3422_v46 = vadd.f32 %v3358_v32, %v8999_v21  ;;  %v3342_v50 = vmax.f32 %v3263_v20, 0.0 }
 0x760   : > { %v3406_v39 = vadd.f32 %v3342_v50, %v9000_v0  ;;  %3470 = vxpose.xlu0.b32.cont [9/16] (narrow) %v3422_v46, 8  ;;  %v9012_v0 = vld [vmem:[#allocation19_spill] sm:$0xff] }
 0x761   : > { %v3313_v4 = vpop.f32.mrf.mxu3 }
 0x762   : > { %v3314_v23 = vadd.f32 %v7712_v45, %v3313_v4  ;;  %3438 = vxpose.xlu2.b32.cont [9/16] (narrow) %v3406_v39, 8  ;;  %v9013_v4 = vld [vmem:[#allocation144_spill] sm:$0xff] }
 0x764   : > { %v3359_v29 = vmax.f32 %v3314_v23, 0.0  ;;  %v3265_v27 = vpop.f32.mrf.mxu1 }
 0x765   : > { %v3266_v13 = vadd.f32 %v7712_v45, %v3265_v27 }
 0x766   : > { %v3423_v42 = vadd.f32 %v3359_v29, %v9001_v19  ;;  %v9014_v19 = vld [vmem:[#allocation18_spill] sm:$0xff] }
 0x767   : > { %v3343_v31 = vmax.f32 %v3266_v13, 0.0 }
 0x768   : > { %3471 = vxpose.xlu0.b32.cont [10/16] (narrow) %v3423_v42, 8 }
 0x769   : > { %v3407_v34 = vadd.f32 %v3343_v31, %v9002_v2 }
 0x76b   : > { %3439 = vxpose.xlu2.b32.cont [10/16] (narrow) %v3407_v34, 8 }
 0x76c   : > { %v3268_v61 = vpop.f32.mrf.mxu1 }
 0x76d   : > { %v3269_v30 = vadd.f32 %v7712_v45, %v3268_v61 }
 0x76f   : > { %v3344_v36 = vmax.f32 %v3269_v30, 0.0 }
 0x771   : > { %v3408_v33 = vadd.f32 %v3344_v36, %v9003_v55  ;;  %v3316_v35 = vpop.f32.mrf.mxu3 }
 0x772   : > { %v3317_v24 = vadd.f32 %v7712_v45, %v3316_v35 }
 0x773   : > { %3440 = vxpose.xlu2.b32.cont [11/16] (narrow) %v3408_v33, 8 }
 0x774   : > { %v3360_v51 = vmax.f32 %v3317_v24, 0.0 }
 0x776   : > { %v3424_v9 = vadd.f32 %v3360_v51, %v9004_v59 }
 0x778   : > { %3472 = vxpose.xlu0.b32.cont [11/16] (narrow) %v3424_v9, 8 }
 0x77a   : > { %v3319_v43 = vpop.f32.mrf.mxu3 }
 0x77b   : > { %v3320_v17 = vadd.f32 %v7712_v45, %v3319_v43 }
 0x77d   : > { %v3361_v60 = vmax.f32 %v3320_v17, 0.0 }
 0x77f   : > { %v3425_v57 = vadd.f32 %v3361_v60, %v9005_v14 }
 0x781   : > { %3473 = vxpose.xlu0.b32.cont [12/16] (narrow) %v3425_v57, 8 }
 0x783   : > { %v3271_v3 = vpop.f32.mrf.mxu1  ;;  %v3322_v63 = vpop.f32.mrf.mxu3 }
 0x784   : > { %v3272_v16 = vadd.f32 %v7712_v45, %v3271_v3  ;;  %v3323_v54 = vadd.f32 %v7712_v45, %v3322_v63 }
 0x786   : > { %v3345_v1 = vmax.f32 %v3272_v16, 0.0  ;;  %v3362_v6 = vmax.f32 %v3323_v54, 0.0 }
 0x788   : > { %v3409_v5 = vadd.f32 %v3345_v1, %v9006_v7  ;;  %v3426_v37 = vadd.f32 %v3362_v6, %v9007_v58 }
 0x78a   : > { %3441 = vxpose.xlu2.b32.cont [12/16] (narrow) %v3409_v5, 8  ;;  %3474 = vxpose.xlu0.b32.cont [13/16] (narrow) %v3426_v37, 8 }
 0x78c   : > { %v3274_v53 = vpop.f32.mrf.mxu1 }
 0x78d   : > { %v3275_v38 = vadd.f32 %v7712_v45, %v3274_v53 }
 0x78f   : > { %v3346_v56 = vmax.f32 %v3275_v38, 0.0 }
 0x791   : > { %v3410_v52 = vadd.f32 %v3346_v56, %v9008_v22 }
 0x793   : > { %3442 = vxpose.xlu2.b32.cont [13/16] (narrow) %v3410_v52, 8 }
 0x794   : > { %v3277_v62 = vpop.f32.mrf.mxu1 }
 0x795   : > { %v3278_v25 = vadd.f32 %v7712_v45, %v3277_v62 }
 0x797   : > { %v3347_v44 = vmax.f32 %v3278_v25, 0.0 }
 0x799   : > { %v3411_v10 = vadd.f32 %v3347_v44, %v9009_v12  ;;  %v3325_v41 = vpop.f32.mrf.mxu3 }
 0x79a   : > { %v3326_v15 = vadd.f32 %v7712_v45, %v3325_v41 }
 0x79b   : > { %3443 = vxpose.xlu2.b32.cont [14/16] (narrow) %v3411_v10, 8 }
 0x79c   : > { %v3363_v47 = vmax.f32 %v3326_v15, 0.0 }
 0x79e   : > { %v3427_v8 = vadd.f32 %v3363_v47, %v9010_v28 }
 0x7a0   : > { %3475 = vxpose.xlu0.b32.cont [14/16] (narrow) %v3427_v8, 8 }
 0x7a2   : > { %v3328_v49 = vpop.f32.mrf.mxu3 }
 0x7a3   : > { %v3329_v26 = vadd.f32 %v7712_v45, %v3328_v49 }
 0x7a5   : > { %v3364_v11 = vmax.f32 %v3329_v26, 0.0 }
 0x7a7   : > { %v3428_v40 = vadd.f32 %v3364_v11, %v9011_v18 }
 0x7a9   : > { %3476 = vxpose.xlu0.b32.cont [15/16] (narrow) %v3428_v40, 8 }
 0x7ab   : > { %v3280_v48 = vpop.f32.mrf.mxu1  ;;  %v3331_v32 = vpop.f32.mrf.mxu3 }
 0x7ac   : > { %v3281_v20 = vadd.f32 %v7712_v45, %v3280_v48  ;;  %v3332_v21 = vadd.f32 %v7712_v45, %v3331_v32 }
 0x7ae   : > { %v3348_v46 = vmax.f32 %v3281_v20, 0.0  ;;  %v3365_v50 = vmax.f32 %v3332_v21, 0.0 }
 0x7b0   : > { %v3412_v39 = vadd.f32 %v3348_v46, %v9012_v0  ;;  %v3429_v23 = vadd.f32 %v3365_v50, %v9013_v4 }
 0x7b2   : > { %3444 = vxpose.xlu2.b32.cont [15/16] (narrow) %v3412_v39, 8  ;;  %3477 = vxpose.xlu0.b32.end [16/16] (narrow) %v3429_v23, 8 }
 0x7b3   : > { %v3283_v29 = vpop.f32.mrf.mxu1 }
 0x7b4   : > { %v3284_v27 = vadd.f32 %v7712_v45, %v3283_v29 }
 0x7b6   : > { %v3349_v13 = vmax.f32 %v3284_v27, 0.0 }
 0x7b8   : > { %v3413_v42 = vadd.f32 %v3349_v13, %v9014_v19 }
 0x7ba   : > { %3445 = vxpose.xlu2.b32.end [16/16] (narrow) %v3413_v42, 8 }
 0x7db   : > { %v3446_v2 = vpop.trf.xlu2 }
 0x7de   : > { %v3478_v31 = vpop.trf.xlu0 }
 0x7df   : > { %v3496_v34 = vrot.slane %v3478_v31, 4 }
 0x7e1   : > { %v3497_v45 = vsel %vm1651_vm2, %v3446_v2, %v3496_v34 }
 0x7e2   : > { %3499 = vst [vmem:[%s217_s11] sm:$0xff] %v3497_v45 }
 0x7e3   : > { %3773 = shalt.err (!%p3770_p3)
}
 0x7e4   : > { %3665 = dma.vmem_to_hbm [thread:$0]  (%p3886_p5), %s3515_s12, 128, %s3517_s13, %s3501_s14  }
 0x7e5 PF: > { %p3671_p4 = scmp.ge.s32.totalorder %s3808_s21, 2  ;;  %s3528_s17 = sand.u32 1, %s3796_s18  }
 0x7e6   : > { %s3529_s26 = scalar_lea.sflag [#allocation3], %s3528_s17 }
 0x7e7   : > { %p3668_p7 = pnand %p3671_p4, %p3890_p6 }
 0x7e9   : > { %p3669_p8 = pneg %p3668_p7 }
 0x7eb   : > { %3791 = dma.done.wait (%p3669_p8), %s3529_s26, 128  }
 0x7ec   : > { %3793 = vsyncadd (%p3669_p8), %s3529_s26, 4294967168  ;;  %p15_p9 = scmp.ge.s32.totalorder %s3873_s24, 4   ;;  %s9015_s18 = smov %s3800_s19 }
 0x7ed   : > { %s9016_s19 = smov %s3804_s20  ;;  %s9017_s20 = smov %s3884_s27 }
 0x7ee   : > { %s9018_s21 = smov %s3873_s24  ;;  %17 = sbr.rel (!%p15_p9) target bundleno = 3 (0x3), region = 75 }
 0x7f3   :  { %3535 = vsyncpa [#allocation3], 1 }
 0x7f4   :  { %3537 = vsyncpa [#allocation3 + $0x1], 1 }

</bundles_post_ra>
